<compile_context>
chip_gen: v5e
topology: v5e:2x2
jax: 0.10.0
libtpu: 0.0.40
codegen_flags: <defaults>
</compile_context>

<pallas_src>
import jax
import jax.numpy as jnp
from jax.experimental import pallas as pl
from jax.experimental.pallas import tpu as pltpu

IN_FEATURES = 189
HIDDEN = 1024
OUT_FEATURES = 81
NEG_SLOPE = 0.01  # PyTorch nn.LeakyReLU default

# Lane/MXU-aligned padded dims (weights only; x is padded inside the kernel).
IN_PAD = 256    # 189 -> 256 (zero-padded K; extra rows of w1 are zero)
OUT_PAD = 128   # 81  -> 128 (pad lanes get -1e30 bias -> softmax weight 0)


def _round_up(n, m):
    return ((n + m - 1) // m) * m


def _leaky_relu_bf16(x):
    # max(x, 0.01*x) == LeakyReLU(x); computed in bf16 (x is already bf16 for
    # the next MXU op, and v6e/v7x VALUs run bf16 at 2 elem/lane).
    return jnp.maximum(x, x * NEG_SLOPE)


def mlp_kernel(x_ref, w1_ref, b1_ref, w2_ref, b2_ref, w3_ref, b3_ref,
               o_ref, xpad_ref):
    # Zero-extend the unpadded f32 [TB, 189] input tile into a lane-aligned
    # bf16 [TB, 256] VMEM scratch.  (Re-zeroed every step so megacore grid
    # sharding on v7x stays correct; the cost is negligible.)
    xpad_ref[...] = jnp.zeros_like(xpad_ref)
    xpad_ref[:, :IN_FEATURES] = x_ref[...].astype(jnp.bfloat16)
    x = xpad_ref[...]

    # Linear(189 -> 1024) + LeakyReLU   (bf16 MXU, f32 accumulation + bias)
    a1 = jnp.dot(x, w1_ref[...], preferred_element_type=jnp.float32) + b1_ref[...]
    h1 = _leaky_relu_bf16(a1.astype(jnp.bfloat16))

    # Linear(1024 -> 1024) + LeakyReLU
    a2 = jnp.dot(h1, w2_ref[...], preferred_element_type=jnp.float32) + b2_ref[...]
    h2 = _leaky_relu_bf16(a2.astype(jnp.bfloat16))

    # Linear(1024 -> 81, padded to 128)
    logits = jnp.dot(h2, w3_ref[...], preferred_element_type=jnp.float32) + b3_ref[...]

    # Numerically stable softmax over the padded width; pad lanes carry a
    # -1e30 bias so exp(.) == 0 there and they do not affect the result.
    m = jnp.max(logits, axis=-1, keepdims=True)
    e = jnp.exp(logits - m)
    inv = pl.reciprocal(jnp.sum(e, axis=-1, keepdims=True), approx=True)
    o_ref[...] = e * inv


def init_params(key):
    """f32 logical params, shapes match the PyTorch module but weights are
    pre-transposed to [in, out] so the kernel computes x @ W."""
    k1, k2, k3, k4, k5, k6 = jax.random.split(key, 6)

    def lin(kw, kb, fan_in, fan_out):
        bound = 1.0 / jnp.sqrt(fan_in)
        w = jax.random.uniform(kw, (fan_in, fan_out), jnp.float32, -bound, bound)
        b = jax.random.uniform(kb, (1, fan_out), jnp.float32, -bound, bound)
        return w, b

    w1, b1 = lin(k1, k2, IN_FEATURES, HIDDEN)
    w2, b2 = lin(k3, k4, HIDDEN, HIDDEN)
    w3, b3 = lin(k5, k6, HIDDEN, OUT_FEATURES)
    return w1, b1, w2, b2, w3, b3


def prepare_params(w1, b1, w2, b2, w3, b3):
    """Pad to lane-aligned shapes and cast weights to bf16 (done once, offline)."""
    w1p = (jnp.zeros((IN_PAD, HIDDEN), jnp.bfloat16)
           .at[:IN_FEATURES, :].set(w1.astype(jnp.bfloat16)))
    w2p = w2.astype(jnp.bfloat16)
    w3p = (jnp.zeros((HIDDEN, OUT_PAD), jnp.bfloat16)
           .at[:, :OUT_FEATURES].set(w3.astype(jnp.bfloat16)))
    b1p = b1.astype(jnp.float32)
    b2p = b2.astype(jnp.float32)
    b3p = (jnp.full((1, OUT_PAD), -1e30, jnp.float32)
           .at[:, :OUT_FEATURES].set(b3.astype(jnp.float32)))
    return w1p, b1p, w2p, b2p, w3p, b3p


def _choose_block_batch(batch):
    if batch <= 16:
        # bf16 vregs pack (16,128); an 8-row tile would run half-empty.
        return 16
    if batch >= 1024:
        # Big tiles amortize per-step overhead; grid still has >=2 programs.
        return 512
    # Mid-size batches: split into (at least) 2 grid steps so the "parallel"
    # batch axis can be sharded across both TensorCores on v7x.
    return min(512, _round_up(pl.cdiv(batch, 2), 16))


def tictacmaster_forward(x, prepared_params):
    w1, b1, w2, b2, w3, b3 = prepared_params
    batch = x.shape[0]

    block_batch = _choose_block_batch(batch)

    # Only the tiny-batch case pays a (trivial) row pad; larger non-multiple
    # batches use a ragged last grid step (out-of-range rows are masked on
    # store and sliced away below).  No column pad / cast pass over x.
    padded_batch = max(batch, block_batch)
    xin = x
    if padded_batch != batch:
        xin = jnp.pad(x, ((0, padded_batch - batch), (0, 0)))

    grid = (pl.cdiv(padded_batch, block_batch),)

    out_padded = pl.pallas_call(
        mlp_kernel,
        out_shape=jax.ShapeDtypeStruct((padded_batch, OUT_PAD), jnp.float32),
        grid=grid,
        in_specs=[
            pl.BlockSpec((block_batch, IN_FEATURES), lambda i: (i, 0)),  # x tile (unpadded)
            pl.BlockSpec((IN_PAD, HIDDEN), lambda i: (0, 0)),            # w1 (VMEM-resident)
            pl.BlockSpec((1, HIDDEN), lambda i: (0, 0)),                 # b1
            pl.BlockSpec((HIDDEN, HIDDEN), lambda i: (0, 0)),            # w2 (VMEM-resident)
            pl.BlockSpec((1, HIDDEN), lambda i: (0, 0)),                 # b2
            pl.BlockSpec((HIDDEN, OUT_PAD), lambda i: (0, 0)),           # w3 (VMEM-resident)
            pl.BlockSpec((1, OUT_PAD), lambda i: (0, 0)),                # b3
        ],
        out_specs=pl.BlockSpec((block_batch, OUT_PAD), lambda i: (i, 0)),
        scratch_shapes=[pltpu.VMEM((block_batch, IN_PAD), jnp.bfloat16)],  # x pad buf
        compiler_params=pltpu.CompilerParams(
            dimension_semantics=("parallel",),   # batch axis: 2 TCs on v7x
            # Resident weights double-buffer to ~5.5 MiB + f32 h1/h2 temporaries
            # at block_batch=512 -> 32 MiB is safe headroom on v5e/v6e/v7x.
            vmem_limit_bytes=32 << 20,
        ),
    )(xin, w1, b1, w2, b2, w3, b3)

    return out_padded[:batch, :OUT_FEATURES]


def reference_forward(x, w1, b1, w2, b2, w3, b3):
    def leaky(v):
        return jnp.where(v >= 0, v, NEG_SLOPE * v)
    h1 = leaky(x @ w1 + b1)
    h2 = leaky(h1 @ w2 + b2)
    logits = h2 @ w3 + b3
    return jax.nn.softmax(logits, axis=-1)


if __name__ == "__main__":
    key = jax.random.PRNGKey(0)
    kx, kp = jax.random.split(key)

    batch = 8
    x = jax.random.normal(kx, (batch, IN_FEATURES), jnp.float32)

    params_f32 = init_params(kp)
    params_dev = prepare_params(*params_f32)

    fwd = jax.jit(tictacmaster_forward)
    out = fwd(x, params_dev)
    out = jax.block_until_ready(out)

    ref = reference_forward(x, *params_f32)
    assert out.shape == (batch, OUT_FEATURES)
    # bf16 weights + approx reciprocal -> compare against the f32 reference
    # with a quantization-appropriate tolerance.
    assert jnp.allclose(out, ref, atol=2e-2, rtol=2e-2), "mismatch vs JAX reference"
    assert jnp.allclose(jnp.sum(out, axis=-1), 1.0, atol=1e-2), "softmax rows must sum to ~1"

    print("KERNEL_OK")
</pallas_src>

<mosaic_0001>
module attributes {stable_mosaic.version = 11 : i64} {
  func.func @mlp_kernel(%arg0: i32, %arg1: memref<16x189xf32, #tpu.memory_space<vmem>>, %arg2: memref<256x1024xbf16, #tpu.memory_space<vmem>>, %arg3: memref<1x1024xf32, #tpu.memory_space<vmem>>, %arg4: memref<1024x1024xbf16, #tpu.memory_space<vmem>>, %arg5: memref<1x1024xf32, #tpu.memory_space<vmem>>, %arg6: memref<1024x128xbf16, #tpu.memory_space<vmem>>, %arg7: memref<1x128xf32, #tpu.memory_space<vmem>>, %arg8: memref<16x128xf32, #tpu.memory_space<vmem>>, %arg9: memref<16x256xbf16, #tpu.memory_space<vmem>>) attributes {dimension_semantics = [#tpu.dimension_semantics<parallel>], iteration_bounds = array<i64: 1>, scalar_prefetch = 0 : i64, scratch_operands = 1 : i64, tpu.core_type = #tpu.core_type<tc>, window_params = [{transform_indices = @transform_0, window_bounds = array<i64: 16, 189>}, {pipeline_mode = #tpu.pipeline_mode<synchronous>, transform_indices = @transform_1, window_bounds = array<i64: 256, 1024>}, {pipeline_mode = #tpu.pipeline_mode<synchronous>, transform_indices = @transform_2, window_bounds = array<i64: 1, 1024>}, {pipeline_mode = #tpu.pipeline_mode<synchronous>, transform_indices = @transform_3, window_bounds = array<i64: 1024, 1024>}, {pipeline_mode = #tpu.pipeline_mode<synchronous>, transform_indices = @transform_4, window_bounds = array<i64: 1, 1024>}, {pipeline_mode = #tpu.pipeline_mode<synchronous>, transform_indices = @transform_5, window_bounds = array<i64: 1024, 128>}, {pipeline_mode = #tpu.pipeline_mode<synchronous>, transform_indices = @transform_6, window_bounds = array<i64: 1, 128>}, {transform_indices = @transform_7, window_bounds = array<i64: 16, 128>}]} {
    %cst = arith.constant 0.000000e+00 : bf16
    %0 = vector.broadcast %cst : bf16 to vector<16x256xbf16>
    %c0 = arith.constant 0 : index
    %c0_0 = arith.constant 0 : index
    %1 = vector.load %arg9[%c0, %c0_0] : memref<16x256xbf16, #tpu.memory_space<vmem>>, vector<16x256xbf16>
    tpu.vector_store %arg9[%c0, %c0_0], %0 {strides = array<i32>} : memref<16x256xbf16, #tpu.memory_space<vmem>>, vector<16x256xbf16>,
    %c0_1 = arith.constant 0 : index
    %c0_2 = arith.constant 0 : index
    %2 = vector.load %arg1[%c0_1, %c0_2] : memref<16x189xf32, #tpu.memory_space<vmem>>, vector<16x189xf32>
    %3 = arith.truncf %2 : vector<16x189xf32> to vector<16x189xbf16>
    %c0_3 = arith.constant 0 : index
    %c0_4 = arith.constant 0 : index
    %4 = vector.load %arg9[%c0_3, %c0_4] : memref<16x256xbf16, #tpu.memory_space<vmem>>, vector<16x189xbf16>
    tpu.vector_store %arg9[%c0_3, %c0_4], %3 {strides = array<i32>} : memref<16x256xbf16, #tpu.memory_space<vmem>>, vector<16x189xbf16>,
    %c0_5 = arith.constant 0 : index
    %c0_6 = arith.constant 0 : index
    %5 = vector.load %arg9[%c0_5, %c0_6] : memref<16x256xbf16, #tpu.memory_space<vmem>>, vector<16x256xbf16>
    %c0_7 = arith.constant 0 : index
    %c0_8 = arith.constant 0 : index
    %6 = vector.load %arg2[%c0_7, %c0_8] : memref<256x1024xbf16, #tpu.memory_space<vmem>>, vector<256x1024xbf16>
    %cst_9 = arith.constant dense<0.000000e+00> : vector<16x1024xf32>
    %7 = tpu.matmul %5, %6, %cst_9 {dimension_numbers = #tpu.dot_dimension_numbers<[1], [0], [0], [1], [0, 0, 1, 1], [], []>} : vector<16x256xbf16>, vector<256x1024xbf16>, vector<16x1024xf32> -> vector<16x1024xf32>
    %c0_10 = arith.constant 0 : index
    %c0_11 = arith.constant 0 : index
    %8 = vector.load %arg3[%c0_10, %c0_11] : memref<1x1024xf32, #tpu.memory_space<vmem>>, vector<1x1024xf32>
    %9 = vector.broadcast %8 : vector<1x1024xf32> to vector<16x1024xf32>
    %10 = arith.addf %7, %9 : vector<16x1024xf32>
    %11 = arith.truncf %10 : vector<16x1024xf32> to vector<16x1024xbf16>
    %cst_12 = arith.constant 1.000980e-02 : bf16
    %12 = vector.broadcast %cst_12 : bf16 to vector<16x1024xbf16>
    %13 = arith.mulf %11, %12 : vector<16x1024xbf16>
    %14 = arith.maximumf %11, %13 : vector<16x1024xbf16>
    %c0_13 = arith.constant 0 : index
    %c0_14 = arith.constant 0 : index
    %15 = vector.load %arg4[%c0_13, %c0_14] : memref<1024x1024xbf16, #tpu.memory_space<vmem>>, vector<1024x1024xbf16>
    %cst_15 = arith.constant dense<0.000000e+00> : vector<16x1024xf32>
    %16 = tpu.matmul %14, %15, %cst_15 {dimension_numbers = #tpu.dot_dimension_numbers<[1], [0], [0], [1], [0, 0, 1, 1], [], []>} : vector<16x1024xbf16>, vector<1024x1024xbf16>, vector<16x1024xf32> -> vector<16x1024xf32>
    %c0_16 = arith.constant 0 : index
    %c0_17 = arith.constant 0 : index
    %17 = vector.load %arg5[%c0_16, %c0_17] : memref<1x1024xf32, #tpu.memory_space<vmem>>, vector<1x1024xf32>
    %18 = vector.broadcast %17 : vector<1x1024xf32> to vector<16x1024xf32>
    %19 = arith.addf %16, %18 : vector<16x1024xf32>
    %20 = arith.truncf %19 : vector<16x1024xf32> to vector<16x1024xbf16>
    %cst_18 = arith.constant 1.000980e-02 : bf16
    %21 = vector.broadcast %cst_18 : bf16 to vector<16x1024xbf16>
    %22 = arith.mulf %20, %21 : vector<16x1024xbf16>
    %23 = arith.maximumf %20, %22 : vector<16x1024xbf16>
    %c0_19 = arith.constant 0 : index
    %c0_20 = arith.constant 0 : index
    %24 = vector.load %arg6[%c0_19, %c0_20] : memref<1024x128xbf16, #tpu.memory_space<vmem>>, vector<1024x128xbf16>
    %cst_21 = arith.constant dense<0.000000e+00> : vector<16x128xf32>
    %25 = tpu.matmul %23, %24, %cst_21 {dimension_numbers = #tpu.dot_dimension_numbers<[1], [0], [0], [1], [0, 0, 1, 1], [], []>} : vector<16x1024xbf16>, vector<1024x128xbf16>, vector<16x128xf32> -> vector<16x128xf32>
    %c0_22 = arith.constant 0 : index
    %c0_23 = arith.constant 0 : index
    %26 = vector.load %arg7[%c0_22, %c0_23] : memref<1x128xf32, #tpu.memory_space<vmem>>, vector<1x128xf32>
    %27 = vector.broadcast %26 : vector<1x128xf32> to vector<16x128xf32>
    %28 = arith.addf %25, %27 : vector<16x128xf32>
    %cst_24 = arith.constant dense<0xFF800000> : vector<16xf32>
    %29 = vector.multi_reduction <maximumf>, %28, %cst_24 [1] : vector<16x128xf32> to vector<16xf32>
    %30 = vector.shape_cast %29 : vector<16xf32> to vector<16x1xf32>
    %31 = vector.broadcast %30 : vector<16x1xf32> to vector<16x128xf32>
    %32 = arith.subf %28, %31 : vector<16x128xf32>
    %33 = math.exp %32 : vector<16x128xf32>
    %cst_25 = arith.constant dense<0.000000e+00> : vector<16xf32>
    %34 = vector.multi_reduction <add>, %33, %cst_25 [1] : vector<16x128xf32> to vector<16xf32>
    %35 = vector.shape_cast %34 : vector<16xf32> to vector<16x1xf32>
    %36 = tpu.reciprocal %35 {approx = true} : vector<16x1xf32> -> vector<16x1xf32>
    %37 = vector.broadcast %36 : vector<16x1xf32> to vector<16x128xf32>
    %38 = arith.mulf %33, %37 : vector<16x128xf32>
    %c0_26 = arith.constant 0 : index
    %c0_27 = arith.constant 0 : index
    %39 = vector.load %arg8[%c0_26, %c0_27] : memref<16x128xf32, #tpu.memory_space<vmem>>, vector<16x128xf32>
    tpu.vector_store %arg8[%c0_26, %c0_27], %38 {strides = array<i32>} : memref<16x128xf32, #tpu.memory_space<vmem>>, vector<16x128xf32>,
    return
  }
  func.func @transform_0(%arg0: i32) -> (i32, i32) {
    %c0_i32 = arith.constant 0 : i32
    %c0_i32_0 = arith.constant 0 : i32
    return %arg0, %c0_i32 : i32, i32
  }
  func.func @transform_1(%arg0: i32) -> (i32, i32) {
    %c0_i32 = arith.constant 0 : i32
    %c0_i32_0 = arith.constant 0 : i32
    %c0_i32_1 = arith.constant 0 : i32
    return %c0_i32, %c0_i32_0 : i32, i32
  }
  func.func @transform_2(%arg0: i32) -> (i32, i32) {
    %c0_i32 = arith.constant 0 : i32
    %c0_i32_0 = arith.constant 0 : i32
    %c0_i32_1 = arith.constant 0 : i32
    return %c0_i32, %c0_i32_0 : i32, i32
  }
  func.func @transform_3(%arg0: i32) -> (i32, i32) {
    %c0_i32 = arith.constant 0 : i32
    %c0_i32_0 = arith.constant 0 : i32
    %c0_i32_1 = arith.constant 0 : i32
    return %c0_i32, %c0_i32_0 : i32, i32
  }
  func.func @transform_4(%arg0: i32) -> (i32, i32) {
    %c0_i32 = arith.constant 0 : i32
    %c0_i32_0 = arith.constant 0 : i32
    %c0_i32_1 = arith.constant 0 : i32
    return %c0_i32, %c0_i32_0 : i32, i32
  }
  func.func @transform_5(%arg0: i32) -> (i32, i32) {
    %c0_i32 = arith.constant 0 : i32
    %c0_i32_0 = arith.constant 0 : i32
    %c0_i32_1 = arith.constant 0 : i32
    return %c0_i32, %c0_i32_0 : i32, i32
  }
  func.func @transform_6(%arg0: i32) -> (i32, i32) {
    %c0_i32 = arith.constant 0 : i32
    %c0_i32_0 = arith.constant 0 : i32
    %c0_i32_1 = arith.constant 0 : i32
    return %c0_i32, %c0_i32_0 : i32, i32
  }
  func.func @transform_7(%arg0: i32) -> (i32, i32) {
    %c0_i32 = arith.constant 0 : i32
    %c0_i32_0 = arith.constant 0 : i32
    return %arg0, %c0_i32 : i32, i32
  }
}

</mosaic_0001>

<bundles_post_ra>
// kernel: tictacmaster_forward.1
= control target key start
LH: loop header
LB: loop body
LE: loop exit
PB: predicated region body
PF: predicated region fallthrough
CT: control target
= control target key end

     0   :  { %12 = vsyncpa [#allocation4], 0  ;;  %s10129_s0 = inlined_call_operand.vmem [shape: f32[16,189], index: 0, kind: input, shape index: {}]   ;;  %s10130_s1 = inlined_call_operand.hbm [shape: bf16[256,1024], index: 1, kind: input, shape index: {}]   ;;  %s10131_s2 = inlined_call_operand.hbm [shape: f32[1,1024], index: 2, kind: input, shape index: {}]   ;;  %s10132_s3 = inlined_call_operand.hbm [shape: bf16[1024,1024], index: 3, kind: input, shape index: {}]   ;;  %s10133_s4 = inlined_call_operand.hbm [shape: f32[1,1024], index: 4, kind: input, shape index: {}]   ;;  %s10134_s5 = inlined_call_operand.hbm [shape: bf16[1024,128], index: 5, kind: input, shape index: {}]   ;;  %s10135_s6 = inlined_call_operand.hbm [shape: f32[1,128], index: 6, kind: input, shape index: {}]   ;;  %s10136_s7 = inlined_call_operand.vmem [shape: f32[16,128], index: 7, kind: output, shape index: {}]  }
   0x1   :  { %13 = vsyncpa [#allocation6], 0 }
   0x2   :  { %14 = vsyncpa [#allocation9], 0  ;;  %s36_s26 = sshll.u32 %s10131_s2, 4  ;;  %s37_s26 = int_to_ptr.hbm [resolvable:$true] %s36_s26 }
   0x3   :  { %15 = vsyncpa [#allocation12], 0  ;;  %s9672_s27 = smov [#allocation5]   ;;  %s60_s8 = sshll.u32 %s10133_s4, 4  ;;  %s61_s8 = int_to_ptr.hbm [resolvable:$true] %s60_s8 }
   0x4   :  { %s38_s28 = sshll.u32 %s9672_s27, 4  ;;  %s9673_s9 = smov [#allocation8]   ;;  %s39_s28 = int_to_ptr.vmem [resolvable:$true] %s38_s28 }
   0x5   :  { %41 = dma.hbm_to_vmem [thread:$0]  %s37_s26, 128, %s39_s28, [#allocation6]  }
   0x6   :  { %s62_s10 = sshll.u32 %s9673_s9, 4  ;;  %s22_s13 = sshll.u32 %s10130_s1, 4  ;;  %s63_s10 = int_to_ptr.vmem [resolvable:$true] %s62_s10  ;;  %s23_s13 = int_to_ptr.hbm [resolvable:$true] %s22_s13 }
   0x7   :  { %65 = dma.hbm_to_vmem [thread:$0]  %s61_s8, 128, %s63_s10, [#allocation9]  }
   0x8   :  { %s9674_s2 = smov [#allocation3]   ;;  %s46_s17 = sshll.u32 %s10132_s3, 4  ;;  %s47_s17 = int_to_ptr.hbm [resolvable:$true] %s46_s17 }
   0x9   :  { %s24_s14 = sshll.u32 %s9674_s2, 4  ;;  %s9675_s18 = smov 512   ;;  %s25_s14 = int_to_ptr.vmem [resolvable:$true] %s24_s14 }
   0xa   :  { %s9676_s4 = smov 32   ;;  %s9677_s19 = smov [#allocation7]  }
   0xb   :  { %30 = dma.hbm_to_vmem [thread:$0]  %s23_s13, 16384, %s25_s14, [#allocation4], %s9675_s18, %s9675_s18, %s9676_s4  }
   0xc   :  { %s48_s20 = sshll.u32 %s9677_s19, 4  ;;  %s70_s1 = sshll.u32 %s10134_s5, 4  ;;  %s49_s20 = int_to_ptr.vmem [resolvable:$true] %s48_s20  ;;  %s71_s1 = int_to_ptr.hbm [resolvable:$true] %s70_s1 }
   0xd   :  { %54 = dma.hbm_to_vmem [thread:$0]  %s47_s17, 65536, %s49_s20, [#allocation6], %s9675_s18, %s9675_s18, %s9676_s4  }
   0xe   :  { %s9678_s23 = smov [#allocation10]   ;;  %s84_s3 = sshll.u32 %s10135_s6, 4  ;;  %s85_s3 = int_to_ptr.hbm [resolvable:$true] %s84_s3 }
   0xf   :  { %s72_s24 = sshll.u32 %s9678_s23, 4  ;;  %s9679_s27 = smov 64   ;;  %s73_s24 = int_to_ptr.vmem [resolvable:$true] %s72_s24 }
  0x10   :  { %s9680_s28 = smov 4   ;;  %s9681_s29 = smov [#allocation11]  }
  0x11   :  { %78 = dma.hbm_to_vmem [thread:$0]  %s71_s1, 8192, %s73_s24, [#allocation9], %s9679_s27, %s9679_s27, %s9680_s28  }
  0x12   :  { %s86_s30 = sshll.u32 %s9681_s29, 4  ;;  %s87_s30 = int_to_ptr.vmem [resolvable:$true] %s86_s30 }
  0x13   :  { %89 = dma.hbm_to_vmem [thread:$0]  %s85_s3, 16, %s87_s30, [#allocation12]  }
  0x14   :  { %9664 = dma.done.wait [#allocation4], 16384  }
  0x15   :  { %9665 = vsyncadd [#allocation4], 4294950912 }
  0x16   :  { %9666 = dma.done.wait [#allocation6], 65664  }
  0x17   :  { %9667 = vsyncadd [#allocation6], 4294901632 }
  0x18   :  { %9668 = dma.done.wait [#allocation9], 8320  }
  0x19   :  { %9669 = vsyncadd [#allocation9], 4294958976 }
  0x1a   :  { %9670 = dma.done.wait [#allocation12], 16  }
  0x1b   :  { %9671 = vsyncadd [#allocation12], 4294967280  ;;  %v6202_v0 = vld [vmem:[#allocation3 + $0x1c0] sm:$0xf]  ;;  %v8850_v5 = vld [vmem:[#allocation3 + $0x1c4] sm:$0xf] }
  0x1c   :  { %v8854_v1 = vld [vmem:[#allocation3 + $0x1dc] sm:$0xf0]  ;;  %v6204_v6 = vld [vmem:[#allocation3 + $0x1e0] sm:$0xf0]  ;;  %vm123_vm0 = vcmask 1043456   ;;  %vm124_vm1 = vcmask 498692  }
  0x1d   :  { %v6458_v2 = vld [vmem:[#allocation3 + $0x3c0] sm:$0xf]  ;;  %v6203_v3 = vor.u32 %v8854_v1, %v6202_v0  ;;  %v6207_v8 = vor.u32 %v8850_v5, %v6204_v6  ;;  %v8914_v9 = vld [vmem:[#allocation3 + $0x3c4] sm:$0xf]  ;;  %vm125_vm2 = vmor %vm124_vm1, %vm123_vm0 }
  0x1e   :  { %v8918_v4 = vld [vmem:[#allocation3 + $0x3dc] sm:$0xf0]  ;;  %v6460_v10 = vld [vmem:[#allocation3 + $0x3e0] sm:$0xf0] }
  0x1f   :  { %v6459_v7 = vor.u32 %v8918_v4, %v6458_v2  ;;  %v6170_v11 = vld [vmem:[#allocation3 + $0x180] sm:$0xf]  ;;  %926 = vmatpush.bf16.msra.mxu0 %v6203_v3  ;;  %v6463_v12 = vor.u32 %v8914_v9, %v6460_v10  ;;  %954 = vmatpush.bf16.msra.mxu2 %v6207_v8  ;;  %v8842_v18 = vld [vmem:[#allocation3 + $0x184] sm:$0xf] }
  0x20   :  { %v8846_v13 = vld [vmem:[#allocation3 + $0x19c] sm:$0xf0]  ;;  %v6172_v19 = vld [vmem:[#allocation3 + $0x1a0] sm:$0xf0] }
  0x21   :  { %v6426_v14 = vld [vmem:[#allocation3 + $0x380] sm:$0xf]  ;;  %940 = vmatpush.bf16.msra.mxu1 %v6459_v7  ;;  %v6171_v16 = vor.u32 %v8846_v13, %v6170_v11  ;;  %v8906_v20 = vld [vmem:[#allocation3 + $0x384] sm:$0xf]  ;;  %968 = vmatpush.bf16.msra.mxu3 %v6463_v12  ;;  %v6175_v21 = vor.u32 %v8842_v18, %v6172_v19 }
  0x22   :  { %v8910_v15 = vld [vmem:[#allocation3 + $0x39c] sm:$0xf0]  ;;  %v6428_v22 = vld [vmem:[#allocation3 + $0x3a0] sm:$0xf0] }
  0x23   :  { %v6427_v17 = vor.u32 %v8910_v15, %v6426_v14  ;;  %v6138_v23 = vld [vmem:[#allocation3 + $0x140] sm:$0xf]  ;;  %v6431_v25 = vor.u32 %v8906_v20, %v6428_v22  ;;  %v8834_v28 = vld [vmem:[#allocation3 + $0x144] sm:$0xf]  ;;  %927 = vmatpush.bf16.msra.mxu0 %v6171_v16  ;;  %955 = vmatpush.bf16.msra.mxu2 %v6175_v21 }
  0x24   :  { %v8838_v24 = vld [vmem:[#allocation3 + $0x15c] sm:$0xf0]  ;;  %v6140_v30 = vld [vmem:[#allocation3 + $0x160] sm:$0xf0] }
  0x25   :  { %v6394_v26 = vld [vmem:[#allocation3 + $0x340] sm:$0xf]  ;;  %v6139_v29 = vor.u32 %v8838_v24, %v6138_v23  ;;  %v8898_v31 = vld [vmem:[#allocation3 + $0x344] sm:$0xf]  ;;  %941 = vmatpush.bf16.msra.mxu1 %v6427_v17  ;;  %v6143_v34 = vor.u32 %v8834_v28, %v6140_v30  ;;  %969 = vmatpush.bf16.msra.mxu3 %v6431_v25  ;;  %v6210_v28 = vld [vmem:[#allocation3 + $0x1c8] sm:$0xf] }
  0x26   :  { %v8902_v27 = vld [vmem:[#allocation3 + $0x35c] sm:$0xf0]  ;;  %v6396_v32 = vld [vmem:[#allocation3 + $0x360] sm:$0xf0]  ;;  %v6466_v30 = vld [vmem:[#allocation3 + $0x3c8] sm:$0xf] }
  0x27   :  { %v6395_v33 = vor.u32 %v8902_v27, %v6394_v26  ;;  %v6106_v35 = vld [vmem:[#allocation3 + $0x100] sm:$0xf]  ;;  %v6399_v38 = vor.u32 %v8898_v31, %v6396_v32  ;;  %v8826_v40 = vld [vmem:[#allocation3 + $0x104] sm:$0xf]  ;;  %928 = vmatpush.bf16.msra.mxu0 %v6139_v29  ;;  %956 = vmatpush.bf16.msra.mxu2 %v6143_v34  ;;  %v8855_v29 = vld [vmem:[#allocation3 + $0x1e4] sm:$0xf0] }
  0x28   :  { %v8830_v36 = vld [vmem:[#allocation3 + $0x11c] sm:$0xf0]  ;;  %v6108_v41 = vld [vmem:[#allocation3 + $0x120] sm:$0xf0]  ;;  %v8919_v31 = vld [vmem:[#allocation3 + $0x3e4] sm:$0xf0] }
  0x29   :  { %v6362_v37 = vld [vmem:[#allocation3 + $0x300] sm:$0xf]  ;;  %v8890_v42 = vld [vmem:[#allocation3 + $0x304] sm:$0xf]  ;;  %v6107_v44 = vor.u32 %v8830_v36, %v6106_v35  ;;  %942 = vmatpush.bf16.msra.mxu1 %v6395_v33  ;;  %v6111_v46 = vor.u32 %v8826_v40, %v6108_v41  ;;  %970 = vmatpush.bf16.msra.mxu3 %v6399_v38  ;;  %v8851_v33 = vld [vmem:[#allocation3 + $0x1cc] sm:$0xf] }
  0x2a   :  { %v8894_v39 = vld [vmem:[#allocation3 + $0x31c] sm:$0xf0]  ;;  %v6364_v43 = vld [vmem:[#allocation3 + $0x320] sm:$0xf0]  ;;  %v6212_v34 = vld [vmem:[#allocation3 + $0x1e8] sm:$0xf0] }
  0x2b   :  { %v6363_v45 = vor.u32 %v8894_v39, %v6362_v37  ;;  %v6074_v47 = vld [vmem:[#allocation3 + $0xc0] sm:$0xf]  ;;  %v6367_v50 = vor.u32 %v8890_v42, %v6364_v43  ;;  %v8818_v52 = vld [vmem:[#allocation3 + $0xc4] sm:$0xf]  ;;  %929 = vmatpush.bf16.msra.mxu0 %v6107_v44  ;;  %957 = vmatpush.bf16.msra.mxu2 %v6111_v46  ;;  %v8915_v35 = vld [vmem:[#allocation3 + $0x3cc] sm:$0xf]  ;;  %v6211_v42 = vor.u32 %v8855_v29, %v6210_v28 }
  0x2c   :  { %v8822_v48 = vld [vmem:[#allocation3 + $0xdc] sm:$0xf0]  ;;  %v6076_v53 = vld [vmem:[#allocation3 + $0xe0] sm:$0xf0]  ;;  %v6468_v38 = vld [vmem:[#allocation3 + $0x3e8] sm:$0xf0]  ;;  %v6467_v46 = vor.u32 %v8919_v31, %v6466_v30 }
  0x2d   :  { %v6330_v49 = vld [vmem:[#allocation3 + $0x2c0] sm:$0xf]  ;;  %v8882_v54 = vld [vmem:[#allocation3 + $0x2c4] sm:$0xf]  ;;  %v6075_v56 = vor.u32 %v8822_v48, %v6074_v47  ;;  %943 = vmatpush.bf16.msra.mxu1 %v6363_v45  ;;  %v6079_v58 = vor.u32 %v8818_v52, %v6076_v53  ;;  %971 = vmatpush.bf16.msra.mxu3 %v6367_v50  ;;  %v6178_v39 = vld [vmem:[#allocation3 + $0x188] sm:$0xf]  ;;  %v6215_v47 = vor.u32 %v8851_v33, %v6212_v34 }
  0x2e   :  { %v8886_v51 = vld [vmem:[#allocation3 + $0x2dc] sm:$0xf0]  ;;  %v6332_v55 = vld [vmem:[#allocation3 + $0x2e0] sm:$0xf0]  ;;  %v8847_v40 = vld [vmem:[#allocation3 + $0x1a4] sm:$0xf0]  ;;  %v6471_v53 = vor.u32 %v8915_v35, %v6468_v38 }
  0x2f   :  { %v6331_v57 = vor.u32 %v8886_v51, %v6330_v49  ;;  %v6042_v59 = vld [vmem:[#allocation3 + $0x80] sm:$0xf]  ;;  %v6335_v62 = vor.u32 %v8882_v54, %v6332_v55  ;;  %v8810_v0 = vld [vmem:[#allocation3 + $0x84] sm:$0xf]  ;;  %930 = vmatpush.bf16.msra.mxu0 %v6075_v56  ;;  %958 = vmatpush.bf16.msra.mxu2 %v6079_v58  ;;  %v6434_v43 = vld [vmem:[#allocation3 + $0x388] sm:$0xf] }
  0x30   :  { %v8814_v60 = vld [vmem:[#allocation3 + $0x9c] sm:$0xf0]  ;;  %v6044_v1 = vld [vmem:[#allocation3 + $0xa0] sm:$0xf0]  ;;  %v117_v44 = vld [vmem:[%s10129_s0] sm:$0xff]  ;;  %v9682_v49 = vmov 0  }
  0x31   :  { %v6298_v61 = vld [vmem:[#allocation3 + $0x280] sm:$0xf]  ;;  %v8874_v2 = vld [vmem:[#allocation3 + $0x284] sm:$0xf]  ;;  %v6043_v4 = vor.u32 %v8814_v60, %v6042_v59  ;;  %944 = vmatpush.bf16.msra.mxu1 %v6331_v57  ;;  %v6047_v6 = vor.u32 %v8810_v0, %v6044_v1  ;;  %972 = vmatpush.bf16.msra.mxu3 %v6335_v62  ;;  %v118_v45 = vld [vmem:[%s10129_s0 + $0x8] sm:$0xff]  ;;  %115 = vst [vmem:[#allocation2] sm:$0xff] %v9682_v49 }
  0x32   :  { %v8878_v63 = vld [vmem:[#allocation3 + $0x29c] sm:$0xf0]  ;;  %v6300_v3 = vld [vmem:[#allocation3 + $0x2a0] sm:$0xf0]  ;;  %v8911_v48 = vld [vmem:[#allocation3 + $0x3a4] sm:$0xf0]  ;;  %v121_v52 = vpack.c.bf16 %v118_v45, %v117_v44  ;;  %v6179_v59 = vor.u32 %v8847_v40, %v6178_v39 }
  0x33   :  { %v6299_v5 = vor.u32 %v8878_v63, %v6298_v61  ;;  %v6010_v7 = vld [vmem:[#allocation3 + $0x40] sm:$0xf]  ;;  %v6303_v10 = vor.u32 %v8874_v2, %v6300_v3  ;;  %v8802_v12 = vld [vmem:[#allocation3 + $0x44] sm:$0xf]  ;;  %931 = vmatpush.bf16.msra.mxu0 %v6043_v4  ;;  %959 = vmatpush.bf16.msra.mxu2 %v6047_v6  ;;  %v120_v51 = vld [vmem:[%s10129_s0 + $0x18] sm:$0xff]  ;;  %116 = vst [vmem:[#allocation2 + $0x8] sm:$0xff] %v9682_v49 }
  0x34   :  { %v8806_v8 = vld [vmem:[#allocation3 + $0x5c] sm:$0xf0]  ;;  %v6012_v13 = vld [vmem:[#allocation3 + $0x60] sm:$0xf0]  ;;  %v8843_v54 = vld [vmem:[#allocation3 + $0x18c] sm:$0xf]  ;;  %v6435_v60 = vor.u32 %v8911_v48, %v6434_v43 }
  0x35   :  { %v6266_v9 = vld [vmem:[#allocation3 + $0x240] sm:$0xf]  ;;  %v8866_v14 = vld [vmem:[#allocation3 + $0x244] sm:$0xf]  ;;  %v6011_v16 = vor.u32 %v8806_v8, %v6010_v7  ;;  %945 = vmatpush.bf16.msra.mxu1 %v6299_v5  ;;  %v6015_v21 = vor.u32 %v8802_v12, %v6012_v13  ;;  %973 = vmatpush.bf16.msra.mxu3 %v6303_v10  ;;  %v6180_v55 = vld [vmem:[#allocation3 + $0x1a8] sm:$0xf0] }
  0x36   :  { %v8870_v11 = vld [vmem:[#allocation3 + $0x25c] sm:$0xf0]  ;;  %v6268_v15 = vld [vmem:[#allocation3 + $0x260] sm:$0xf0]  ;;  %v8907_v57 = vld [vmem:[#allocation3 + $0x38c] sm:$0xf]  ;;  %v6183_v61 = vor.u32 %v8843_v54, %v6180_v55 }
  0x37   :  { %v5978_v17 = vld [vmem:[#allocation3] sm:$0xf]  ;;  %v6267_v20 = vor.u32 %v8870_v11, %v6266_v9  ;;  %v8794_v23 = vld [vmem:[#allocation3 + $0x4] sm:$0xf]  ;;  %v6271_v25 = vor.u32 %v8866_v14, %v6268_v15  ;;  %932 = vmatpush.bf16.msra.mxu0 %v6011_v16  ;;  %960 = vmatpush.bf16.msra.mxu2 %v6015_v21  ;;  %v6436_v58 = vld [vmem:[#allocation3 + $0x3a8] sm:$0xf0] }
  0x38   :  { %v8798_v18 = vld [vmem:[#allocation3 + $0x1c] sm:$0xf0]  ;;  %v5980_v24 = vld [vmem:[#allocation3 + $0x20] sm:$0xf0]  ;;  %126 = vst.msk [vmem:[#allocation2] sm:$0xff] %vm125_vm2, %v121_v52  ;;  %v6439_v1 = vor.u32 %v8907_v57, %v6436_v58 }
  0x39   :  { %v6234_v19 = vld [vmem:[#allocation3 + $0x200] sm:$0xf]  ;;  %v8858_v26 = vld [vmem:[#allocation3 + $0x204] sm:$0xf]  ;;  %v5979_v32 = vor.u32 %v8798_v18, %v5978_v17  ;;  %946 = vmatpush.bf16.msra.mxu1 %v6267_v20  ;;  %v5983_v37 = vor.u32 %v8794_v23, %v5980_v24  ;;  %974 = vmatpush.bf16.msra.mxu3 %v6271_v25  ;;  %v6146_v62 = vld [vmem:[#allocation3 + $0x148] sm:$0xf] }
  0x3a   :  { %v8862_v22 = vld [vmem:[#allocation3 + $0x21c] sm:$0xf0]  ;;  %v6236_v27 = vld [vmem:[#allocation3 + $0x220] sm:$0xf0]  ;;  %v8839_v63 = vld [vmem:[#allocation3 + $0x164] sm:$0xf0] }
  0x3b   :  { %v6235_v36 = vor.u32 %v8862_v22, %v6234_v19  ;;  %v6239_v41 = vor.u32 %v8858_v26, %v6236_v27  ;;  %v119_v50 = vld [vmem:[%s10129_s0 + $0x10] sm:$0xff]  ;;  %933 = vmatpush.bf16.msra.mxu0 %v5979_v32  ;;  %961 = vmatpush.bf16.msra.mxu2 %v5983_v37  ;;  %v6402_v0 = vld [vmem:[#allocation3 + $0x348] sm:$0xf]  ;;  %v8835_v3 = vld [vmem:[#allocation3 + $0x14c] sm:$0xf]  ;;  %v6147_v7 = vor.u32 %v8839_v63, %v6146_v62 }
  0x3c   :  { %v122_v56 = vpack.c.bf16 %v120_v51, %v119_v50  ;;  %v8903_v2 = vld [vmem:[#allocation3 + $0x364] sm:$0xf0]  ;;  %v6148_v4 = vld [vmem:[#allocation3 + $0x168] sm:$0xf0] }
  0x3d   :  { %947 = vmatpush.bf16.msra.mxu1 %v6235_v36  ;;  %975 = vmatpush.bf16.msra.mxu3 %v6239_v41  ;;  %v8899_v5 = vld [vmem:[#allocation3 + $0x34c] sm:$0xf]  ;;  %v6114_v8 = vld [vmem:[#allocation3 + $0x108] sm:$0xf]  ;;  %v6403_v11 = vor.u32 %v8903_v2, %v6402_v0  ;;  %v6151_v12 = vor.u32 %v8835_v3, %v6148_v4 }
  0x3e   :  { %127 = vst.msk [vmem:[#allocation2 + $0x8] sm:$0xff] %vm125_vm2, %v122_v56  ;;  %v6404_v6 = vld [vmem:[#allocation3 + $0x368] sm:$0xf0]  ;;  %v8831_v9 = vld [vmem:[#allocation3 + $0x124] sm:$0xf0] }
  0x3f   :  { %982 = vmatpush.bf16.msrb.mxu0 %v6211_v42  ;;  %1010 = vmatpush.bf16.msrb.mxu2 %v6215_v47  ;;  %v6370_v10 = vld [vmem:[#allocation3 + $0x308] sm:$0xf]  ;;  %v8827_v14 = vld [vmem:[#allocation3 + $0x10c] sm:$0xf]  ;;  %v6407_v16 = vor.u32 %v8899_v5, %v6404_v6  ;;  %v5970_v17 = vld [vmem:[#allocation2] sm:$0xf]  ;;  %v6115_v25 = vor.u32 %v8831_v9, %v6114_v8 }
  0x40   :  { %v8895_v13 = vld [vmem:[#allocation3 + $0x324] sm:$0xf0]  ;;  %v6116_v15 = vld [vmem:[#allocation3 + $0x128] sm:$0xf0]  ;;  %v8792_v18 = vld [vmem:[#allocation2 + $0x4] sm:$0xf] }
  0x41   :  { %996 = vmatpush.bf16.msrb.mxu1 %v6467_v46  ;;  %1024 = vmatpush.bf16.msrb.mxu3 %v6471_v53  ;;  %v8891_v19 = vld [vmem:[#allocation3 + $0x30c] sm:$0xf]  ;;  %v6371_v26 = vor.u32 %v8895_v13, %v6370_v10  ;;  %v6119_v27 = vor.u32 %v8827_v14, %v6116_v15  ;;  %v6082_v28 = vld [vmem:[#allocation3 + $0xc8] sm:$0xf]  ;;  %v6218_v9 = vld [vmem:[#allocation3 + $0x1d0] sm:$0xf] }
  0x42   :  { %v6372_v22 = vld [vmem:[#allocation3 + $0x328] sm:$0xf0]  ;;  %v8823_v29 = vld [vmem:[#allocation3 + $0xe4] sm:$0xf0]  ;;  %v8856_v10 = vld [vmem:[#allocation3 + $0x1ec] sm:$0xf0] }
  0x43   :  { %983 = vmatpush.bf16.msrb.mxu0 %v6179_v59  ;;  %1011 = vmatpush.bf16.msrb.mxu2 %v6183_v61  ;;  %v6338_v30 = vld [vmem:[#allocation3 + $0x2c8] sm:$0xf]  ;;  %v6375_v31 = vor.u32 %v8891_v19, %v6372_v22  ;;  %v8819_v33 = vld [vmem:[#allocation3 + $0xcc] sm:$0xf]  ;;  %v6083_v37 = vor.u32 %v8823_v29, %v6082_v28  ;;  %v8920_v13 = vld [vmem:[#allocation3 + $0x3ec] sm:$0xf0] }
  0x44   :  { %v8887_v32 = vld [vmem:[#allocation3 + $0x2e4] sm:$0xf0]  ;;  %v6084_v34 = vld [vmem:[#allocation3 + $0xe8] sm:$0xf0]  ;;  %v8852_v14 = vld [vmem:[#allocation3 + $0x1d4] sm:$0xf] }
  0x45   :  { %997 = vmatpush.bf16.msrb.mxu1 %v6435_v60  ;;  %1025 = vmatpush.bf16.msrb.mxu3 %v6439_v1  ;;  %v8793_v20 = vld [vmem:[#allocation2 + $0x4] sm:$0xf0]  ;;  %v5972_v21 = vld [vmem:[#allocation2 + $0x8] sm:$0xf0]  ;;  %v8883_v35 = vld [vmem:[#allocation3 + $0x2cc] sm:$0xf]  ;;  %v6339_v38 = vor.u32 %v8887_v32, %v6338_v30  ;;  %v6087_v39 = vor.u32 %v8819_v33, %v6084_v34 }
  0x46   :  { %v9754_v23 = vor.u32 %v8793_v20, %v5970_v17  ;;  %v9756_v24 = vor.u32 %v8792_v18, %v5972_v21  ;;  %v6340_v36 = vld [vmem:[#allocation3 + $0x2e8] sm:$0xf0]  ;;  %v6050_v40 = vld [vmem:[#allocation3 + $0x88] sm:$0xf]  ;;  %v6220_v15 = vld [vmem:[#allocation3 + $0x1f0] sm:$0xf0]  ;;  %v6219_v21 = vor.u32 %v8856_v10, %v6218_v9 }
  0x47   :  { %984 = vmatpush.bf16.msrb.mxu0 %v6147_v7  ;;  %1012 = vmatpush.bf16.msrb.mxu2 %v6151_v12  ;;  %v8815_v41 = vld [vmem:[#allocation3 + $0xa4] sm:$0xf0]  ;;  %v6343_v43 = vor.u32 %v8883_v35, %v6340_v36  ;;  %v8811_v45 = vld [vmem:[#allocation3 + $0x8c] sm:$0xf]  ;;  %v8916_v18 = vld [vmem:[#allocation3 + $0x3d4] sm:$0xf] }
  0x48   :  { %962 = vmatmul.bf16.vlgmr.msra.gmra.mxu2 %v9754_v23  ;;  %976 = vmatmul.bf16.vlgmr.msra.gmra.mxu3 %v9756_v24  ;;  %v6306_v42 = vld [vmem:[#allocation3 + $0x288] sm:$0xf]  ;;  %v6052_v46 = vld [vmem:[#allocation3 + $0xa8] sm:$0xf0]  ;;  %v6051_v49 = vor.u32 %v8815_v41, %v6050_v40  ;;  %v6476_v19 = vld [vmem:[#allocation3 + $0x3f0] sm:$0xf0] }
  0x49   :  { %998 = vmatpush.bf16.msrb.mxu1 %v6403_v11  ;;  %1026 = vmatpush.bf16.msrb.mxu3 %v6407_v16  ;;  %v8879_v44 = vld [vmem:[#allocation3 + $0x2a4] sm:$0xf0]  ;;  %v8875_v47 = vld [vmem:[#allocation3 + $0x28c] sm:$0xf]  ;;  %v6055_v51 = vor.u32 %v8811_v45, %v6052_v46  ;;  %v6474_v11 = vld [vmem:[#allocation3 + $0x3d0] sm:$0xf]  ;;  %v6479_v29 = vor.u32 %v8916_v18, %v6476_v19 }
  0x4a   :  { %934 = vmatmul.bf16.vlgmr.msra.gmra.mxu0 %v9754_v23  ;;  %948 = vmatmul.bf16.vlgmr.msra.gmra.mxu1 %v9756_v24  ;;  %v6308_v48 = vld [vmem:[#allocation3 + $0x2a8] sm:$0xf0]  ;;  %v6307_v50 = vor.u32 %v8879_v44, %v6306_v42  ;;  %v6018_v52 = vld [vmem:[#allocation3 + $0x48] sm:$0xf]  ;;  %v6475_v22 = vor.u32 %v8920_v13, %v6474_v11  ;;  %v6442_v28 = vld [vmem:[#allocation3 + $0x390] sm:$0xf] }
  0x4b   :  { %985 = vmatpush.bf16.msrb.mxu0 %v6115_v25  ;;  %1013 = vmatpush.bf16.msrb.mxu2 %v6119_v27  ;;  %v8807_v53 = vld [vmem:[#allocation3 + $0x64] sm:$0xf0]  ;;  %v6311_v55 = vor.u32 %v8875_v47, %v6308_v48  ;;  %v8803_v57 = vld [vmem:[#allocation3 + $0x4c] sm:$0xf]  ;;  %v6223_v25 = vor.u32 %v8852_v14, %v6220_v15  ;;  %v8848_v27 = vld [vmem:[#allocation3 + $0x1ac] sm:$0xf0] }
  0x4c   :  { %v6274_v54 = vld [vmem:[#allocation3 + $0x248] sm:$0xf]  ;;  %v6020_v58 = vld [vmem:[#allocation3 + $0x68] sm:$0xf0]  ;;  %v6019_v61 = vor.u32 %v8807_v53, %v6018_v52  ;;  %v8912_v30 = vld [vmem:[#allocation3 + $0x3ac] sm:$0xf0] }
  0x4d   :  { %999 = vmatpush.bf16.msrb.mxu1 %v6371_v26  ;;  %1027 = vmatpush.bf16.msrb.mxu3 %v6375_v31  ;;  %v8871_v56 = vld [vmem:[#allocation3 + $0x264] sm:$0xf0]  ;;  %v8867_v59 = vld [vmem:[#allocation3 + $0x24c] sm:$0xf]  ;;  %v6023_v1 = vor.u32 %v8803_v57, %v6020_v58  ;;  %v6186_v26 = vld [vmem:[#allocation3 + $0x190] sm:$0xf]  ;;  %v6443_v36 = vor.u32 %v8912_v30, %v6442_v28 }
  0x4e   :  { %v6276_v60 = vld [vmem:[#allocation3 + $0x268] sm:$0xf0]  ;;  %v5986_v62 = vld [vmem:[#allocation3 + $0x8] sm:$0xf]  ;;  %v6275_v0 = vor.u32 %v8871_v56, %v6274_v54  ;;  %v8844_v31 = vld [vmem:[#allocation3 + $0x194] sm:$0xf]  ;;  %v6187_v35 = vor.u32 %v8848_v27, %v6186_v26 }
  0x4f   :  { %986 = vmatpush.bf16.msrb.mxu0 %v6083_v37  ;;  %1014 = vmatpush.bf16.msrb.mxu2 %v6087_v39  ;;  %v8799_v63 = vld [vmem:[#allocation3 + $0x24] sm:$0xf0]  ;;  %v8795_v4 = vld [vmem:[#allocation3 + $0xc] sm:$0xf]  ;;  %v6279_v5 = vor.u32 %v8867_v59, %v6276_v60  ;;  %v6188_v32 = vld [vmem:[#allocation3 + $0x1b0] sm:$0xf0] }
  0x50   :  { %v6242_v2 = vld [vmem:[#allocation3 + $0x208] sm:$0xf]  ;;  %v5988_v6 = vld [vmem:[#allocation3 + $0x28] sm:$0xf0]  ;;  %v5987_v12 = vor.u32 %v8799_v63, %v5986_v62  ;;  %v8908_v33 = vld [vmem:[#allocation3 + $0x394] sm:$0xf]  ;;  %v6191_v37 = vor.u32 %v8844_v31, %v6188_v32 }
  0x51   :  { %1000 = vmatpush.bf16.msrb.mxu1 %v6339_v38  ;;  %1028 = vmatpush.bf16.msrb.mxu3 %v6343_v43  ;;  %v8863_v3 = vld [vmem:[#allocation3 + $0x224] sm:$0xf0]  ;;  %v8859_v7 = vld [vmem:[#allocation3 + $0x20c] sm:$0xf]  ;;  %v5991_v17 = vor.u32 %v8795_v4, %v5988_v6  ;;  %v6444_v34 = vld [vmem:[#allocation3 + $0x3b0] sm:$0xf0] }
  0x52   :  { %v6244_v8 = vld [vmem:[#allocation3 + $0x228] sm:$0xf0]  ;;  %v6243_v16 = vor.u32 %v8863_v3, %v6242_v2  ;;  %v6154_v38 = vld [vmem:[#allocation3 + $0x150] sm:$0xf]  ;;  %v6447_v41 = vor.u32 %v8908_v33, %v6444_v34  ;;  %v8836_v43 = vld [vmem:[#allocation3 + $0x154] sm:$0xf] }
  0x53   :  { %987 = vmatpush.bf16.msrb.mxu0 %v6051_v49  ;;  %1015 = vmatpush.bf16.msrb.mxu2 %v6055_v51  ;;  %v6247_v20 = vor.u32 %v8859_v7, %v6244_v8  ;;  %v8840_v39 = vld [vmem:[#allocation3 + $0x16c] sm:$0xf0]  ;;  %v6156_v44 = vld [vmem:[#allocation3 + $0x170] sm:$0xf0] }
  0x54   :  { %v6410_v40 = vld [vmem:[#allocation3 + $0x350] sm:$0xf]  ;;  %v8900_v45 = vld [vmem:[#allocation3 + $0x354] sm:$0xf]  ;;  %v6155_v47 = vor.u32 %v8840_v39, %v6154_v38  ;;  %v6159_v49 = vor.u32 %v8836_v43, %v6156_v44 }
  0x55   :  { %1001 = vmatpush.bf16.msrb.mxu1 %v6307_v50  ;;  %1029 = vmatpush.bf16.msrb.mxu3 %v6311_v55  ;;  %v8904_v42 = vld [vmem:[#allocation3 + $0x36c] sm:$0xf0]  ;;  %v6412_v46 = vld [vmem:[#allocation3 + $0x370] sm:$0xf0] }
  0x56   :  { %v6411_v48 = vor.u32 %v8904_v42, %v6410_v40  ;;  %v6122_v50 = vld [vmem:[#allocation3 + $0x110] sm:$0xf]  ;;  %v6415_v53 = vor.u32 %v8900_v45, %v6412_v46  ;;  %v8828_v55 = vld [vmem:[#allocation3 + $0x114] sm:$0xf]  ;;  %v6226_v45 = vld [vmem:[#allocation3 + $0x1d8] sm:$0xf] }
  0x57   :  { %988 = vmatpush.bf16.msrb.mxu0 %v6019_v61  ;;  %1016 = vmatpush.bf16.msrb.mxu2 %v6023_v1  ;;  %v8832_v51 = vld [vmem:[#allocation3 + $0x12c] sm:$0xf0]  ;;  %v6124_v56 = vld [vmem:[#allocation3 + $0x130] sm:$0xf0]  ;;  %v8857_v46 = vld [vmem:[#allocation3 + $0x1f4] sm:$0xf0] }
  0x58   :  { %v6378_v52 = vld [vmem:[#allocation3 + $0x310] sm:$0xf]  ;;  %v8892_v57 = vld [vmem:[#allocation3 + $0x314] sm:$0xf]  ;;  %v6123_v59 = vor.u32 %v8832_v51, %v6122_v50  ;;  %v6127_v61 = vor.u32 %v8828_v55, %v6124_v56  ;;  %v8853_v50 = vld [vmem:[#allocation3 + $0x1dc] sm:$0xf] }
  0x59   :  { %1002 = vmatpush.bf16.msrb.mxu1 %v6275_v0  ;;  %1030 = vmatpush.bf16.msrb.mxu3 %v6279_v5  ;;  %v8896_v54 = vld [vmem:[#allocation3 + $0x32c] sm:$0xf0]  ;;  %v6380_v58 = vld [vmem:[#allocation3 + $0x330] sm:$0xf0]  ;;  %v6228_v51 = vld [vmem:[#allocation3 + $0x1f8] sm:$0xf0] }
  0x5a   :  { %v6379_v60 = vor.u32 %v8896_v54, %v6378_v52  ;;  %v6090_v62 = vld [vmem:[#allocation3 + $0xd0] sm:$0xf]  ;;  %v6383_v1 = vor.u32 %v8892_v57, %v6380_v58  ;;  %v8820_v3 = vld [vmem:[#allocation3 + $0xd4] sm:$0xf]  ;;  %v8917_v54 = vld [vmem:[#allocation3 + $0x3dc] sm:$0xf]  ;;  %v6227_v57 = vor.u32 %v8857_v46, %v6226_v45 }
  0x5b   :  { %989 = vmatpush.bf16.msrb.mxu0 %v5987_v12  ;;  %1017 = vmatpush.bf16.msrb.mxu2 %v5991_v17  ;;  %v8824_v63 = vld [vmem:[#allocation3 + $0xec] sm:$0xf0]  ;;  %v6092_v4 = vld [vmem:[#allocation3 + $0xf0] sm:$0xf0]  ;;  %v6484_v55 = vld [vmem:[#allocation3 + $0x3f8] sm:$0xf0] }
  0x5c   :  { %v6346_v0 = vld [vmem:[#allocation3 + $0x2d0] sm:$0xf]  ;;  %v8884_v5 = vld [vmem:[#allocation3 + $0x2d4] sm:$0xf]  ;;  %v6091_v7 = vor.u32 %v8824_v63, %v6090_v62  ;;  %v6095_v9 = vor.u32 %v8820_v3, %v6092_v4  ;;  %v6450_v62 = vld [vmem:[#allocation3 + $0x398] sm:$0xf]  ;;  %v6487_v63 = vor.u32 %v8917_v54, %v6484_v55 }
  0x5d   :  { %1003 = vmatpush.bf16.msrb.mxu1 %v6243_v16  ;;  %1031 = vmatpush.bf16.msrb.mxu3 %v6247_v20  ;;  %v8888_v2 = vld [vmem:[#allocation3 + $0x2ec] sm:$0xf0]  ;;  %v6348_v6 = vld [vmem:[#allocation3 + $0x2f0] sm:$0xf0]  ;;  %v8909_v3 = vld [vmem:[#allocation3 + $0x39c] sm:$0xf] }
  0x5e   :  { %1018 = vmatmul.bf16.vlgmr.msrb.gmra.mxu2 %v9754_v23  ;;  %990 = vmatmul.bf16.vlgmr.msrb.gmra.mxu0 %v9754_v23  ;;  %v6347_v8 = vor.u32 %v8888_v2, %v6346_v0  ;;  %v6058_v10 = vld [vmem:[#allocation3 + $0x90] sm:$0xf]  ;;  %v6351_v13 = vor.u32 %v8884_v5, %v6348_v6  ;;  %v8812_v15 = vld [vmem:[#allocation3 + $0x94] sm:$0xf]  ;;  %v8913_v0 = vld [vmem:[#allocation3 + $0x3b4] sm:$0xf0] }
  0x5f   :  { %1038 = vmatpush.bf16.msra.mxu0 %v6219_v21  ;;  %1066 = vmatpush.bf16.msra.mxu2 %v6223_v25  ;;  %v8816_v11 = vld [vmem:[#allocation3 + $0xac] sm:$0xf0]  ;;  %v6060_v16 = vld [vmem:[#allocation3 + $0xb0] sm:$0xf0]  ;;  %v6196_v2 = vld [vmem:[#allocation3 + $0x1b8] sm:$0xf0]  ;;  %v6451_v6 = vor.u32 %v8913_v0, %v6450_v62 }
  0x60   :  { %1032 = vmatmul.bf16.vlgmr.msrb.gmra.mxu3 %v9756_v24  ;;  %1004 = vmatmul.bf16.vlgmr.msrb.gmra.mxu1 %v9756_v24  ;;  %v6314_v12 = vld [vmem:[#allocation3 + $0x290] sm:$0xf]  ;;  %v8876_v17 = vld [vmem:[#allocation3 + $0x294] sm:$0xf]  ;;  %v6059_v19 = vor.u32 %v8816_v11, %v6058_v10  ;;  %v6063_v21 = vor.u32 %v8812_v15, %v6060_v16  ;;  %v6452_v4 = vld [vmem:[#allocation3 + $0x3b8] sm:$0xf0] }
  0x61   :  { %1052 = vmatpush.bf16.msra.mxu1 %v6475_v22  ;;  %1080 = vmatpush.bf16.msra.mxu3 %v6479_v29  ;;  %v8880_v14 = vld [vmem:[#allocation3 + $0x2ac] sm:$0xf0]  ;;  %v6316_v18 = vld [vmem:[#allocation3 + $0x2b0] sm:$0xf0]  ;;  %v6418_v10 = vld [vmem:[#allocation3 + $0x358] sm:$0xf]  ;;  %v6455_v11 = vor.u32 %v8909_v3, %v6452_v4 }
  0x62   :  { %v6315_v20 = vor.u32 %v8880_v14, %v6314_v12  ;;  %v6026_v22 = vld [vmem:[#allocation3 + $0x50] sm:$0xf]  ;;  %v6319_v27 = vor.u32 %v8876_v17, %v6316_v18  ;;  %v8804_v29 = vld [vmem:[#allocation3 + $0x54] sm:$0xf]  ;;  %v8905_v12 = vld [vmem:[#allocation3 + $0x374] sm:$0xf0] }
  0x63   :  { %1039 = vmatpush.bf16.msra.mxu0 %v6187_v35  ;;  %1067 = vmatpush.bf16.msra.mxu2 %v6191_v37  ;;  %v8808_v25 = vld [vmem:[#allocation3 + $0x6c] sm:$0xf0]  ;;  %v6028_v30 = vld [vmem:[#allocation3 + $0x70] sm:$0xf0]  ;;  %v6164_v14 = vld [vmem:[#allocation3 + $0x178] sm:$0xf0]  ;;  %v6419_v18 = vor.u32 %v8905_v12, %v6418_v10 }
  0x64   :  { %v6282_v26 = vld [vmem:[#allocation3 + $0x250] sm:$0xf]  ;;  %v8868_v31 = vld [vmem:[#allocation3 + $0x254] sm:$0xf]  ;;  %v6027_v33 = vor.u32 %v8808_v25, %v6026_v22  ;;  %v6031_v38 = vor.u32 %v8804_v29, %v6028_v30  ;;  %v8901_v15 = vld [vmem:[#allocation3 + $0x35c] sm:$0xf] }
  0x65   :  { %1053 = vmatpush.bf16.msra.mxu1 %v6443_v36  ;;  %1081 = vmatpush.bf16.msra.mxu3 %v6447_v41  ;;  %v8872_v28 = vld [vmem:[#allocation3 + $0x26c] sm:$0xf0]  ;;  %v6284_v32 = vld [vmem:[#allocation3 + $0x270] sm:$0xf0]  ;;  %v6420_v16 = vld [vmem:[#allocation3 + $0x378] sm:$0xf0] }
  0x66   :  { %v5994_v34 = vld [vmem:[#allocation3 + $0x10] sm:$0xf]  ;;  %v6283_v37 = vor.u32 %v8872_v28, %v6282_v26  ;;  %v8796_v40 = vld [vmem:[#allocation3 + $0x14] sm:$0xf]  ;;  %v6287_v42 = vor.u32 %v8868_v31, %v6284_v32  ;;  %v6386_v22 = vld [vmem:[#allocation3 + $0x318] sm:$0xf]  ;;  %v6423_v25 = vor.u32 %v8901_v15, %v6420_v16 }
  0x67   :  { %1040 = vmatpush.bf16.msra.mxu0 %v6155_v47  ;;  %1068 = vmatpush.bf16.msra.mxu2 %v6159_v49  ;;  %v8800_v35 = vld [vmem:[#allocation3 + $0x2c] sm:$0xf0]  ;;  %v5996_v41 = vld [vmem:[#allocation3 + $0x30] sm:$0xf0]  ;;  %v6482_v47 = vld [vmem:[#allocation3 + $0x3d8] sm:$0xf] }
  0x68   :  { %v6250_v36 = vld [vmem:[#allocation3 + $0x210] sm:$0xf]  ;;  %v8860_v43 = vld [vmem:[#allocation3 + $0x214] sm:$0xf]  ;;  %v8921_v49 = vld [vmem:[#allocation3 + $0x3f4] sm:$0xf0] }
  0x69   :  { %1054 = vmatpush.bf16.msra.mxu1 %v6411_v48  ;;  %1082 = vmatpush.bf16.msra.mxu3 %v6415_v53  ;;  %v8864_v39 = vld [vmem:[#allocation3 + $0x22c] sm:$0xf0]  ;;  %v6252_v44 = vld [vmem:[#allocation3 + $0x230] sm:$0xf0]  ;;  %v5995_v48 = vor.u32 %v8800_v35, %v5994_v34  ;;  %v5999_v53 = vor.u32 %v8796_v40, %v5996_v41  ;;  %v6483_v58 = vor.u32 %v8921_v49, %v6482_v47  ;;  %v8897_v26 = vld [vmem:[#allocation3 + $0x334] sm:$0xf0] }
  0x6a   :  { %v6251_v52 = vor.u32 %v8864_v39, %v6250_v36  ;;  %v6255_v56 = vor.u32 %v8860_v43, %v6252_v44  ;;  %v6132_v28 = vld [vmem:[#allocation3 + $0x138] sm:$0xf0]  ;;  %v6387_v32 = vor.u32 %v8897_v26, %v6386_v22  ;;  %v6098_v34 = vld [vmem:[#allocation3 + $0xd8] sm:$0xf]  ;;  %v6714_v15 = vld [vmem:[#allocation7 + $0x1c0] sm:$0xf] }
  0x6b   :  { %1041 = vmatpush.bf16.msra.mxu0 %v6123_v59  ;;  %1069 = vmatpush.bf16.msra.mxu2 %v6127_v61  ;;  %v6231_v59 = vor.u32 %v8853_v50, %v6228_v51  ;;  %v8849_v61 = vld [vmem:[#allocation3 + $0x1b4] sm:$0xf0]  ;;  %v8893_v29 = vld [vmem:[#allocation3 + $0x31c] sm:$0xf]  ;;  %v8982_v16 = vld [vmem:[#allocation7 + $0x1dc] sm:$0xf0] }
  0x6c   :  { %v6388_v30 = vld [vmem:[#allocation3 + $0x338] sm:$0xf0]  ;;  %v8825_v35 = vld [vmem:[#allocation3 + $0xf4] sm:$0xf0] }
  0x6d   :  { %1055 = vmatpush.bf16.msra.mxu1 %v6379_v60  ;;  %1083 = vmatpush.bf16.msra.mxu3 %v6383_v1  ;;  %v6194_v60 = vld [vmem:[#allocation3 + $0x198] sm:$0xf]  ;;  %v8845_v1 = vld [vmem:[#allocation3 + $0x19c] sm:$0xf]  ;;  %v6099_v43 = vor.u32 %v8825_v35, %v6098_v34  ;;  %v8966_v34 = vld [vmem:[#allocation7 + $0x15c] sm:$0xf0] }
  0x6e   :  { %v6195_v5 = vor.u32 %v8849_v61, %v6194_v60  ;;  %v6354_v36 = vld [vmem:[#allocation3 + $0x2d8] sm:$0xf]  ;;  %v8821_v39 = vld [vmem:[#allocation3 + $0xdc] sm:$0xf]  ;;  %v6906_v35 = vld [vmem:[#allocation7 + $0x340] sm:$0xf] }
  0x6f   :  { %1042 = vmatpush.bf16.msra.mxu0 %v6091_v7  ;;  %1070 = vmatpush.bf16.msra.mxu2 %v6095_v9  ;;  %v6199_v7 = vor.u32 %v8845_v1, %v6196_v2  ;;  %v8841_v9 = vld [vmem:[#allocation3 + $0x174] sm:$0xf0]  ;;  %v6100_v40 = vld [vmem:[#allocation3 + $0xf8] sm:$0xf0] }
  0x70   :  { %v8885_v41 = vld [vmem:[#allocation3 + $0x2dc] sm:$0xf]  ;;  %v6103_v45 = vor.u32 %v8821_v39, %v6100_v40  ;;  %v6066_v46 = vld [vmem:[#allocation3 + $0x98] sm:$0xf]  ;;  %v6618_v39 = vld [vmem:[#allocation7 + $0x100] sm:$0xf] }
  0x71   :  { %1056 = vmatpush.bf16.msra.mxu1 %v6347_v8  ;;  %1084 = vmatpush.bf16.msra.mxu3 %v6351_v13  ;;  %v6162_v8 = vld [vmem:[#allocation3 + $0x158] sm:$0xf]  ;;  %v8837_v13 = vld [vmem:[#allocation3 + $0x15c] sm:$0xf]  ;;  %v8958_v40 = vld [vmem:[#allocation7 + $0x11c] sm:$0xf0] }
  0x72   :  { %v6163_v17 = vor.u32 %v8841_v9, %v6162_v8  ;;  %v8817_v47 = vld [vmem:[#allocation3 + $0xb4] sm:$0xf0]  ;;  %v8813_v51 = vld [vmem:[#allocation3 + $0x9c] sm:$0xf] }
  0x73   :  { %1043 = vmatpush.bf16.msra.mxu0 %v6059_v19  ;;  %1071 = vmatpush.bf16.msra.mxu2 %v6063_v21  ;;  %v6167_v19 = vor.u32 %v8837_v13, %v6164_v14  ;;  %v8833_v21 = vld [vmem:[#allocation3 + $0x134] sm:$0xf0]  ;;  %v6324_v54 = vld [vmem:[#allocation3 + $0x2b8] sm:$0xf0]  ;;  %v6067_v55 = vor.u32 %v8817_v47, %v6066_v46  ;;  %v6842_v46 = vld [vmem:[#allocation7 + $0x2c0] sm:$0xf] }
  0x74   :  { %v8881_v50 = vld [vmem:[#allocation3 + $0x2b4] sm:$0xf0]  ;;  %v6036_v0 = vld [vmem:[#allocation3 + $0x78] sm:$0xf0] }
  0x75   :  { %1057 = vmatpush.bf16.msra.mxu1 %v6315_v20  ;;  %1085 = vmatpush.bf16.msra.mxu3 %v6319_v27  ;;  %v6130_v20 = vld [vmem:[#allocation3 + $0x118] sm:$0xf]  ;;  %v8829_v27 = vld [vmem:[#allocation3 + $0x11c] sm:$0xf] }
  0x76   :  { %v6131_v31 = vor.u32 %v8833_v21, %v6130_v20  ;;  %v6290_v60 = vld [vmem:[#allocation3 + $0x258] sm:$0xf]  ;;  %v8869_v1 = vld [vmem:[#allocation3 + $0x25c] sm:$0xf] }
  0x77   :  { %1044 = vmatpush.bf16.msra.mxu0 %v6027_v33  ;;  %1072 = vmatpush.bf16.msra.mxu2 %v6031_v38  ;;  %v6135_v33 = vor.u32 %v8829_v27, %v6132_v28  ;;  %v8889_v38 = vld [vmem:[#allocation3 + $0x2f4] sm:$0xf0]  ;;  %v6292_v2 = vld [vmem:[#allocation3 + $0x278] sm:$0xf0]  ;;  %v6682_v27 = vld [vmem:[#allocation7 + $0x180] sm:$0xf] }
  0x78   :  { %v6355_v44 = vor.u32 %v8889_v38, %v6354_v36  ;;  %v8873_v62 = vld [vmem:[#allocation3 + $0x274] sm:$0xf0]  ;;  %v6295_v10 = vor.u32 %v8869_v1, %v6292_v2  ;;  %v6004_v12 = vld [vmem:[#allocation3 + $0x38] sm:$0xf0]  ;;  %v8974_v28 = vld [vmem:[#allocation7 + $0x19c] sm:$0xf0] }
  0x79   :  { %1058 = vmatpush.bf16.msra.mxu1 %v6283_v37  ;;  %1086 = vmatpush.bf16.msra.mxu3 %v6287_v42  ;;  %v6391_v37 = vor.u32 %v8893_v29, %v6388_v30  ;;  %v6356_v42 = vld [vmem:[#allocation3 + $0x2f8] sm:$0xf0]  ;;  %v6002_v4 = vld [vmem:[#allocation3 + $0x18] sm:$0xf]  ;;  %v6938_v29 = vld [vmem:[#allocation7 + $0x380] sm:$0xf] }
  0x7a   :  { %v6359_v49 = vor.u32 %v8885_v41, %v6356_v42  ;;  %v6258_v8 = vld [vmem:[#allocation3 + $0x218] sm:$0xf]  ;;  %v8861_v13 = vld [vmem:[#allocation3 + $0x21c] sm:$0xf]  ;;  %v9038_v30 = vld [vmem:[#allocation7 + $0x39c] sm:$0xf0] }
  0x7b   :  { %1045 = vmatpush.bf16.msra.mxu0 %v5995_v48  ;;  %1073 = vmatpush.bf16.msra.mxu2 %v5999_v53  ;;  %v6322_v48 = vld [vmem:[#allocation3 + $0x298] sm:$0xf]  ;;  %v8877_v53 = vld [vmem:[#allocation3 + $0x29c] sm:$0xf]  ;;  %v9030_v36 = vld [vmem:[#allocation7 + $0x35c] sm:$0xf0] }
  0x7c   :  { %v6327_v61 = vor.u32 %v8877_v53, %v6324_v54  ;;  %v8865_v9 = vld [vmem:[#allocation3 + $0x234] sm:$0xf0]  ;;  %v6260_v14 = vld [vmem:[#allocation3 + $0x238] sm:$0xf0]  ;;  %v6907_v38 = vor.u32 %v9030_v36, %v6906_v35  ;;  %v6874_v41 = vld [vmem:[#allocation7 + $0x300] sm:$0xf] }
  0x7d   :  { %1059 = vmatpush.bf16.msra.mxu1 %v6251_v52  ;;  %1087 = vmatpush.bf16.msra.mxu3 %v6255_v56  ;;  %v6068_v52 = vld [vmem:[#allocation3 + $0xb8] sm:$0xf0]  ;;  %v6323_v56 = vor.u32 %v8881_v50, %v6322_v48  ;;  %v6259_v20 = vor.u32 %v8865_v9, %v6258_v8  ;;  %v6263_v22 = vor.u32 %v8861_v13, %v6260_v14  ;;  %v9022_v42 = vld [vmem:[#allocation7 + $0x31c] sm:$0xf0] }
  0x7e   :  { %1074 = vmatmul.bf16.vlgmr.msra.gmra.mxu2 %v9754_v23  ;;  %1046 = vmatmul.bf16.vlgmr.msra.gmra.mxu0 %v9754_v23  ;;  %v9014_v48 = vld [vmem:[#allocation7 + $0x2dc] sm:$0xf0] }
  0x7f   :  { %1094 = vmatpush.bf16.msrb.mxu0 %v6227_v57  ;;  %1122 = vmatpush.bf16.msrb.mxu2 %v6231_v59  ;;  %v6071_v57 = vor.u32 %v8813_v51, %v6068_v52  ;;  %v8809_v59 = vld [vmem:[#allocation3 + $0x74] sm:$0xf0]  ;;  %v8942_v50 = vld [vmem:[#allocation7 + $0x9c] sm:$0xf0] }
  0x80   :  { %1088 = vmatmul.bf16.vlgmr.msra.gmra.mxu3 %v9756_v24  ;;  %1060 = vmatmul.bf16.vlgmr.msra.gmra.mxu1 %v9756_v24  ;;  %v6810_v51 = vld [vmem:[#allocation7 + $0x280] sm:$0xf] }
  0x81   :  { %1108 = vmatpush.bf16.msrb.mxu1 %v6483_v58  ;;  %1136 = vmatpush.bf16.msrb.mxu3 %v6487_v63  ;;  %v6034_v58 = vld [vmem:[#allocation3 + $0x58] sm:$0xf]  ;;  %v8805_v63 = vld [vmem:[#allocation3 + $0x5c] sm:$0xf]  ;;  %v9006_v53 = vld [vmem:[#allocation7 + $0x29c] sm:$0xf0] }
  0x82   :  { %v6035_v3 = vor.u32 %v8809_v59, %v6034_v58  ;;  %v6811_v54 = vor.u32 %v9006_v53, %v6810_v51  ;;  %v8998_v59 = vld [vmem:[#allocation7 + $0x25c] sm:$0xf0] }
  0x83   :  { %1095 = vmatpush.bf16.msrb.mxu0 %v6195_v5  ;;  %1123 = vmatpush.bf16.msrb.mxu2 %v6199_v7  ;;  %v6291_v5 = vor.u32 %v8873_v62, %v6290_v60  ;;  %v8801_v7 = vld [vmem:[#allocation3 + $0x34] sm:$0xf0]  ;;  %v9110_v62 = vld [vmem:[#allocation7 + $0x5dc] sm:$0xf0] }
  0x84   :  { %v8926_v1 = vld [vmem:[#allocation7 + $0x1c] sm:$0xf0] }
  0x85   :  { %1109 = vmatpush.bf16.msrb.mxu1 %v6451_v6  ;;  %1137 = vmatpush.bf16.msrb.mxu3 %v6455_v11  ;;  %v6039_v6 = vor.u32 %v8805_v63, %v6036_v0  ;;  %v8797_v11 = vld [vmem:[#allocation3 + $0x1c] sm:$0xf]  ;;  %v6490_v0 = vld [vmem:[#allocation7] sm:$0xf] }
  0x86   :  { %v6007_v21 = vor.u32 %v8797_v11, %v6004_v12  ;;  %v6746_v2 = vld [vmem:[#allocation7 + $0x200] sm:$0xf] }
  0x87   :  { %1096 = vmatpush.bf16.msrb.mxu0 %v6163_v17  ;;  %1124 = vmatpush.bf16.msrb.mxu2 %v6167_v19  ;;  %v6003_v17 = vor.u32 %v8801_v7, %v6002_v4  ;;  %v9046_v19 = vld [vmem:[#allocation7 + $0x3dc] sm:$0xf0] }
  0x88   :  { %v8990_v4 = vld [vmem:[#allocation7 + $0x21c] sm:$0xf0] }
  0x89   :  { %1110 = vmatpush.bf16.msrb.mxu1 %v6419_v18  ;;  %1138 = vmatpush.bf16.msrb.mxu3 %v6423_v25  ;;  %v6970_v18 = vld [vmem:[#allocation7 + $0x3c0] sm:$0xf]  ;;  %v6715_v25 = vor.u32 %v8982_v16, %v6714_v15  ;;  %v6747_v7 = vor.u32 %v8990_v4, %v6746_v2  ;;  %v9774_v16 = vld [vmem:[#allocation5] sm:$0xff] }
  0x8a   :  { %v6971_v26 = vor.u32 %v9046_v19, %v6970_v18  ;;  %v7738_v9 = vld [vmem:[#allocation7 + $0x9c0] sm:$0xf] }
  0x8b   :  { %1097 = vmatpush.bf16.msrb.mxu0 %v6131_v31  ;;  %1125 = vmatpush.bf16.msrb.mxu2 %v6135_v33  ;;  %v6683_v31 = vor.u32 %v8974_v28, %v6682_v27  ;;  %v6650_v33 = vld [vmem:[#allocation7 + $0x140] sm:$0xf] }
  0x8c   :  { %v7994_v11 = vld [vmem:[#allocation7 + $0xbc0] sm:$0xf] }
  0x8d   :  { %1111 = vmatpush.bf16.msrb.mxu1 %v6387_v32  ;;  %1139 = vmatpush.bf16.msrb.mxu3 %v6391_v37  ;;  %v6939_v32 = vor.u32 %v9038_v30, %v6938_v29  ;;  %v6651_v37 = vor.u32 %v8966_v34, %v6650_v33  ;;  %v9302_v13 = vld [vmem:[#allocation7 + $0xbdc] sm:$0xf0] }
  0x8e   :  { %v7194_v14 = vld [vmem:[#allocation7 + $0x580] sm:$0xf] }
  0x8f   :  { %1098 = vmatpush.bf16.msrb.mxu0 %v6099_v43  ;;  %1126 = vmatpush.bf16.msrb.mxu2 %v6103_v45  ;;  %v6619_v43 = vor.u32 %v8958_v40, %v6618_v39  ;;  %v6586_v45 = vld [vmem:[#allocation7 + $0xc0] sm:$0xf] }
  0x90   :  { %v9102_v15 = vld [vmem:[#allocation7 + $0x59c] sm:$0xf0] }
  0x91   :  { %1112 = vmatpush.bf16.msrb.mxu1 %v6355_v44  ;;  %1140 = vmatpush.bf16.msrb.mxu3 %v6359_v49  ;;  %v6875_v44 = vor.u32 %v9022_v42, %v6874_v41  ;;  %v6554_v49 = vld [vmem:[#allocation7 + $0x80] sm:$0xf]  ;;  %v7195_v18 = vor.u32 %v9102_v15, %v7194_v14 }
  0x92   :  { %v6555_v52 = vor.u32 %v8942_v50, %v6554_v49  ;;  %v7450_v19 = vld [vmem:[#allocation7 + $0x780] sm:$0xf] }
  0x93   :  { %1099 = vmatpush.bf16.msrb.mxu0 %v6067_v55  ;;  %1127 = vmatpush.bf16.msrb.mxu2 %v6071_v57  ;;  %v6522_v55 = vld [vmem:[#allocation7 + $0x40] sm:$0xf] }
  0x94   :  { %v6778_v57 = vld [vmem:[#allocation7 + $0x240] sm:$0xf] }
  0x95   :  { %1113 = vmatpush.bf16.msrb.mxu1 %v6323_v56  ;;  %1141 = vmatpush.bf16.msrb.mxu3 %v6327_v61  ;;  %v8934_v56 = vld [vmem:[#allocation7 + $0x5c] sm:$0xf0]  ;;  %v6779_v60 = vor.u32 %v8998_v59, %v6778_v57 }
  0x96   :  { %v6523_v58 = vor.u32 %v8934_v56, %v6522_v55  ;;  %v7226_v61 = vld [vmem:[#allocation7 + $0x5c0] sm:$0xf] }
  0x97   :  { %1100 = vmatpush.bf16.msrb.mxu0 %v6035_v3  ;;  %1128 = vmatpush.bf16.msrb.mxu2 %v6039_v6  ;;  %v7227_v63 = vor.u32 %v9110_v62, %v7226_v61  ;;  %v6491_v3 = vor.u32 %v8926_v1, %v6490_v0  ;;  %v9174_v6 = vld [vmem:[#allocation7 + $0x7dc] sm:$0xf0] }
  0x98   :  { %v9294_v27 = vld [vmem:[#allocation7 + $0xb9c] sm:$0xf0] }
  0x99   :  { %1114 = vmatpush.bf16.msrb.mxu1 %v6291_v5  ;;  %1142 = vmatpush.bf16.msrb.mxu3 %v6295_v10  ;;  %v7482_v5 = vld [vmem:[#allocation7 + $0x7c0] sm:$0xf] }
  0x9a   :  { %v7483_v8 = vor.u32 %v9174_v6, %v7482_v5  ;;  %v9238_v10 = vld [vmem:[#allocation7 + $0x9dc] sm:$0xf0] }
  0x9b   :  { %1101 = vmatpush.bf16.msrb.mxu0 %v6003_v17  ;;  %1129 = vmatpush.bf16.msrb.mxu2 %v6007_v21  ;;  %v7739_v12 = vor.u32 %v9238_v10, %v7738_v9  ;;  %v7995_v17 = vor.u32 %v9302_v13, %v7994_v11  ;;  %v7706_v21 = vld [vmem:[#allocation7 + $0x980] sm:$0xf] }
  0x9c   :  { %v7162_v30 = vld [vmem:[#allocation7 + $0x540] sm:$0xf] }
  0x9d   :  { %1115 = vmatpush.bf16.msrb.mxu1 %v6259_v20  ;;  %1143 = vmatpush.bf16.msrb.mxu3 %v6263_v22  ;;  %v9166_v20 = vld [vmem:[#allocation7 + $0x79c] sm:$0xf0] }
  0x9e   :  { %1102 = vmatmul.bf16.vlgmr.msrb.gmra.mxu0 %v9754_v23  ;;  %1130 = vmatmul.bf16.vlgmr.msrb.gmra.mxu2 %v9754_v23  ;;  %v8950_v23 = vld [vmem:[#allocation7 + $0xdc] sm:$0xf0]  ;;  %v7451_v22 = vor.u32 %v9166_v20, %v7450_v19 }
  0x9f   :  { %4328 = vmatpush.bf16.msra.mxu0 %v6715_v25  ;;  %v6587_v47 = vor.u32 %v8950_v23, %v6586_v45  ;;  %4356 = vmatpush.bf16.msra.mxu2 %v7227_v63  ;;  %v9230_v25 = vld [vmem:[#allocation7 + $0x99c] sm:$0xf0]  ;;  %v261_v23 = vperm.slane %v9774_v16, 1 }
  0xa0   :  { %1116 = vmatmul.bf16.vlgmr.msrb.gmra.mxu1 %v9756_v24  ;;  %1144 = vmatmul.bf16.vlgmr.msrb.gmra.mxu3 %v9756_v24  ;;  %v6843_v24 = vor.u32 %v9014_v48, %v6842_v46  ;;  %v7707_v28 = vor.u32 %v9230_v25, %v7706_v21  ;;  %v7418_v34 = vld [vmem:[#allocation7 + $0x740] sm:$0xf] }
  0xa1   :  { %4342 = vmatpush.bf16.msra.mxu1 %v6971_v26  ;;  %4370 = vmatpush.bf16.msra.mxu3 %v7483_v8  ;;  %v7962_v26 = vld [vmem:[#allocation7 + $0xb80] sm:$0xf] }
  0xa2   :  { %v7963_v29 = vor.u32 %v9294_v27, %v7962_v26  ;;  %v9158_v35 = vld [vmem:[#allocation7 + $0x75c] sm:$0xf0] }
  0xa3   :  { %4329 = vmatpush.bf16.msra.mxu0 %v6683_v31  ;;  %4357 = vmatpush.bf16.msra.mxu2 %v7195_v18  ;;  %v9094_v31 = vld [vmem:[#allocation7 + $0x55c] sm:$0xf0] }
  0xa4   :  { %v7163_v33 = vor.u32 %v9094_v31, %v7162_v30  ;;  %v7674_v36 = vld [vmem:[#allocation7 + $0x940] sm:$0xf] }
  0xa5   :  { %4343 = vmatpush.bf16.msra.mxu1 %v6939_v32  ;;  %v260_v32 = vperm.slane %v9774_v16, 0  ;;  %4371 = vmatpush.bf16.msra.mxu3 %v7451_v22  ;;  %v7930_v39 = vld [vmem:[#allocation7 + $0xb40] sm:$0xf] }
  0xa6   :  { %v9286_v40 = vld [vmem:[#allocation7 + $0xb5c] sm:$0xf0] }
  0xa7   :  { %4330 = vmatpush.bf16.msra.mxu0 %v6651_v37  ;;  %4358 = vmatpush.bf16.msra.mxu2 %v7163_v33  ;;  %v7419_v37 = vor.u32 %v9158_v35, %v7418_v34  ;;  %v7931_v42 = vor.u32 %v9286_v40, %v7930_v39  ;;  %v7386_v48 = vld [vmem:[#allocation7 + $0x700] sm:$0xf] }
  0xa8   :  { %v7642_v49 = vld [vmem:[#allocation7 + $0x900] sm:$0xf] }
  0xa9   :  { %4344 = vmatpush.bf16.msra.mxu1 %v6907_v38  ;;  %v9222_v38 = vld [vmem:[#allocation7 + $0x95c] sm:$0xf0]  ;;  %4372 = vmatpush.bf16.msra.mxu3 %v7419_v37 }
  0xaa   :  { %v7675_v41 = vor.u32 %v9222_v38, %v7674_v36  ;;  %v7898_v53 = vld [vmem:[#allocation7 + $0xb00] sm:$0xf] }
  0xab   :  { %4331 = vmatpush.bf16.msra.mxu0 %v6619_v43  ;;  %v7130_v43 = vld [vmem:[#allocation7 + $0x500] sm:$0xf] }
  0xac   :  { %v7098_v57 = vld [vmem:[#allocation7 + $0x4c0] sm:$0xf] }
  0xad   :  { %4345 = vmatpush.bf16.msra.mxu1 %v6875_v44  ;;  %v9086_v44 = vld [vmem:[#allocation7 + $0x51c] sm:$0xf0] }
  0xae   :  { %v7131_v46 = vor.u32 %v9086_v44, %v7130_v43  ;;  %v7354_v61 = vld [vmem:[#allocation7 + $0x6c0] sm:$0xf] }
  0xaf   :  { %4332 = vmatpush.bf16.msra.mxu0 %v6587_v47  ;;  %v9142_v62 = vld [vmem:[#allocation7 + $0x6dc] sm:$0xf0] }
  0xb0   :  { %4359 = vmatpush.bf16.msra.mxu2 %v7131_v46  ;;  %v7610_v63 = vld [vmem:[#allocation7 + $0x8c0] sm:$0xf] }
  0xb1   :  { %4346 = vmatpush.bf16.msra.mxu1 %v6843_v24  ;;  %v9150_v24 = vld [vmem:[#allocation7 + $0x71c] sm:$0xf0] }
  0xb2   :  { %v7387_v51 = vor.u32 %v9150_v24, %v7386_v48  ;;  %v9206_v4 = vld [vmem:[#allocation7 + $0x8dc] sm:$0xf0] }
  0xb3   :  { %4333 = vmatpush.bf16.msra.mxu0 %v6555_v52  ;;  %v9214_v52 = vld [vmem:[#allocation7 + $0x91c] sm:$0xf0] }
  0xb4   :  { %v7643_v55 = vor.u32 %v9214_v52, %v7642_v49  ;;  %4373 = vmatpush.bf16.msra.mxu3 %v7387_v51  ;;  %v7866_v5 = vld [vmem:[#allocation7 + $0xac0] sm:$0xf] }
  0xb5   :  { %4347 = vmatpush.bf16.msra.mxu1 %v6811_v54  ;;  %v9278_v54 = vld [vmem:[#allocation7 + $0xb1c] sm:$0xf0] }
  0xb6   :  { %v7899_v56 = vor.u32 %v9278_v54, %v7898_v53  ;;  %v9270_v6 = vld [vmem:[#allocation7 + $0xadc] sm:$0xf0] }
  0xb7   :  { %4334 = vmatpush.bf16.msra.mxu0 %v6523_v58  ;;  %v9078_v58 = vld [vmem:[#allocation7 + $0x4dc] sm:$0xf0]  ;;  %v7867_v8 = vor.u32 %v9270_v6, %v7866_v5  ;;  %v8978_v6 = vld [vmem:[#allocation7 + $0x1c4] sm:$0xf] }
  0xb8   :  { %v7099_v59 = vor.u32 %v9078_v58, %v7098_v57  ;;  %v7066_v9 = vld [vmem:[#allocation7 + $0x480] sm:$0xf] }
  0xb9   :  { %4348 = vmatpush.bf16.msra.mxu1 %v6779_v60  ;;  %v9070_v10 = vld [vmem:[#allocation7 + $0x49c] sm:$0xf0] }
  0xba   :  { %4360 = vmatpush.bf16.msra.mxu2 %v7099_v59  ;;  %v7067_v13 = vor.u32 %v9070_v10, %v7066_v9  ;;  %v7322_v15 = vld [vmem:[#allocation7 + $0x680] sm:$0xf] }
  0xbb   :  { %4335 = vmatpush.bf16.msra.mxu0 %v6491_v3  ;;  %v7355_v3 = vor.u32 %v9142_v62, %v7354_v61  ;;  %v7578_v18 = vld [vmem:[#allocation7 + $0x880] sm:$0xf] }
  0xbc   :  { %v9198_v22 = vld [vmem:[#allocation7 + $0x89c] sm:$0xf0] }
  0xbd   :  { %4349 = vmatpush.bf16.msra.mxu1 %v6747_v7  ;;  %v7611_v7 = vor.u32 %v9206_v4, %v7610_v63  ;;  %4374 = vmatpush.bf16.msra.mxu3 %v7355_v3  ;;  %v7834_v25 = vld [vmem:[#allocation7 + $0xa80] sm:$0xf]  ;;  %v7579_v27 = vor.u32 %v9198_v22, %v7578_v18  ;;  %v9042_v18 = vld [vmem:[#allocation7 + $0x3c4] sm:$0xf] }
  0xbe   :  { %4361 = vmatpush.bf16.msra.mxu2 %v7067_v13  ;;  %v9262_v26 = vld [vmem:[#allocation7 + $0xa9c] sm:$0xf0] }
  0xbf   :  { %4384 = vmatpush.bf16.msrb.mxu0 %v7739_v12  ;;  %v9062_v30 = vld [vmem:[#allocation7 + $0x45c] sm:$0xf0] }
  0xc0   :  { %v7290_v36 = vld [vmem:[#allocation7 + $0x640] sm:$0xf] }
  0xc1   :  { %4398 = vmatpush.bf16.msrb.mxu1 %v7995_v17  ;;  %v9134_v17 = vld [vmem:[#allocation7 + $0x69c] sm:$0xf0] }
  0xc2   :  { %v7323_v21 = vor.u32 %v9134_v17, %v7322_v15  ;;  %v9126_v37 = vld [vmem:[#allocation7 + $0x65c] sm:$0xf0] }
  0xc3   :  { %4385 = vmatpush.bf16.msrb.mxu0 %v7707_v28  ;;  %v7835_v28 = vor.u32 %v9262_v26, %v7834_v25  ;;  %v7546_v38 = vld [vmem:[#allocation7 + $0x840] sm:$0xf]  ;;  %v7291_v43 = vor.u32 %v9126_v37, %v7290_v36 }
  0xc4   :  { %4375 = vmatpush.bf16.msra.mxu3 %v7323_v21  ;;  %v9190_v44 = vld [vmem:[#allocation7 + $0x85c] sm:$0xf0] }
  0xc5   :  { %4399 = vmatpush.bf16.msrb.mxu1 %v7963_v29  ;;  %v7034_v29 = vld [vmem:[#allocation7 + $0x440] sm:$0xf]  ;;  %v7547_v46 = vor.u32 %v9190_v44, %v7546_v38 }
  0xc6   :  { %v7035_v33 = vor.u32 %v9062_v30, %v7034_v29  ;;  %v7002_v48 = vld [vmem:[#allocation7 + $0x400] sm:$0xf]  ;;  %v8970_v29 = vld [vmem:[#allocation7 + $0x184] sm:$0xf] }
  0xc7   :  { %v935_v45 = vpop.f32.mrf.mxu0  ;;  %v949_v47 = vpop.f32.mrf.mxu1  ;;  %4386 = vmatpush.bf16.msrb.mxu0 %v7675_v41  ;;  %v9054_v24 = vld [vmem:[#allocation7 + $0x41c] sm:$0xf0] }
  0xc8   :  { %v936_v50 = vadd.f32 %v935_v45, %v260_v32  ;;  %4362 = vmatpush.bf16.msra.mxu2 %v7035_v33  ;;  %v7802_v45 = vld [vmem:[#allocation7 + $0xa40] sm:$0xf]  ;;  %4376 = vmatpush.bf16.msra.mxu3 %v7291_v43  ;;  %v7003_v54 = vor.u32 %v9054_v24, %v7002_v48  ;;  %v9034_v33 = vld [vmem:[#allocation7 + $0x384] sm:$0xf] }
  0xc9   :  { %4400 = vmatpush.bf16.msrb.mxu1 %v7931_v42  ;;  %v7258_v51 = vld [vmem:[#allocation7 + $0x600] sm:$0xf] }
  0xca   :  { %v950_v1 = vadd.f32 %v949_v47, %v936_v50  ;;  %v9254_v47 = vld [vmem:[#allocation7 + $0xa5c] sm:$0xf0] }
  0xcb   :  { %v963_v60 = vpop.f32.mrf.mxu2  ;;  %4387 = vmatpush.bf16.msrb.mxu0 %v7643_v55  ;;  %v977_v2 = vpop.f32.mrf.mxu3  ;;  %v7803_v50 = vor.u32 %v9254_v47, %v7802_v45  ;;  %v9118_v52 = vld [vmem:[#allocation7 + $0x61c] sm:$0xf0]  ;;  %v8962_v47 = vld [vmem:[#allocation7 + $0x144] sm:$0xf] }
  0xcc   :  { %v964_v0 = vadd.f32 %v963_v60, %v261_v23  ;;  %v7514_v53 = vld [vmem:[#allocation7 + $0x800] sm:$0xf]  ;;  %v7259_v55 = vor.u32 %v9118_v52, %v7258_v51  ;;  %4363 = vmatpush.bf16.msra.mxu2 %v7003_v54  ;;  %v6908_v51 = vld [vmem:[#allocation7 + $0x360] sm:$0xf0] }
  0xcd   :  { %4401 = vmatpush.bf16.msrb.mxu1 %v7899_v56  ;;  %v7770_v56 = vld [vmem:[#allocation7 + $0xa00] sm:$0xf] }
  0xce   :  { %v978_v11 = vadd.f32 %v977_v2, %v964_v0  ;;  %v9246_v57 = vld [vmem:[#allocation7 + $0xa1c] sm:$0xf0]  ;;  %v262_v0 = vperm.slane %v9774_v16, 2  ;;  %4377 = vmatpush.bf16.msra.mxu3 %v7259_v55 }
  0xcf   :  { %v937_v12 = vpop.f32.mrf.mxu0  ;;  %4388 = vmatpush.bf16.msrb.mxu0 %v7611_v7  ;;  %v951_v20 = vpop.f32.mrf.mxu1  ;;  %v7771_v60 = vor.u32 %v9246_v57, %v7770_v56  ;;  %v8250_v61 = vld [vmem:[#allocation7 + $0xdc0] sm:$0xf]  ;;  %v6716_v7 = vld [vmem:[#allocation7 + $0x1e0] sm:$0xf0] }
  0xd0   :  { %v938_v14 = vadd.f32 %v937_v12, %v260_v32  ;;  %v9780_v19 = vpack.c.bf16 %v978_v11, %v950_v1  ;;  %v9366_v62 = vld [vmem:[#allocation7 + $0xddc] sm:$0xf0]  ;;  %v6719_v30 = vor.u32 %v8978_v6, %v6716_v7 }
  0xd1   :  { %4402 = vmatpush.bf16.msrb.mxu1 %v7867_v8  ;;  %v8506_v63 = vld [vmem:[#allocation7 + $0xfc0] sm:$0xf]  ;;  %v8251_v1 = vor.u32 %v9366_v62, %v8250_v61  ;;  %v8954_v61 = vld [vmem:[#allocation7 + $0x104] sm:$0xf] }
  0xd2   :  { %v1158_v31 = vunpack.c.l.bf16 %v9780_v19  ;;  %v1159_v32 = vunpack.c.h.bf16 %v9780_v19  ;;  %v952_v35 = vadd.f32 %v951_v20, %v938_v14  ;;  %v9430_v2 = vld [vmem:[#allocation7 + $0xfdc] sm:$0xf0]  ;;  %v6972_v19 = vld [vmem:[#allocation7 + $0x3e0] sm:$0xf0] }
  0xd3   :  { %v965_v34 = vpop.f32.mrf.mxu2  ;;  %4389 = vmatpush.bf16.msrb.mxu0 %v7579_v27  ;;  %v979_v42 = vpop.f32.mrf.mxu3  ;;  %v8507_v5 = vor.u32 %v9430_v2, %v8506_v63  ;;  %v8218_v8 = vld [vmem:[#allocation7 + $0xd80] sm:$0xf]  ;;  %4412 = vmatpush.bf16.msrb.mxu2 %v8251_v1  ;;  %v6620_v2 = vld [vmem:[#allocation7 + $0x120] sm:$0xf0] }
  0xd4   :  { %v1174_v39 = vmul.f32 0.010009766, %v1158_v31  ;;  %v1175_v40 = vmul.f32 0.010009766, %v1159_v32  ;;  %v966_v41 = vadd.f32 %v965_v34, %v261_v23  ;;  %v9182_v23 = vld [vmem:[#allocation7 + $0x81c] sm:$0xf0]  ;;  %v6940_v34 = vld [vmem:[#allocation7 + $0x3a0] sm:$0xf0] }
  0xd5   :  { %4403 = vmatpush.bf16.msrb.mxu1 %v7835_v28  ;;  %v7515_v59 = vor.u32 %v9182_v23, %v7514_v53  ;;  %v9358_v11 = vld [vmem:[#allocation7 + $0xd9c] sm:$0xf0]  ;;  %4426 = vmatpush.bf16.msrb.mxu3 %v8507_v5  ;;  %v263_v28 = vperm.slane %v9774_v16, 3  ;;  %v6943_v24 = vor.u32 %v9034_v33, %v6940_v34 }
  0xd6   :  { %v980_v49 = vadd.f32 %v979_v42, %v966_v41  ;;  %v1214_v9 = vmax.f32 %v1158_v31, %v1174_v39  ;;  %v1215_v10 = vmax.f32 %v1159_v32, %v1175_v40  ;;  %v8474_v12 = vld [vmem:[#allocation7 + $0xf80] sm:$0xf]  ;;  %v8219_v20 = vor.u32 %v9358_v11, %v8218_v8  ;;  %v6684_v32 = vld [vmem:[#allocation7 + $0x1a0] sm:$0xf0] }
  0xd7   :  { %4390 = vmatpush.bf16.msrb.mxu0 %v7547_v46  ;;  %v9422_v13 = vld [vmem:[#allocation7 + $0xf9c] sm:$0xf0]  ;;  %v6975_v31 = vor.u32 %v9042_v18, %v6972_v19  ;;  %v6687_v48 = vor.u32 %v8970_v29, %v6684_v32  ;;  %v6623_v18 = vor.u32 %v8954_v61, %v6620_v2 }
  0xd8   :  { %v1154_v58 = vpack.c.bf16 %v980_v49, %v952_v35  ;;  %v8475_v21 = vor.u32 %v9422_v13, %v8474_v12  ;;  %4413 = vmatpush.bf16.msrb.mxu2 %v8219_v20  ;;  %v8186_v37 = vld [vmem:[#allocation7 + $0xd40] sm:$0xf]  ;;  %v6652_v49 = vld [vmem:[#allocation7 + $0x160] sm:$0xf0] }
  0xd9   :  { %4404 = vmatpush.bf16.msrb.mxu1 %v7803_v50  ;;  %v9350_v38 = vld [vmem:[#allocation7 + $0xd5c] sm:$0xf0]  ;;  %v9026_v50 = vld [vmem:[#allocation7 + $0x344] sm:$0xf]  ;;  %v6655_v63 = vor.u32 %v8962_v47, %v6652_v49 }
  0xda   :  { %v1166_v3 = vunpack.c.l.bf16 %v1154_v58  ;;  %v1167_v4 = vunpack.c.h.bf16 %v1154_v58  ;;  %4427 = vmatpush.bf16.msrb.mxu3 %v8475_v21  ;;  %v8442_v39 = vld [vmem:[#allocation7 + $0xf40] sm:$0xf]  ;;  %v8187_v41 = vor.u32 %v9350_v38, %v8186_v37  ;;  %v6911_v1 = vor.u32 %v9026_v50, %v6908_v51  ;;  %v6588_v20 = vld [vmem:[#allocation7 + $0xe0] sm:$0xf0] }
  0xdb   :  { %4391 = vmatpush.bf16.msrb.mxu0 %v7515_v59  ;;  %v991_v17 = vpop.f32.mrf.mxu0  ;;  %v9414_v42 = vld [vmem:[#allocation7 + $0xf5c] sm:$0xf0]  ;;  %v9010_v21 = vld [vmem:[#allocation7 + $0x2c4] sm:$0xf] }
  0xdc   :  { %v1182_v14 = vmul.f32 0.010009766, %v1166_v3  ;;  %v1183_v15 = vmul.f32 0.010009766, %v1167_v4  ;;  %v992_v27 = vadd.f32 %v991_v17, %v262_v0  ;;  %v8443_v46 = vor.u32 %v9414_v42, %v8442_v39  ;;  %4414 = vmatpush.bf16.msrb.mxu2 %v8187_v41  ;;  %v8154_v54 = vld [vmem:[#allocation7 + $0xd00] sm:$0xf]  ;;  %v8946_v17 = vld [vmem:[#allocation7 + $0xc4] sm:$0xf] }
  0xdd   :  { %4405 = vmatpush.bf16.msrb.mxu1 %v7771_v60  ;;  %v1005_v22 = vpop.f32.mrf.mxu1  ;;  %v9342_v55 = vld [vmem:[#allocation7 + $0xd1c] sm:$0xf0]  ;;  %v8938_v37 = vld [vmem:[#allocation7 + $0x84] sm:$0xf]  ;;  %v6591_v38 = vor.u32 %v8946_v17, %v6588_v20 }
  0xde   :  { %v1222_v25 = vmax.f32 %v1166_v3, %v1182_v14  ;;  %v1223_v26 = vmax.f32 %v1167_v4, %v1183_v15  ;;  %v1006_v44 = vadd.f32 %v1005_v22, %v992_v27  ;;  %4428 = vmatpush.bf16.msrb.mxu3 %v8443_v46  ;;  %v8410_v23 = vld [vmem:[#allocation7 + $0xf00] sm:$0xf]  ;;  %v8155_v56 = vor.u32 %v9342_v55, %v8154_v54  ;;  %v9018_v3 = vld [vmem:[#allocation7 + $0x304] sm:$0xf] }
  0xdf   :  { %v9406_v57 = vld [vmem:[#allocation7 + $0xf1c] sm:$0xf0]  ;;  %v6876_v4 = vld [vmem:[#allocation7 + $0x320] sm:$0xf0] }
  0xe0   :  { %v9790_v35 = vpack.c.bf16 %v1222_v25, %v1214_v9  ;;  %v9792_v36 = vpack.c.bf16 %v1223_v26, %v1215_v10  ;;  %v8411_v60 = vor.u32 %v9406_v57, %v8410_v23  ;;  %4415 = vmatpush.bf16.msrb.mxu2 %v8155_v56  ;;  %v8122_v5 = vld [vmem:[#allocation7 + $0xcc0] sm:$0xf]  ;;  %v6879_v19 = vor.u32 %v9018_v3, %v6876_v4  ;;  %v6844_v22 = vld [vmem:[#allocation7 + $0x2e0] sm:$0xf0] }
  0xe1   :  { %v1019_v40 = vpop.f32.mrf.mxu2  ;;  %v9334_v6 = vld [vmem:[#allocation7 + $0xcdc] sm:$0xf0]  ;;  %v6847_v39 = vor.u32 %v9010_v21, %v6844_v22  ;;  %v9002_v41 = vld [vmem:[#allocation7 + $0x284] sm:$0xf] }
  0xe2   :  { %v1020_v43 = vadd.f32 %v1019_v40, %v263_v28  ;;  %4336 = vmatmul.bf16.vlgmr.msra.gmra.mxu0 %v9790_v35  ;;  %4350 = vmatmul.bf16.vlgmr.msra.gmra.mxu1 %v9792_v36  ;;  %v8378_v7 = vld [vmem:[#allocation7 + $0xec0] sm:$0xf]  ;;  %v8123_v10 = vor.u32 %v9334_v6, %v8122_v5  ;;  %v6556_v40 = vld [vmem:[#allocation7 + $0xa0] sm:$0xf0]  ;;  %v264_v5 = vperm.slane %v9774_v16, 4 }
  0xe3   :  { %v1033_v45 = vpop.f32.mrf.mxu3  ;;  %4440 = vmatpush.bf16.msra.mxu0 %v6719_v30  ;;  %4454 = vmatpush.bf16.msra.mxu1 %v6975_v31  ;;  %v993_v53 = vpop.f32.mrf.mxu0  ;;  %v8090_v26 = vld [vmem:[#allocation7 + $0xc80] sm:$0xf]  ;;  %v6812_v42 = vld [vmem:[#allocation7 + $0x2a0] sm:$0xf0]  ;;  %v6559_v55 = vor.u32 %v8938_v37, %v6556_v40 }
  0xe4   :  { %v1034_v52 = vadd.f32 %v1033_v45, %v1020_v43  ;;  %v994_v59 = vadd.f32 %v993_v53, %v262_v0  ;;  %4429 = vmatpush.bf16.msrb.mxu3 %v8411_v60  ;;  %v9398_v0 = vld [vmem:[#allocation7 + $0xedc] sm:$0xf0]  ;;  %4416 = vmatpush.bf16.msrb.mxu2 %v8123_v10  ;;  %v8930_v54 = vld [vmem:[#allocation7 + $0x44] sm:$0xf]  ;;  %v6815_v23 = vor.u32 %v9002_v41, %v6812_v42 }
  0xe5   :  { %v1007_v62 = vpop.f32.mrf.mxu1  ;;  %v8379_v15 = vor.u32 %v9398_v0, %v8378_v7  ;;  %v9326_v27 = vld [vmem:[#allocation7 + $0xc9c] sm:$0xf0]  ;;  %v6524_v56 = vld [vmem:[#allocation7 + $0x60] sm:$0xf0] }
  0xe6   :  { %v9796_v58 = vpack.c.bf16 %v1034_v52, %v1006_v44  ;;  %v1008_v13 = vadd.f32 %v1007_v62, %v994_v59  ;;  %v8346_v29 = vld [vmem:[#allocation7 + $0xe80] sm:$0xf]  ;;  %v8091_v31 = vor.u32 %v9326_v27, %v8090_v26  ;;  %v8994_v57 = vld [vmem:[#allocation7 + $0x244] sm:$0xf] }
  0xe7   :  { %4441 = vmatpush.bf16.msra.mxu0 %v6687_v48  ;;  %4455 = vmatpush.bf16.msra.mxu1 %v6943_v24  ;;  %v8058_v45 = vld [vmem:[#allocation7 + $0xc40] sm:$0xf]  ;;  %v8922_v7 = vld [vmem:[#allocation7 + $0x4] sm:$0xf] }
  0xe8   :  { %v1160_v8 = vunpack.c.l.bf16 %v9796_v58  ;;  %v1161_v11 = vunpack.c.h.bf16 %v9796_v58  ;;  %4430 = vmatpush.bf16.msrb.mxu3 %v8379_v15  ;;  %4417 = vmatpush.bf16.msrb.mxu2 %v8091_v31  ;;  %v9318_v46 = vld [vmem:[#allocation7 + $0xc5c] sm:$0xf0]  ;;  %v6780_v58 = vld [vmem:[#allocation7 + $0x260] sm:$0xf0] }
  0xe9   :  { %v1021_v9 = vpop.f32.mrf.mxu2  ;;  %v8314_v47 = vld [vmem:[#allocation7 + $0xe40] sm:$0xf]  ;;  %v8059_v24 = vor.u32 %v9318_v46, %v8058_v45  ;;  %v6783_v10 = vor.u32 %v8994_v57, %v6780_v58  ;;  %v6492_v0 = vld [vmem:[#allocation7 + $0x20] sm:$0xf0] }
  0xea   :  { %v1022_v12 = vadd.f32 %v1021_v9, %v263_v28  ;;  %v1176_v30 = vmul.f32 0.010009766, %v1160_v8  ;;  %v9390_v28 = vld [vmem:[#allocation7 + $0xe9c] sm:$0xf0]  ;;  %v1177_v32 = vmul.f32 0.010009766, %v1161_v11  ;;  %v6527_v9 = vor.u32 %v8930_v54, %v6524_v56  ;;  %v7484_v17 = vld [vmem:[#allocation7 + $0x7e0] sm:$0xf0] }
  0xeb   :  { %v1035_v14 = vpop.f32.mrf.mxu3  ;;  %4442 = vmatpush.bf16.msra.mxu0 %v6655_v63  ;;  %4456 = vmatpush.bf16.msra.mxu1 %v6911_v1  ;;  %v8347_v34 = vor.u32 %v9390_v28, %v8346_v29  ;;  %v9382_v49 = vld [vmem:[#allocation7 + $0xe5c] sm:$0xf0]  ;;  %v7196_v21 = vld [vmem:[#allocation7 + $0x5a0] sm:$0xf0]  ;;  %v6495_v27 = vor.u32 %v8922_v7, %v6492_v0  ;;  %v265_v28 = vperm.slane %v9774_v16, 5 }
  0xec   :  { %v1036_v25 = vadd.f32 %v1035_v14, %v1022_v12  ;;  %v1216_v48 = vmax.f32 %v1160_v8, %v1176_v30  ;;  %v1217_v50 = vmax.f32 %v1161_v11, %v1177_v32  ;;  %v8315_v53 = vor.u32 %v9382_v49, %v8314_v47  ;;  %4418 = vmatpush.bf16.msrb.mxu2 %v8059_v24  ;;  %v8026_v61 = vld [vmem:[#allocation7 + $0xc00] sm:$0xf]  ;;  %v9106_v8 = vld [vmem:[#allocation7 + $0x5c4] sm:$0xf] }
  0xed   :  { %4431 = vmatpush.bf16.msrb.mxu3 %v8347_v34  ;;  %v9310_v62 = vld [vmem:[#allocation7 + $0xc1c] sm:$0xf0]  ;;  %v7228_v11 = vld [vmem:[#allocation7 + $0x5e0] sm:$0xf0] }
  0xee   :  { %v1155_v33 = vpack.c.bf16 %v1036_v25, %v1008_v13  ;;  %v8282_v63 = vld [vmem:[#allocation7 + $0xe00] sm:$0xf]  ;;  %v8027_v1 = vor.u32 %v9310_v62, %v8026_v61  ;;  %v9170_v12 = vld [vmem:[#allocation7 + $0x7c4] sm:$0xf]  ;;  %v7231_v15 = vor.u32 %v9106_v8, %v7228_v11 }
  0xef   :  { %4443 = vmatpush.bf16.msra.mxu0 %v6623_v18  ;;  %4457 = vmatpush.bf16.msra.mxu1 %v6879_v19  ;;  %v9374_v2 = vld [vmem:[#allocation7 + $0xe1c] sm:$0xf0]  ;;  %v8986_v13 = vld [vmem:[#allocation7 + $0x204] sm:$0xf]  ;;  %v7487_v18 = vor.u32 %v9170_v12, %v7484_v17 }
  0xf0   :  { %v1168_v43 = vunpack.c.l.bf16 %v1155_v33  ;;  %v1169_v44 = vunpack.c.h.bf16 %v1155_v33  ;;  %v8283_v6 = vor.u32 %v9374_v2, %v8282_v63  ;;  %v6748_v14 = vld [vmem:[#allocation7 + $0x220] sm:$0xf0]  ;;  %4419 = vmatpush.bf16.msrb.mxu2 %v8027_v1 }
  0xf1   :  { %4432 = vmatpush.bf16.msrb.mxu3 %v8315_v53  ;;  %v9098_v19 = vld [vmem:[#allocation7 + $0x584] sm:$0xf]  ;;  %v6751_v29 = vor.u32 %v8986_v13, %v6748_v14 }
  0xf2   :  { %v1184_v51 = vmul.f32 0.010009766, %v1168_v43  ;;  %v1185_v52 = vmul.f32 0.010009766, %v1169_v44  ;;  %v9162_v22 = vld [vmem:[#allocation7 + $0x784] sm:$0xf]  ;;  %v7199_v30 = vor.u32 %v9098_v19, %v7196_v21 }
  0xf3   :  { %4444 = vmatpush.bf16.msra.mxu0 %v6591_v38  ;;  %4458 = vmatpush.bf16.msra.mxu1 %v6847_v39  ;;  %v7452_v25 = vld [vmem:[#allocation7 + $0x7a0] sm:$0xf0] }
  0xf4   :  { %v1224_v59 = vmax.f32 %v1168_v43, %v1184_v51  ;;  %v1225_v60 = vmax.f32 %v1169_v44, %v1185_v52  ;;  %v7455_v32 = vor.u32 %v9162_v22, %v7452_v25  ;;  %v9090_v33 = vld [vmem:[#allocation7 + $0x544] sm:$0xf] }
  0xf5   :  { %4433 = vmatpush.bf16.msrb.mxu3 %v8283_v6  ;;  %v7164_v34 = vld [vmem:[#allocation7 + $0x560] sm:$0xf0] }
  0xf6   :  { %v9802_v3 = vpack.c.bf16 %v1224_v59, %v1216_v48  ;;  %v9804_v4 = vpack.c.bf16 %v1225_v60, %v1217_v50  ;;  %v9154_v37 = vld [vmem:[#allocation7 + $0x744] sm:$0xf]  ;;  %v7167_v38 = vor.u32 %v9090_v33, %v7164_v34 }
  0xf7   :  { %4445 = vmatpush.bf16.msra.mxu0 %v6559_v55  ;;  %4459 = vmatpush.bf16.msra.mxu1 %v6815_v23  ;;  %v7420_v39 = vld [vmem:[#allocation7 + $0x760] sm:$0xf0] }
  0xf8   :  { %4364 = vmatmul.bf16.vlgmr.msra.gmra.mxu2 %v9802_v3  ;;  %4378 = vmatmul.bf16.vlgmr.msra.gmra.mxu3 %v9804_v4  ;;  %v7423_v44 = vor.u32 %v9154_v37, %v7420_v39  ;;  %v9082_v45 = vld [vmem:[#allocation7 + $0x504] sm:$0xf] }
  0xf9   :  { %4468 = vmatpush.bf16.msra.mxu2 %v7231_v15  ;;  %4482 = vmatpush.bf16.msra.mxu3 %v7487_v18  ;;  %v7132_v46 = vld [vmem:[#allocation7 + $0x520] sm:$0xf0] }
  0xfa   :  { %v9146_v47 = vld [vmem:[#allocation7 + $0x704] sm:$0xf]  ;;  %v7135_v49 = vor.u32 %v9082_v45, %v7132_v46 }
  0xfb   :  { %v1047_v20 = vpop.f32.mrf.mxu0  ;;  %4446 = vmatpush.bf16.msra.mxu0 %v6527_v9  ;;  %4460 = vmatpush.bf16.msra.mxu1 %v6783_v10  ;;  %v7388_v50 = vld [vmem:[#allocation7 + $0x720] sm:$0xf0] }
  0xfc   :  { %v1048_v31 = vadd.f32 %v1047_v20, %v264_v5  ;;  %v7391_v53 = vor.u32 %v9146_v47, %v7388_v50  ;;  %v9074_v55 = vld [vmem:[#allocation7 + $0x4c4] sm:$0xf]  ;;  %v266_v50 = vperm.slane %v9774_v16, 6 }
  0xfd   :  { %v1061_v26 = vpop.f32.mrf.mxu1  ;;  %4469 = vmatpush.bf16.msra.mxu2 %v7199_v30  ;;  %4483 = vmatpush.bf16.msra.mxu3 %v7455_v32  ;;  %v7100_v23 = vld [vmem:[#allocation7 + $0x4e0] sm:$0xf0] }
  0xfe   :  { %v1062_v42 = vadd.f32 %v1061_v26, %v1048_v31  ;;  %v9138_v56 = vld [vmem:[#allocation7 + $0x6c4] sm:$0xf]  ;;  %v7103_v57 = vor.u32 %v9074_v55, %v7100_v23 }
  0xff   :  { %4447 = vmatpush.bf16.msra.mxu0 %v6495_v27  ;;  %4461 = vmatpush.bf16.msra.mxu1 %v6751_v29  ;;  %v7356_v58 = vld [vmem:[#allocation7 + $0x6e0] sm:$0xf0] }
 0x100   :  { %v7359_v2 = vor.u32 %v9138_v56, %v7356_v58  ;;  %v9066_v6 = vld [vmem:[#allocation7 + $0x484] sm:$0xf] }
 0x101   :  { %v1075_v40 = vpop.f32.mrf.mxu2  ;;  %4470 = vmatpush.bf16.msra.mxu2 %v7167_v38  ;;  %4484 = vmatpush.bf16.msra.mxu3 %v7423_v44  ;;  %v7068_v7 = vld [vmem:[#allocation7 + $0x4a0] sm:$0xf0] }
 0x102   :  { %v1076_v41 = vadd.f32 %v1075_v40, %v265_v28  ;;  %v7071_v9 = vor.u32 %v9066_v6, %v7068_v7  ;;  %v7324_v10 = vld [vmem:[#allocation7 + $0x6a0] sm:$0xf0] }
 0x103   :  { %v1089_v43 = vpop.f32.mrf.mxu3  ;;  %v1049_v24 = vpop.f32.mrf.mxu0  ;;  %v9058_v14 = vld [vmem:[#allocation7 + $0x444] sm:$0xf] }
 0x104   :  { %v1090_v48 = vadd.f32 %v1089_v43, %v1076_v41  ;;  %v1050_v52 = vadd.f32 %v1049_v24, %v264_v5  ;;  %v9130_v5 = vld [vmem:[#allocation7 + $0x684] sm:$0xf] }
 0x105   :  { %v1063_v54 = vpop.f32.mrf.mxu1  ;;  %4471 = vmatpush.bf16.msra.mxu2 %v7135_v49  ;;  %4485 = vmatpush.bf16.msra.mxu3 %v7391_v53  ;;  %v7327_v13 = vor.u32 %v9130_v5, %v7324_v10  ;;  %v7036_v15 = vld [vmem:[#allocation7 + $0x460] sm:$0xf0] }
 0x106   :  { %v1152_v51 = vpack.c.bf16 %v1090_v48, %v1062_v42  ;;  %v1064_v63 = vadd.f32 %v1063_v54, %v1050_v52  ;;  %v9122_v17 = vld [vmem:[#allocation7 + $0x644] sm:$0xf]  ;;  %v7039_v20 = vor.u32 %v9058_v14, %v7036_v15 }
 0x107   :  { %v7292_v21 = vld [vmem:[#allocation7 + $0x660] sm:$0xf0] }
 0x108   :  { %v1162_v59 = vunpack.c.l.bf16 %v1152_v51  ;;  %v1163_v61 = vunpack.c.h.bf16 %v1152_v51  ;;  %v9234_v25 = vld [vmem:[#allocation7 + $0x9c4] sm:$0xf]  ;;  %v7295_v32 = vor.u32 %v9122_v17, %v7292_v21 }
 0x109   :  { %v1077_v60 = vpop.f32.mrf.mxu2  ;;  %4472 = vmatpush.bf16.msra.mxu2 %v7103_v57  ;;  %4486 = vmatpush.bf16.msra.mxu3 %v7359_v2  ;;  %v7740_v26 = vld [vmem:[#allocation7 + $0x9e0] sm:$0xf0]  ;;  %v267_v57 = vperm.slane %v9774_v16, 7 }
 0x10a   :  { %v1078_v62 = vadd.f32 %v1077_v60, %v265_v28  ;;  %v1178_v0 = vmul.f32 0.010009766, %v1162_v59  ;;  %v1179_v11 = vmul.f32 0.010009766, %v1163_v61  ;;  %v9298_v31 = vld [vmem:[#allocation7 + $0xbc4] sm:$0xf]  ;;  %v7743_v41 = vor.u32 %v9234_v25, %v7740_v26 }
 0x10b   :  { %v1091_v1 = vpop.f32.mrf.mxu3  ;;  %v7996_v28 = vld [vmem:[#allocation7 + $0xbe0] sm:$0xf0] }
 0x10c   :  { %v1092_v8 = vadd.f32 %v1091_v1, %v1078_v62  ;;  %v1218_v22 = vmax.f32 %v1162_v59, %v1178_v0  ;;  %v1219_v27 = vmax.f32 %v1163_v61, %v1179_v11  ;;  %v9050_v33 = vld [vmem:[#allocation7 + $0x404] sm:$0xf]  ;;  %v7999_v42 = vor.u32 %v9298_v31, %v7996_v28 }
 0x10d   :  { %4473 = vmatpush.bf16.msra.mxu2 %v7071_v9  ;;  %4487 = vmatpush.bf16.msra.mxu3 %v7327_v13  ;;  %v7004_v34 = vld [vmem:[#allocation7 + $0x420] sm:$0xf0] }
 0x10e   :  { %v1156_v12 = vpack.c.bf16 %v1092_v8, %v1064_v63  ;;  %v9114_v37 = vld [vmem:[#allocation7 + $0x604] sm:$0xf]  ;;  %v7007_v24 = vor.u32 %v9050_v33, %v7004_v34 }
 0x10f   :  { %v7260_v40 = vld [vmem:[#allocation7 + $0x620] sm:$0xf0] }
 0x110   :  { %v1170_v18 = vunpack.c.l.bf16 %v1156_v12  ;;  %v1171_v19 = vunpack.c.h.bf16 %v1156_v12  ;;  %v9226_v43 = vld [vmem:[#allocation7 + $0x984] sm:$0xf]  ;;  %v7263_v49 = vor.u32 %v9114_v37, %v7260_v40 }
 0x111   :  { %4474 = vmatpush.bf16.msra.mxu2 %v7039_v20  ;;  %v7708_v46 = vld [vmem:[#allocation7 + $0x9a0] sm:$0xf0]  ;;  %4488 = vmatpush.bf16.msra.mxu3 %v7295_v32 }
 0x112   :  { %v1186_v29 = vmul.f32 0.010009766, %v1170_v18  ;;  %v1187_v30 = vmul.f32 0.010009766, %v1171_v19  ;;  %v9290_v47 = vld [vmem:[#allocation7 + $0xb84] sm:$0xf]  ;;  %v7711_v52 = vor.u32 %v9226_v43, %v7708_v46 }
 0x113   :  { %v7964_v48 = vld [vmem:[#allocation7 + $0xba0] sm:$0xf0] }
 0x114   :  { %v1226_v38 = vmax.f32 %v1170_v18, %v1186_v29  ;;  %v1227_v39 = vmax.f32 %v1171_v19, %v1187_v30  ;;  %v7967_v53 = vor.u32 %v9290_v47, %v7964_v48  ;;  %v9218_v54 = vld [vmem:[#allocation7 + $0x944] sm:$0xf] }
 0x115   :  { %v7676_v55 = vld [vmem:[#allocation7 + $0x960] sm:$0xf0]  ;;  %4475 = vmatpush.bf16.msra.mxu2 %v7007_v24  ;;  %4489 = vmatpush.bf16.msra.mxu3 %v7263_v49 }
 0x116   :  { %v9810_v44 = vpack.c.bf16 %v1226_v38, %v1218_v22  ;;  %v9812_v45 = vpack.c.bf16 %v1227_v39, %v1219_v27  ;;  %v9282_v23 = vld [vmem:[#allocation7 + $0xb44] sm:$0xf]  ;;  %v7679_v58 = vor.u32 %v9218_v54, %v7676_v55 }
 0x117   :  { %v7932_v56 = vld [vmem:[#allocation7 + $0xb60] sm:$0xf0] }
 0x118   :  { %4392 = vmatmul.bf16.vlgmr.msrb.gmra.mxu0 %v9810_v44  ;;  %4406 = vmatmul.bf16.vlgmr.msrb.gmra.mxu1 %v9812_v45  ;;  %v7935_v59 = vor.u32 %v9282_v23, %v7932_v56  ;;  %v9210_v60 = vld [vmem:[#allocation7 + $0x904] sm:$0xf] }
 0x119   :  { %4496 = vmatpush.bf16.msrb.mxu0 %v7743_v41  ;;  %4510 = vmatpush.bf16.msrb.mxu1 %v7999_v42  ;;  %v7644_v62 = vld [vmem:[#allocation7 + $0x920] sm:$0xf0] }
 0x11a   :  { %v9274_v63 = vld [vmem:[#allocation7 + $0xb04] sm:$0xf]  ;;  %v7647_v8 = vor.u32 %v9210_v60, %v7644_v62  ;;  %v8983_v62 = vld [vmem:[#allocation7 + $0x1e4] sm:$0xf0] }
 0x11b   :  { %v1103_v51 = vpop.f32.mrf.mxu0  ;;  %v7900_v1 = vld [vmem:[#allocation7 + $0xb20] sm:$0xf0] }
 0x11c   :  { %v1104_v61 = vadd.f32 %v1103_v51, %v266_v50  ;;  %v7903_v9 = vor.u32 %v9274_v63, %v7900_v1  ;;  %v9202_v10 = vld [vmem:[#allocation7 + $0x8c4] sm:$0xf]  ;;  %v6978_v63 = vld [vmem:[#allocation7 + $0x3c8] sm:$0xf] }
 0x11d   :  { %4497 = vmatpush.bf16.msrb.mxu0 %v7711_v52  ;;  %4511 = vmatpush.bf16.msrb.mxu1 %v7967_v53  ;;  %v1117_v2 = vpop.f32.mrf.mxu1  ;;  %v7612_v11 = vld [vmem:[#allocation7 + $0x8e0] sm:$0xf0]  ;;  %v9047_v1 = vld [vmem:[#allocation7 + $0x3e4] sm:$0xf0] }
 0x11e   :  { %v1118_v0 = vadd.f32 %v1117_v2, %v1104_v61  ;;  %v9266_v12 = vld [vmem:[#allocation7 + $0xac4] sm:$0xf]  ;;  %v7615_v15 = vor.u32 %v9202_v10, %v7612_v11 }
 0x11f   :  { %v7868_v13 = vld [vmem:[#allocation7 + $0xae0] sm:$0xf0] }
 0x120   :  { %v7871_v17 = vor.u32 %v9266_v12, %v7868_v13  ;;  %v9194_v18 = vld [vmem:[#allocation7 + $0x884] sm:$0xf]  ;;  %v6979_v13 = vor.u32 %v9047_v1, %v6978_v63 }
 0x121   :  { %v1131_v6 = vpop.f32.mrf.mxu2  ;;  %4498 = vmatpush.bf16.msrb.mxu0 %v7679_v58  ;;  %4512 = vmatpush.bf16.msrb.mxu1 %v7935_v59  ;;  %v7580_v21 = vld [vmem:[#allocation7 + $0x8a0] sm:$0xf0]  ;;  %v6722_v59 = vld [vmem:[#allocation7 + $0x1c8] sm:$0xf] }
 0x122   :  { %v1132_v7 = vadd.f32 %v1131_v6, %v267_v57  ;;  %v9258_v22 = vld [vmem:[#allocation7 + $0xa84] sm:$0xf]  ;;  %v7583_v31 = vor.u32 %v9194_v18, %v7580_v21  ;;  %v6723_v12 = vor.u32 %v8983_v62, %v6722_v59  ;;  %v8975_v18 = vld [vmem:[#allocation7 + $0x1a4] sm:$0xf0] }
 0x123   :  { %v1145_v5 = vpop.f32.mrf.mxu3  ;;  %v1105_v14 = vpop.f32.mrf.mxu0  ;;  %v7836_v25 = vld [vmem:[#allocation7 + $0xaa0] sm:$0xf0]  ;;  %v6850_v59 = vld [vmem:[#allocation7 + $0x2c8] sm:$0xf] }
 0x124   :  { %v1146_v16 = vadd.f32 %v1145_v5, %v1132_v7  ;;  %v1106_v20 = vadd.f32 %v1105_v14, %v266_v50  ;;  %v7839_v28 = vor.u32 %v9258_v22, %v7836_v25  ;;  %v9186_v32 = vld [vmem:[#allocation7 + $0x844] sm:$0xf] }
 0x125   :  { %4499 = vmatpush.bf16.msrb.mxu0 %v7647_v8  ;;  %4513 = vmatpush.bf16.msrb.mxu1 %v7903_v9  ;;  %v1119_v29 = vpop.f32.mrf.mxu1  ;;  %v7548_v39 = vld [vmem:[#allocation7 + $0x860] sm:$0xf0] }
 0x126   :  { %v1153_v19 = vpack.c.bf16 %v1146_v16, %v1118_v0  ;;  %v1120_v37 = vadd.f32 %v1119_v29, %v1106_v20  ;;  %v9250_v40 = vld [vmem:[#allocation7 + $0xa44] sm:$0xf]  ;;  %v7551_v43 = vor.u32 %v9186_v32, %v7548_v39  ;;  %v9039_v20 = vld [vmem:[#allocation7 + $0x3a4] sm:$0xf0] }
 0x127   :  { %v7804_v41 = vld [vmem:[#allocation7 + $0xa60] sm:$0xf0]  ;;  %v8967_v32 = vld [vmem:[#allocation7 + $0x164] sm:$0xf0] }
 0x128   :  { %4448 = vmatmul.bf16.vlgmr.msra.gmra.mxu0 %v9790_v35  ;;  %4462 = vmatmul.bf16.vlgmr.msra.gmra.mxu1 %v9792_v36  ;;  %v1164_v33 = vunpack.c.l.bf16 %v1153_v19  ;;  %v1165_v34 = vunpack.c.h.bf16 %v1153_v19  ;;  %v7807_v46 = vor.u32 %v9250_v40, %v7804_v41  ;;  %v9178_v47 = vld [vmem:[#allocation7 + $0x804] sm:$0xf]  ;;  %v6946_v19 = vld [vmem:[#allocation7 + $0x388] sm:$0xf] }
 0x129   :  { %v1133_v26 = vpop.f32.mrf.mxu2  ;;  %4500 = vmatpush.bf16.msrb.mxu0 %v7615_v15  ;;  %4514 = vmatpush.bf16.msrb.mxu1 %v7871_v17  ;;  %v7516_v48 = vld [vmem:[#allocation7 + $0x820] sm:$0xf0]  ;;  %v6690_v17 = vld [vmem:[#allocation7 + $0x188] sm:$0xf]  ;;  %v6947_v29 = vor.u32 %v9039_v20, %v6946_v19 }
 0x12a   :  { %v1134_v27 = vadd.f32 %v1133_v26, %v267_v57  ;;  %v1180_v24 = vmul.f32 0.010009766, %v1164_v33  ;;  %v1181_v49 = vmul.f32 0.010009766, %v1165_v34  ;;  %v9242_v52 = vld [vmem:[#allocation7 + $0xa04] sm:$0xf]  ;;  %v7519_v60 = vor.u32 %v9178_v47, %v7516_v48  ;;  %v6626_v47 = vld [vmem:[#allocation7 + $0x108] sm:$0xf] }
 0x12b   :  { %v1147_v30 = vpop.f32.mrf.mxu3  ;;  %v7772_v53 = vld [vmem:[#allocation7 + $0xa20] sm:$0xf0]  ;;  %v8959_v48 = vld [vmem:[#allocation7 + $0x124] sm:$0xf0] }
 0x12c   :  { %v1148_v38 = vadd.f32 %v1147_v30, %v1134_v27  ;;  %v9362_v54 = vld [vmem:[#allocation7 + $0xdc4] sm:$0xf]  ;;  %v7775_v61 = vor.u32 %v9242_v52, %v7772_v53  ;;  %v1220_v2 = vmax.f32 %v1164_v33, %v1180_v24  ;;  %v1221_v6 = vmax.f32 %v1165_v34, %v1181_v49  ;;  %v6914_v33 = vld [vmem:[#allocation7 + $0x348] sm:$0xf] }
 0x12d   :  { %4501 = vmatpush.bf16.msrb.mxu0 %v7583_v31  ;;  %4515 = vmatpush.bf16.msrb.mxu1 %v7839_v28  ;;  %v8252_v55 = vld [vmem:[#allocation7 + $0xde0] sm:$0xf0]  ;;  %v6691_v27 = vor.u32 %v8975_v18, %v6690_v17  ;;  %v6658_v28 = vld [vmem:[#allocation7 + $0x148] sm:$0xf] }
 0x12e   :  { %v1157_v42 = vpack.c.bf16 %v1148_v38, %v1120_v37  ;;  %v9426_v23 = vld [vmem:[#allocation7 + $0xfc4] sm:$0xf]  ;;  %v8255_v8 = vor.u32 %v9362_v54, %v8252_v55  ;;  %v9031_v34 = vld [vmem:[#allocation7 + $0x364] sm:$0xf0]  ;;  %v6659_v41 = vor.u32 %v8967_v32, %v6658_v28  ;;  %v6627_v54 = vor.u32 %v8959_v48, %v6626_v47 }
 0x12f   :  { %v8508_v58 = vld [vmem:[#allocation7 + $0xfe0] sm:$0xf0]  ;;  %v6882_v24 = vld [vmem:[#allocation7 + $0x308] sm:$0xf] }
 0x130   :  { %v1172_v50 = vunpack.c.l.bf16 %v1157_v42  ;;  %v1173_v51 = vunpack.c.h.bf16 %v1157_v42  ;;  %v8511_v9 = vor.u32 %v9426_v23, %v8508_v58  ;;  %v9354_v10 = vld [vmem:[#allocation7 + $0xd84] sm:$0xf]  ;;  %v6915_v42 = vor.u32 %v9031_v34, %v6914_v33  ;;  %v9023_v49 = vld [vmem:[#allocation7 + $0x324] sm:$0xf0] }
 0x131   :  { %4502 = vmatpush.bf16.msrb.mxu0 %v7551_v43  ;;  %4516 = vmatpush.bf16.msrb.mxu1 %v7807_v46  ;;  %v8220_v0 = vld [vmem:[#allocation7 + $0xda0] sm:$0xf0]  ;;  %v6883_v55 = vor.u32 %v9023_v49, %v6882_v24  ;;  %v8951_v58 = vld [vmem:[#allocation7 + $0xe4] sm:$0xf0] }
 0x132   :  { %v1188_v56 = vmul.f32 0.010009766, %v1172_v50  ;;  %v1189_v57 = vmul.f32 0.010009766, %v1173_v51  ;;  %v9418_v14 = vld [vmem:[#allocation7 + $0xf84] sm:$0xf]  ;;  %v8223_v21 = vor.u32 %v9354_v10, %v8220_v0  ;;  %v6818_v10 = vld [vmem:[#allocation7 + $0x288] sm:$0xf] }
 0x133   :  { %v8476_v15 = vld [vmem:[#allocation7 + $0xfa0] sm:$0xf0]  ;;  %v9007_v0 = vld [vmem:[#allocation7 + $0x2a4] sm:$0xf0] }
 0x134   :  { %v1228_v7 = vmax.f32 %v1172_v50, %v1188_v56  ;;  %v1229_v5 = vmax.f32 %v1173_v51, %v1189_v57  ;;  %v8479_v22 = vor.u32 %v9418_v14, %v8476_v15  ;;  %v9346_v25 = vld [vmem:[#allocation7 + $0xd44] sm:$0xf]  ;;  %v6594_v57 = vld [vmem:[#allocation7 + $0xc8] sm:$0xf]  ;;  %v6819_v18 = vor.u32 %v9007_v0, %v6818_v10 }
 0x135   :  { %4503 = vmatpush.bf16.msrb.mxu0 %v7519_v60  ;;  %4517 = vmatpush.bf16.msrb.mxu1 %v7775_v61  ;;  %v8188_v26 = vld [vmem:[#allocation7 + $0xd60] sm:$0xf0]  ;;  %v9015_v60 = vld [vmem:[#allocation7 + $0x2e4] sm:$0xf0] }
 0x136   :  { %v9820_v16 = vpack.c.bf16 %v1228_v7, %v1220_v2  ;;  %v9822_v11 = vpack.c.bf16 %v1229_v5, %v1221_v6  ;;  %v9410_v30 = vld [vmem:[#allocation7 + $0xf44] sm:$0xf]  ;;  %v8191_v37 = vor.u32 %v9346_v25, %v8188_v26  ;;  %v6595_v2 = vor.u32 %v8951_v58, %v6594_v57  ;;  %v6786_v25 = vld [vmem:[#allocation7 + $0x248] sm:$0xf] }
 0x137   :  { %v8444_v31 = vld [vmem:[#allocation7 + $0xf60] sm:$0xf0]  ;;  %v6851_v6 = vor.u32 %v9015_v60, %v6850_v59  ;;  %v8999_v26 = vld [vmem:[#allocation7 + $0x264] sm:$0xf0] }
 0x138   :  { %4420 = vmatmul.bf16.vlgmr.msrb.gmra.mxu2 %v9820_v16  ;;  %4434 = vmatmul.bf16.vlgmr.msrb.gmra.mxu3 %v9822_v11  ;;  %v8447_v38 = vor.u32 %v9410_v30, %v8444_v31  ;;  %v9338_v39 = vld [vmem:[#allocation7 + $0xd04] sm:$0xf]  ;;  %v6787_v34 = vor.u32 %v8999_v26, %v6786_v25  ;;  %v7746_v47 = vld [vmem:[#allocation7 + $0x9c8] sm:$0xf] }
 0x139   :  { %4524 = vmatpush.bf16.msrb.mxu2 %v8255_v8  ;;  %4538 = vmatpush.bf16.msrb.mxu3 %v8511_v9  ;;  %v8156_v40 = vld [vmem:[#allocation7 + $0xd20] sm:$0xf0]  ;;  %v6562_v8 = vld [vmem:[#allocation7 + $0x88] sm:$0xf] }
 0x13a   :  { %4552 = vmatpush.bf16.msra.mxu0 %v6723_v12  ;;  %4566 = vmatpush.bf16.msra.mxu1 %v6979_v13  ;;  %v9402_v43 = vld [vmem:[#allocation7 + $0xf04] sm:$0xf]  ;;  %v8159_v50 = vor.u32 %v9338_v39, %v8156_v40  ;;  %v8943_v9 = vld [vmem:[#allocation7 + $0xa4] sm:$0xf0] }
 0x13b   :  { %4504 = vmatmul.bf16.vlgmr.msrb.gmra.mxu0 %v9810_v44  ;;  %4518 = vmatmul.bf16.vlgmr.msrb.gmra.mxu1 %v9812_v45  ;;  %v8412_v46 = vld [vmem:[#allocation7 + $0xf20] sm:$0xf0]  ;;  %v6563_v17 = vor.u32 %v8943_v9, %v6562_v8  ;;  %v6754_v39 = vld [vmem:[#allocation7 + $0x208] sm:$0xf] }
 0x13c   :  { %v8415_v51 = vor.u32 %v9402_v43, %v8412_v46  ;;  %v9330_v52 = vld [vmem:[#allocation7 + $0xcc4] sm:$0xf]  ;;  %v8991_v40 = vld [vmem:[#allocation7 + $0x224] sm:$0xf0] }
 0x13d   :  { %4525 = vmatpush.bf16.msrb.mxu2 %v8223_v21  ;;  %4539 = vmatpush.bf16.msrb.mxu3 %v8479_v22  ;;  %v8124_v53 = vld [vmem:[#allocation7 + $0xce0] sm:$0xf0]  ;;  %v6530_v21 = vld [vmem:[#allocation7 + $0x48] sm:$0xf] }
 0x13e   :  { %4553 = vmatpush.bf16.msra.mxu0 %v6691_v27  ;;  %4567 = vmatpush.bf16.msra.mxu1 %v6947_v29  ;;  %v9394_v23 = vld [vmem:[#allocation7 + $0xec4] sm:$0xf]  ;;  %v8127_v61 = vor.u32 %v9330_v52, %v8124_v53  ;;  %v8935_v22 = vld [vmem:[#allocation7 + $0x64] sm:$0xf0]  ;;  %v6755_v53 = vor.u32 %v8991_v40, %v6754_v39 }
 0x13f   :  { %v8380_v56 = vld [vmem:[#allocation7 + $0xee0] sm:$0xf0]  ;;  %v6531_v33 = vor.u32 %v8935_v22, %v6530_v21  ;;  %v7490_v43 = vld [vmem:[#allocation7 + $0x7c8] sm:$0xf] }
 0x140   :  { %v8383_v62 = vor.u32 %v9394_v23, %v8380_v56  ;;  %v9322_v63 = vld [vmem:[#allocation7 + $0xc84] sm:$0xf]  ;;  %v9175_v46 = vld [vmem:[#allocation7 + $0x7e4] sm:$0xf0] }
 0x141   :  { %4526 = vmatpush.bf16.msrb.mxu2 %v8191_v37  ;;  %4540 = vmatpush.bf16.msrb.mxu3 %v8447_v38  ;;  %v8092_v1 = vld [vmem:[#allocation7 + $0xca0] sm:$0xf0]  ;;  %v6498_v37 = vld [vmem:[#allocation7 + $0x8] sm:$0xf] }
 0x142   :  { %4554 = vmatpush.bf16.msra.mxu0 %v6659_v41  ;;  %4568 = vmatpush.bf16.msra.mxu1 %v6915_v42  ;;  %v9386_v7 = vld [vmem:[#allocation7 + $0xe84] sm:$0xf]  ;;  %v8095_v12 = vor.u32 %v9322_v63, %v8092_v1  ;;  %v8927_v38 = vld [vmem:[#allocation7 + $0x24] sm:$0xf0] }
 0x143   :  { %v8348_v5 = vld [vmem:[#allocation7 + $0xea0] sm:$0xf0]  ;;  %v7234_v41 = vld [vmem:[#allocation7 + $0x5c8] sm:$0xf]  ;;  %v6499_v52 = vor.u32 %v8927_v38, %v6498_v37 }
 0x144   :  { %v8351_v13 = vor.u32 %v9386_v7, %v8348_v5  ;;  %v9314_v14 = vld [vmem:[#allocation7 + $0xc44] sm:$0xf]  ;;  %v9111_v42 = vld [vmem:[#allocation7 + $0x5e4] sm:$0xf0] }
 0x145   :  { %4527 = vmatpush.bf16.msrb.mxu2 %v8159_v50  ;;  %4541 = vmatpush.bf16.msrb.mxu3 %v8415_v51  ;;  %v8060_v15 = vld [vmem:[#allocation7 + $0xc60] sm:$0xf0]  ;;  %v9239_v49 = vld [vmem:[#allocation7 + $0x9e4] sm:$0xf0] }
 0x146   :  { %4555 = vmatpush.bf16.msra.mxu0 %v6627_v54  ;;  %4569 = vmatpush.bf16.msra.mxu1 %v6883_v55  ;;  %v9378_v19 = vld [vmem:[#allocation7 + $0xe44] sm:$0xf]  ;;  %v8063_v29 = vor.u32 %v9314_v14, %v8060_v15  ;;  %v8002_v50 = vld [vmem:[#allocation7 + $0xbc8] sm:$0xf]  ;;  %v7235_v54 = vor.u32 %v9111_v42, %v7234_v41  ;;  %v7491_v55 = vor.u32 %v9175_v46, %v7490_v43 }
 0x147   :  { %v8316_v20 = vld [vmem:[#allocation7 + $0xe60] sm:$0xf0]  ;;  %v9303_v51 = vld [vmem:[#allocation7 + $0xbe4] sm:$0xf0]  ;;  %v7747_v57 = vor.u32 %v9239_v49, %v7746_v47 }
 0x148   :  { %4476 = vmatmul.bf16.vlgmr.msra.gmra.mxu2 %v9802_v3  ;;  %4490 = vmatmul.bf16.vlgmr.msra.gmra.mxu3 %v9804_v4  ;;  %v9306_v27 = vld [vmem:[#allocation7 + $0xc04] sm:$0xf]  ;;  %v8319_v30 = vor.u32 %v9378_v19, %v8316_v20  ;;  %v7202_v23 = vld [vmem:[#allocation7 + $0x588] sm:$0xf]  ;;  %v8003_v58 = vor.u32 %v9303_v51, %v8002_v50 }
 0x149   :  { %4528 = vmatpush.bf16.msrb.mxu2 %v8127_v61  ;;  %4542 = vmatpush.bf16.msrb.mxu3 %v8383_v62  ;;  %v8028_v31 = vld [vmem:[#allocation7 + $0xc20] sm:$0xf0]  ;;  %v9103_v56 = vld [vmem:[#allocation7 + $0x5a4] sm:$0xf0] }
 0x14a   :  { %4556 = vmatpush.bf16.msra.mxu0 %v6595_v2  ;;  %4570 = vmatpush.bf16.msra.mxu1 %v6851_v6  ;;  %v9370_v28 = vld [vmem:[#allocation7 + $0xe04] sm:$0xf]  ;;  %v8031_v48 = vor.u32 %v9306_v27, %v8028_v31  ;;  %v7458_v59 = vld [vmem:[#allocation7 + $0x788] sm:$0xf]  ;;  %v7203_v2 = vor.u32 %v9103_v56, %v7202_v23 }
 0x14b   :  { %v8284_v32 = vld [vmem:[#allocation7 + $0xe20] sm:$0xf0]  ;;  %v9167_v60 = vld [vmem:[#allocation7 + $0x7a4] sm:$0xf0] }
 0x14c   :  { %v8287_v24 = vor.u32 %v9370_v28, %v8284_v32  ;;  %v7714_v61 = vld [vmem:[#allocation7 + $0x988] sm:$0xf]  ;;  %v7459_v6 = vor.u32 %v9167_v60, %v7458_v59 }
 0x14d   :  { %4529 = vmatpush.bf16.msrb.mxu2 %v8095_v12  ;;  %4543 = vmatpush.bf16.msrb.mxu3 %v8351_v13  ;;  %v9231_v62 = vld [vmem:[#allocation7 + $0x9a4] sm:$0xf0] }
 0x14e   :  { %4557 = vmatpush.bf16.msra.mxu0 %v6563_v17  ;;  %4571 = vmatpush.bf16.msra.mxu1 %v6819_v18  ;;  %v7970_v63 = vld [vmem:[#allocation7 + $0xb88] sm:$0xf]  ;;  %v7715_v8 = vor.u32 %v9231_v62, %v7714_v61 }
 0x14f   :  { %v9295_v1 = vld [vmem:[#allocation7 + $0xba4] sm:$0xf0] }
 0x150   :  { %v7170_v7 = vld [vmem:[#allocation7 + $0x548] sm:$0xf]  ;;  %v7971_v9 = vor.u32 %v9295_v1, %v7970_v63 }
 0x151   :  { %4530 = vmatpush.bf16.msrb.mxu2 %v8063_v29  ;;  %4544 = vmatpush.bf16.msrb.mxu3 %v8319_v30  ;;  %v9095_v5 = vld [vmem:[#allocation7 + $0x564] sm:$0xf0]  ;;  %v9834_v29 = vld [vmem:[#allocation8] sm:$0xff] }
 0x152   :  { %4558 = vmatpush.bf16.msra.mxu0 %v6531_v33  ;;  %4572 = vmatpush.bf16.msra.mxu1 %v6787_v34  ;;  %v7426_v10 = vld [vmem:[#allocation7 + $0x748] sm:$0xf]  ;;  %v7171_v17 = vor.u32 %v9095_v5, %v7170_v7  ;;  %v10137_v34 = vperm.slane %v9834_v29, 0 }
 0x153   :  { %v9159_v0 = vld [vmem:[#allocation7 + $0x764] sm:$0xf0] }
 0x154   :  { %v7682_v12 = vld [vmem:[#allocation7 + $0x948] sm:$0xf]  ;;  %v7427_v18 = vor.u32 %v9159_v0, %v7426_v10 }
 0x155   :  { %4531 = vmatpush.bf16.msrb.mxu2 %v8031_v48  ;;  %4545 = vmatpush.bf16.msrb.mxu3 %v8287_v24  ;;  %v9223_v13 = vld [vmem:[#allocation7 + $0x964] sm:$0xf0] }
 0x156   :  { %4559 = vmatpush.bf16.msra.mxu0 %v6499_v52  ;;  %4573 = vmatpush.bf16.msra.mxu1 %v6755_v53  ;;  %v7938_v14 = vld [vmem:[#allocation7 + $0xb48] sm:$0xf]  ;;  %v7683_v22 = vor.u32 %v9223_v13, %v7682_v12 }
 0x157   :  { %v9287_v15 = vld [vmem:[#allocation7 + $0xb64] sm:$0xf0] }
 0x158   :  { %4532 = vmatmul.bf16.vlgmr.msrb.gmra.mxu2 %v9820_v16  ;;  %4546 = vmatmul.bf16.vlgmr.msrb.gmra.mxu3 %v9822_v11  ;;  %v7138_v19 = vld [vmem:[#allocation7 + $0x508] sm:$0xf]  ;;  %v7939_v25 = vor.u32 %v9287_v15, %v7938_v14 }
 0x159   :  { %4580 = vmatpush.bf16.msra.mxu2 %v7235_v54  ;;  %4594 = vmatpush.bf16.msra.mxu3 %v7491_v55  ;;  %v9087_v20 = vld [vmem:[#allocation7 + $0x524] sm:$0xf0] }
 0x15a   :  { %4608 = vmatpush.bf16.msrb.mxu0 %v7747_v57  ;;  %4622 = vmatpush.bf16.msrb.mxu1 %v8003_v58  ;;  %v7394_v21 = vld [vmem:[#allocation7 + $0x708] sm:$0xf]  ;;  %v7139_v32 = vor.u32 %v9087_v20, %v7138_v19 }
 0x15b   :  { %4560 = vmatmul.bf16.vlgmr.msra.gmra.mxu0 %v9790_v35  ;;  %4574 = vmatmul.bf16.vlgmr.msra.gmra.mxu1 %v9792_v36  ;;  %v9151_v26 = vld [vmem:[#allocation7 + $0x724] sm:$0xf0] }
 0x15c   :  { %v7650_v27 = vld [vmem:[#allocation7 + $0x908] sm:$0xf]  ;;  %v7395_v33 = vor.u32 %v9151_v26, %v7394_v21 }
 0x15d   :  { %4581 = vmatpush.bf16.msra.mxu2 %v7203_v2  ;;  %4595 = vmatpush.bf16.msra.mxu3 %v7459_v6  ;;  %v9215_v30 = vld [vmem:[#allocation7 + $0x924] sm:$0xf0] }
 0x15e   :  { %4609 = vmatpush.bf16.msrb.mxu0 %v7715_v8  ;;  %4623 = vmatpush.bf16.msrb.mxu1 %v7971_v9  ;;  %v7906_v31 = vld [vmem:[#allocation7 + $0xb08] sm:$0xf]  ;;  %v7651_v39 = vor.u32 %v9215_v30, %v7650_v27 }
 0x15f   :  { %v9279_v28 = vld [vmem:[#allocation7 + $0xb24] sm:$0xf0]  ;;  %v4337_v24 = vpop.f32.mrf.mxu0  ;;  %v4351_v58 = vpop.f32.mrf.mxu1 }
 0x160   :  { %v7106_v37 = vld [vmem:[#allocation7 + $0x4c8] sm:$0xf]  ;;  %v7907_v40 = vor.u32 %v9279_v28, %v7906_v31  ;;  %v4338_v53 = vadd.f32 %v4337_v24, %v10137_v34  ;;  %v7468_v34 = vld [vmem:[#allocation7 + $0x7b0] sm:$0xf0] }
 0x161   :  { %4582 = vmatpush.bf16.msra.mxu2 %v7171_v17  ;;  %4596 = vmatpush.bf16.msra.mxu3 %v7427_v18  ;;  %v9079_v38 = vld [vmem:[#allocation7 + $0x4e4] sm:$0xf0] }
 0x162   :  { %4610 = vmatpush.bf16.msrb.mxu0 %v7683_v22  ;;  %4624 = vmatpush.bf16.msrb.mxu1 %v7939_v25  ;;  %v7362_v41 = vld [vmem:[#allocation7 + $0x6c8] sm:$0xf]  ;;  %v7107_v49 = vor.u32 %v9079_v38, %v7106_v37  ;;  %v9839_v62 = vadd.f32 %v4351_v58, %v4338_v53  ;;  %v8979_v37 = vld [vmem:[#allocation7 + $0x1cc] sm:$0xf] }
 0x163   :  { %v9143_v42 = vld [vmem:[#allocation7 + $0x6e4] sm:$0xf0] }
 0x164   :  { %v7618_v43 = vld [vmem:[#allocation7 + $0x8c8] sm:$0xf]  ;;  %v7363_v50 = vor.u32 %v9143_v42, %v7362_v41  ;;  %v9043_v41 = vld [vmem:[#allocation7 + $0x3cc] sm:$0xf] }
 0x165   :  { %v9207_v46 = vld [vmem:[#allocation7 + $0x8e4] sm:$0xf0]  ;;  %4583 = vmatpush.bf16.msra.mxu2 %v7139_v32  ;;  %4597 = vmatpush.bf16.msra.mxu3 %v7395_v33  ;;  %v6980_v42 = vld [vmem:[#allocation7 + $0x3e8] sm:$0xf0] }
 0x166   :  { %v7874_v47 = vld [vmem:[#allocation7 + $0xac8] sm:$0xf]  ;;  %4611 = vmatpush.bf16.msrb.mxu0 %v7651_v39  ;;  %4625 = vmatpush.bf16.msrb.mxu1 %v7907_v40  ;;  %v7619_v54 = vor.u32 %v9207_v46, %v7618_v43  ;;  %v6724_v40 = vld [vmem:[#allocation7 + $0x1e8] sm:$0xf0] }
 0x167   :  { %v9271_v48 = vld [vmem:[#allocation7 + $0xae4] sm:$0xf0] }
 0x168   :  { %v7074_v51 = vld [vmem:[#allocation7 + $0x488] sm:$0xf]  ;;  %v7875_v55 = vor.u32 %v9271_v48, %v7874_v47 }
 0x169   :  { %v9071_v52 = vld [vmem:[#allocation7 + $0x4a4] sm:$0xf0]  ;;  %4584 = vmatpush.bf16.msra.mxu2 %v7107_v49  ;;  %4598 = vmatpush.bf16.msra.mxu3 %v7363_v50  ;;  %v6727_v50 = vor.u32 %v8979_v37, %v6724_v40  ;;  %v6852_v40 = vld [vmem:[#allocation7 + $0x2e8] sm:$0xf0] }
 0x16a   :  { %v7330_v23 = vld [vmem:[#allocation7 + $0x688] sm:$0xf]  ;;  %v7075_v63 = vor.u32 %v9071_v52, %v7074_v51  ;;  %4612 = vmatpush.bf16.msrb.mxu0 %v7619_v54  ;;  %4626 = vmatpush.bf16.msrb.mxu1 %v7875_v55  ;;  %v6983_v51 = vor.u32 %v9043_v41, %v6980_v42  ;;  %v8971_v54 = vld [vmem:[#allocation7 + $0x18c] sm:$0xf] }
 0x16b   :  { %v9135_v56 = vld [vmem:[#allocation7 + $0x6a4] sm:$0xf0]  ;;  %v6692_v55 = vld [vmem:[#allocation7 + $0x1a8] sm:$0xf0] }
 0x16c   :  { %v7586_v57 = vld [vmem:[#allocation7 + $0x888] sm:$0xf]  ;;  %v7331_v1 = vor.u32 %v9135_v56, %v7330_v23  ;;  %v9035_v23 = vld [vmem:[#allocation7 + $0x38c] sm:$0xf] }
 0x16d   :  { %v9199_v59 = vld [vmem:[#allocation7 + $0x8a4] sm:$0xf0]  ;;  %4585 = vmatpush.bf16.msra.mxu2 %v7075_v63  ;;  %v6948_v56 = vld [vmem:[#allocation7 + $0x3a8] sm:$0xf0] }
 0x16e   :  { %v7842_v60 = vld [vmem:[#allocation7 + $0xa88] sm:$0xf]  ;;  %v7587_v7 = vor.u32 %v9199_v59, %v7586_v57  ;;  %4599 = vmatpush.bf16.msra.mxu3 %v7331_v1  ;;  %v6951_v63 = vor.u32 %v9035_v23, %v6948_v56  ;;  %v6820_v23 = vld [vmem:[#allocation7 + $0x2a8] sm:$0xf0] }
 0x16f   :  { %v9263_v61 = vld [vmem:[#allocation7 + $0xaa4] sm:$0xf0] }
 0x170   :  { %v7042_v2 = vld [vmem:[#allocation7 + $0x448] sm:$0xf]  ;;  %v7843_v5 = vor.u32 %v9263_v61, %v7842_v60  ;;  %4613 = vmatpush.bf16.msrb.mxu0 %v7587_v7  ;;  %v6695_v61 = vor.u32 %v8971_v54, %v6692_v55  ;;  %v6660_v7 = vld [vmem:[#allocation7 + $0x168] sm:$0xf0] }
 0x171   :  { %v9063_v6 = vld [vmem:[#allocation7 + $0x464] sm:$0xf0]  ;;  %v6564_v54 = vld [vmem:[#allocation7 + $0xa8] sm:$0xf0] }
 0x172   :  { %v7298_v8 = vld [vmem:[#allocation7 + $0x648] sm:$0xf]  ;;  %v7043_v15 = vor.u32 %v9063_v6, %v7042_v2  ;;  %4627 = vmatpush.bf16.msrb.mxu1 %v7843_v5  ;;  %v8963_v6 = vld [vmem:[#allocation7 + $0x14c] sm:$0xf] }
 0x173   :  { %v9127_v9 = vld [vmem:[#allocation7 + $0x664] sm:$0xf0]  ;;  %v9027_v5 = vld [vmem:[#allocation7 + $0x34c] sm:$0xf] }
 0x174   :  { %v7554_v10 = vld [vmem:[#allocation7 + $0x848] sm:$0xf]  ;;  %v7299_v17 = vor.u32 %v9127_v9, %v7298_v8  ;;  %4586 = vmatpush.bf16.msra.mxu2 %v7043_v15  ;;  %v6916_v8 = vld [vmem:[#allocation7 + $0x368] sm:$0xf0] }
 0x175   :  { %v9191_v0 = vld [vmem:[#allocation7 + $0x864] sm:$0xf0]  ;;  %v9003_v55 = vld [vmem:[#allocation7 + $0x28c] sm:$0xf] }
 0x176   :  { %v7810_v12 = vld [vmem:[#allocation7 + $0xa48] sm:$0xf]  ;;  %v7555_v21 = vor.u32 %v9191_v0, %v7554_v10  ;;  %4600 = vmatpush.bf16.msra.mxu3 %v7299_v17 }
 0x177   :  { %v9255_v13 = vld [vmem:[#allocation7 + $0xa64] sm:$0xf0] }
 0x178   :  { %v7010_v14 = vld [vmem:[#allocation7 + $0x408] sm:$0xf]  ;;  %v7811_v22 = vor.u32 %v9255_v13, %v7810_v12  ;;  %4614 = vmatpush.bf16.msrb.mxu0 %v7555_v21  ;;  %v6663_v13 = vor.u32 %v8963_v6, %v6660_v7  ;;  %v6884_v21 = vld [vmem:[#allocation7 + $0x328] sm:$0xf0] }
 0x179   :  { %v9055_v18 = vld [vmem:[#allocation7 + $0x424] sm:$0xf0]  ;;  %v8995_v6 = vld [vmem:[#allocation7 + $0x24c] sm:$0xf] }
 0x17a   :  { %v7266_v19 = vld [vmem:[#allocation7 + $0x608] sm:$0xf]  ;;  %v7011_v38 = vor.u32 %v9055_v18, %v7010_v14  ;;  %4628 = vmatpush.bf16.msrb.mxu1 %v7811_v22  ;;  %v6919_v14 = vor.u32 %v9027_v5, %v6916_v8  ;;  %v8955_v18 = vld [vmem:[#allocation7 + $0x10c] sm:$0xf] }
 0x17b   :  { %v9119_v20 = vld [vmem:[#allocation7 + $0x624] sm:$0xf0]  ;;  %v4365_v37 = vpop.f32.mrf.mxu2  ;;  %v4379_v41 = vpop.f32.mrf.mxu3  ;;  %v6788_v7 = vld [vmem:[#allocation7 + $0x268] sm:$0xf0] }
 0x17c   :  { %v7522_v25 = vld [vmem:[#allocation7 + $0x808] sm:$0xf]  ;;  %v7267_v39 = vor.u32 %v9119_v20, %v7266_v19  ;;  %4587 = vmatpush.bf16.msra.mxu2 %v7011_v38  ;;  %v6628_v19 = vld [vmem:[#allocation7 + $0x128] sm:$0xf0]  ;;  %v4366_v42 = vadd.f32 %v4365_v37, %v9839_v62 }
 0x17d   :  { %v9183_v26 = vld [vmem:[#allocation7 + $0x824] sm:$0xf0]  ;;  %v9019_v20 = vld [vmem:[#allocation7 + $0x30c] sm:$0xf] }
 0x17e   :  { %v7778_v27 = vld [vmem:[#allocation7 + $0xa08] sm:$0xf]  ;;  %v7523_v43 = vor.u32 %v9183_v26, %v7522_v25  ;;  %4601 = vmatpush.bf16.msra.mxu3 %v7267_v39  ;;  %v6596_v38 = vld [vmem:[#allocation7 + $0xe8] sm:$0xf0] }
 0x17f   :  { %v9247_v30 = vld [vmem:[#allocation7 + $0xa24] sm:$0xf0]  ;;  %4588 = vmatmul.bf16.vlgmr.msra.gmra.mxu2 %v9802_v3  ;;  %v9011_v39 = vld [vmem:[#allocation7 + $0x2cc] sm:$0xf] }
 0x180   :  { %v8258_v31 = vld [vmem:[#allocation7 + $0xdc8] sm:$0xf]  ;;  %v7779_v46 = vor.u32 %v9247_v30, %v7778_v27  ;;  %4615 = vmatpush.bf16.msrb.mxu0 %v7523_v43  ;;  %v6631_v30 = vor.u32 %v8955_v18, %v6628_v19  ;;  %v8987_v18 = vld [vmem:[#allocation7 + $0x20c] sm:$0xf] }
 0x181   :  { %v9367_v28 = vld [vmem:[#allocation7 + $0xde4] sm:$0xf0]  ;;  %4602 = vmatmul.bf16.vlgmr.msra.gmra.mxu3 %v9804_v4  ;;  %v6756_v19 = vld [vmem:[#allocation7 + $0x228] sm:$0xf0] }
 0x182   :  { %v8514_v32 = vld [vmem:[#allocation7 + $0xfc8] sm:$0xf]  ;;  %v8259_v47 = vor.u32 %v9367_v28, %v8258_v31  ;;  %4629 = vmatpush.bf16.msrb.mxu1 %v7779_v46  ;;  %v6887_v31 = vor.u32 %v9019_v20, %v6884_v21  ;;  %v9107_v20 = vld [vmem:[#allocation7 + $0x5cc] sm:$0xf]  ;;  %v6759_v37 = vor.u32 %v8987_v18, %v6756_v19 }
 0x183   :  { %v9431_v33 = vld [vmem:[#allocation7 + $0xfe4] sm:$0xf0]  ;;  %4616 = vmatmul.bf16.vlgmr.msrb.gmra.mxu0 %v9810_v44  ;;  %v7236_v21 = vld [vmem:[#allocation7 + $0x5e8] sm:$0xf0] }
 0x184   :  { %v8515_v48 = vor.u32 %v9431_v33, %v8514_v32  ;;  %v8226_v24 = vld [vmem:[#allocation7 + $0xd88] sm:$0xf]  ;;  %4636 = vmatpush.bf16.msrb.mxu2 %v8259_v47  ;;  %4664 = vmatpush.bf16.msra.mxu0 %v6727_v50  ;;  %v8947_v33 = vld [vmem:[#allocation7 + $0xcc] sm:$0xf]  ;;  %v9846_v50 = vadd.f32 %v4379_v41, %v4366_v42 }
 0x185   :  { %v9359_v49 = vld [vmem:[#allocation7 + $0xda4] sm:$0xf0]  ;;  %4630 = vmatmul.bf16.vlgmr.msrb.gmra.mxu1 %v9812_v45  ;;  %v9099_v42 = vld [vmem:[#allocation7 + $0x58c] sm:$0xf] }
 0x186   :  { %v8482_v52 = vld [vmem:[#allocation7 + $0xf88] sm:$0xf]  ;;  %4650 = vmatpush.bf16.msrb.mxu3 %v8515_v48  ;;  %v8227_v57 = vor.u32 %v9359_v49, %v8226_v24  ;;  %4678 = vmatpush.bf16.msra.mxu1 %v6983_v51  ;;  %v6599_v24 = vor.u32 %v8947_v33, %v6596_v38  ;;  %v6855_v49 = vor.u32 %v9011_v39, %v6852_v40  ;;  %v9848_v38 = vpop.f32.mrf.mxu0  ;;  %v9850_v39 = vpop.f32.mrf.mxu1  ;;  %v9275_v18 = vld [vmem:[#allocation7 + $0xb0c] sm:$0xf] }
 0x187   :  { %v9423_v53 = vld [vmem:[#allocation7 + $0xfa4] sm:$0xf0]  ;;  %v7239_v40 = vor.u32 %v9107_v20, %v7236_v21  ;;  %v7908_v19 = vld [vmem:[#allocation7 + $0xb28] sm:$0xf0] }
 0x188   :  { %v8483_v58 = vor.u32 %v9423_v53, %v8482_v52  ;;  %v8194_v59 = vld [vmem:[#allocation7 + $0xd48] sm:$0xf]  ;;  %4637 = vmatpush.bf16.msrb.mxu2 %v8227_v57  ;;  %4665 = vmatpush.bf16.msra.mxu0 %v6695_v61  ;;  %v8939_v53 = vld [vmem:[#allocation7 + $0x8c] sm:$0xf] }
 0x189   :  { %v9351_v60 = vld [vmem:[#allocation7 + $0xd64] sm:$0xf0] }
 0x18a   :  { %v8450_v1 = vld [vmem:[#allocation7 + $0xf48] sm:$0xf]  ;;  %4651 = vmatpush.bf16.msrb.mxu3 %v8483_v58  ;;  %v8195_v9 = vor.u32 %v9351_v60, %v8194_v59  ;;  %4679 = vmatpush.bf16.msra.mxu1 %v6951_v63  ;;  %v6567_v59 = vor.u32 %v8939_v53, %v6564_v54  ;;  %v6823_v60 = vor.u32 %v9003_v55, %v6820_v23  ;;  %v7972_v53 = vld [vmem:[#allocation7 + $0xba8] sm:$0xf0] }
 0x18b   :  { %v9415_v2 = vld [vmem:[#allocation7 + $0xf64] sm:$0xf0]  ;;  %v9091_v23 = vld [vmem:[#allocation7 + $0x54c] sm:$0xf] }
 0x18c   :  { %v8451_v10 = vor.u32 %v9415_v2, %v8450_v1  ;;  %v8162_v0 = vld [vmem:[#allocation7 + $0xd08] sm:$0xf]  ;;  %4638 = vmatpush.bf16.msrb.mxu2 %v8195_v9  ;;  %4666 = vmatpush.bf16.msra.mxu0 %v6663_v13  ;;  %v8931_v1 = vld [vmem:[#allocation7 + $0x4c] sm:$0xf] }
 0x18d   :  { %v9343_v12 = vld [vmem:[#allocation7 + $0xd24] sm:$0xf0]  ;;  %v6532_v2 = vld [vmem:[#allocation7 + $0x68] sm:$0xf0] }
 0x18e   :  { %v8418_v15 = vld [vmem:[#allocation7 + $0xf08] sm:$0xf]  ;;  %4652 = vmatpush.bf16.msrb.mxu3 %v8451_v10  ;;  %v8163_v22 = vor.u32 %v9343_v12, %v8162_v0  ;;  %4680 = vmatpush.bf16.msra.mxu1 %v6919_v14  ;;  %v6535_v13 = vor.u32 %v8931_v1, %v6532_v2  ;;  %v6791_v14 = vor.u32 %v8995_v6, %v6788_v7  ;;  %v7940_v1 = vld [vmem:[#allocation7 + $0xb68] sm:$0xf0] }
 0x18f   :  { %v9407_v17 = vld [vmem:[#allocation7 + $0xf24] sm:$0xf0] }
 0x190   :  { %v8419_v25 = vor.u32 %v9407_v17, %v8418_v15  ;;  %v8130_v26 = vld [vmem:[#allocation7 + $0xcc8] sm:$0xf]  ;;  %4639 = vmatpush.bf16.msrb.mxu2 %v8163_v22  ;;  %4667 = vmatpush.bf16.msra.mxu0 %v6631_v30  ;;  %v8923_v15 = vld [vmem:[#allocation7 + $0xc] sm:$0xf] }
 0x191   :  { %v9335_v27 = vld [vmem:[#allocation7 + $0xce4] sm:$0xf0]  ;;  %v6500_v17 = vld [vmem:[#allocation7 + $0x28] sm:$0xf0] }
 0x192   :  { %v8386_v28 = vld [vmem:[#allocation7 + $0xec8] sm:$0xf]  ;;  %4653 = vmatpush.bf16.msrb.mxu3 %v8419_v25  ;;  %v8131_v43 = vor.u32 %v9335_v27, %v8130_v26  ;;  %4681 = vmatpush.bf16.msra.mxu1 %v6887_v31  ;;  %v9171_v22 = vld [vmem:[#allocation7 + $0x7cc] sm:$0xf]  ;;  %v6503_v33 = vor.u32 %v8923_v15, %v6500_v17 }
 0x193   :  { %v9399_v32 = vld [vmem:[#allocation7 + $0xee4] sm:$0xf0]  ;;  %v7492_v25 = vld [vmem:[#allocation7 + $0x7e8] sm:$0xf0] }
 0x194   :  { %v8387_v46 = vor.u32 %v9399_v32, %v8386_v28  ;;  %v8098_v47 = vld [vmem:[#allocation7 + $0xc88] sm:$0xf]  ;;  %4640 = vmatpush.bf16.msrb.mxu2 %v8131_v43  ;;  %4668 = vmatpush.bf16.msra.mxu0 %v6599_v24  ;;  %v9235_v26 = vld [vmem:[#allocation7 + $0x9cc] sm:$0xf]  ;;  %v7495_v41 = vor.u32 %v9171_v22, %v7492_v25 }
 0x195   :  { %v9327_v48 = vld [vmem:[#allocation7 + $0xca4] sm:$0xf0]  ;;  %v7748_v31 = vld [vmem:[#allocation7 + $0x9e8] sm:$0xf0]  ;;  %v4393_v7 = vpop.f32.mrf.mxu0 }
 0x196   :  { %v8354_v51 = vld [vmem:[#allocation7 + $0xe88] sm:$0xf]  ;;  %4654 = vmatpush.bf16.msrb.mxu3 %v8387_v46  ;;  %v8099_v62 = vor.u32 %v9327_v48, %v8098_v47  ;;  %4682 = vmatpush.bf16.msra.mxu1 %v6855_v49  ;;  %v9299_v28 = vld [vmem:[#allocation7 + $0xbcc] sm:$0xf]  ;;  %v7751_v46 = vor.u32 %v9235_v26, %v7748_v31 }
 0x197   :  { %v9391_v52 = vld [vmem:[#allocation7 + $0xea4] sm:$0xf0]  ;;  %v8004_v32 = vld [vmem:[#allocation7 + $0xbe8] sm:$0xf0] }
 0x198   :  { %v8355_v56 = vor.u32 %v9391_v52, %v8354_v51  ;;  %v8066_v57 = vld [vmem:[#allocation7 + $0xc48] sm:$0xf]  ;;  %4641 = vmatpush.bf16.msrb.mxu2 %v8099_v62  ;;  %4669 = vmatpush.bf16.msra.mxu0 %v6567_v59  ;;  %v7204_v43 = vld [vmem:[#allocation7 + $0x5a8] sm:$0xf0]  ;;  %v8007_v47 = vor.u32 %v9299_v28, %v8004_v32 }
 0x199   :  { %v9319_v58 = vld [vmem:[#allocation7 + $0xc64] sm:$0xf0]  ;;  %v9163_v48 = vld [vmem:[#allocation7 + $0x78c] sm:$0xf]  ;;  %v7207_v54 = vor.u32 %v9099_v42, %v7204_v43 }
 0x19a   :  { %v8322_v61 = vld [vmem:[#allocation7 + $0xe48] sm:$0xf]  ;;  %4655 = vmatpush.bf16.msrb.mxu3 %v8355_v56  ;;  %v8067_v8 = vor.u32 %v9319_v58, %v8066_v57  ;;  %4683 = vmatpush.bf16.msra.mxu1 %v6823_v60  ;;  %v7460_v24 = vld [vmem:[#allocation7 + $0x7a8] sm:$0xf0] }
 0x19b   :  { %v9383_v63 = vld [vmem:[#allocation7 + $0xe64] sm:$0xf0]  ;;  %v9227_v49 = vld [vmem:[#allocation7 + $0x98c] sm:$0xf]  ;;  %v7463_v55 = vor.u32 %v9163_v48, %v7460_v24 }
 0x19c   :  { %v8034_v5 = vld [vmem:[#allocation7 + $0xc08] sm:$0xf]  ;;  %v8323_v9 = vor.u32 %v9383_v63, %v8322_v61  ;;  %4642 = vmatpush.bf16.msrb.mxu2 %v8067_v8  ;;  %4670 = vmatpush.bf16.msra.mxu0 %v6535_v13  ;;  %v7716_v51 = vld [vmem:[#allocation7 + $0x9a8] sm:$0xf0] }
 0x19d   :  { %v9311_v10 = vld [vmem:[#allocation7 + $0xc24] sm:$0xf0]  ;;  %v9291_v52 = vld [vmem:[#allocation7 + $0xb8c] sm:$0xf]  ;;  %v7719_v56 = vor.u32 %v9227_v49, %v7716_v51  ;;  %v9859_v42 = vpop.f32.mrf.mxu0 }
 0x19e   :  { %v8290_v0 = vld [vmem:[#allocation7 + $0xe08] sm:$0xf]  ;;  %4656 = vmatpush.bf16.msrb.mxu3 %v8323_v9  ;;  %v8035_v27 = vor.u32 %v9311_v10, %v8034_v5  ;;  %4684 = vmatpush.bf16.msra.mxu1 %v6791_v14  ;;  %v7172_v62 = vld [vmem:[#allocation7 + $0x568] sm:$0xf0]  ;;  %v7975_v57 = vor.u32 %v9291_v52, %v7972_v53  ;;  %v4407_v5 = vpop.f32.mrf.mxu1 }
 0x19f   :  { %v9375_v12 = vld [vmem:[#allocation7 + $0xe24] sm:$0xf0]  ;;  %v9155_v58 = vld [vmem:[#allocation7 + $0x74c] sm:$0xf]  ;;  %v7175_v2 = vor.u32 %v9091_v23, %v7172_v62 }
 0x1a0   :  { %v8291_v30 = vor.u32 %v9375_v12, %v8290_v0  ;;  %4643 = vmatpush.bf16.msrb.mxu2 %v8035_v27  ;;  %4671 = vmatpush.bf16.msra.mxu0 %v6503_v33  ;;  %v7428_v59 = vld [vmem:[#allocation7 + $0x768] sm:$0xf0]  ;;  %v4394_v12 = vadd.f32 %v4393_v7, %v9846_v50 }
 0x1a1   :  { %v9219_v60 = vld [vmem:[#allocation7 + $0x94c] sm:$0xf]  ;;  %v7431_v6 = vor.u32 %v9155_v58, %v7428_v59 }
 0x1a2   :  { %4657 = vmatpush.bf16.msrb.mxu3 %v8291_v30  ;;  %4685 = vmatpush.bf16.msra.mxu1 %v6759_v37  ;;  %v7684_v61 = vld [vmem:[#allocation7 + $0x968] sm:$0xf0]  ;;  %v9857_v20 = vadd.f32 %v4407_v5, %v4394_v12  ;;  %v7911_v30 = vor.u32 %v9275_v18, %v7908_v19 }
 0x1a3   :  { %4644 = vmatmul.bf16.vlgmr.msrb.gmra.mxu2 %v9820_v16  ;;  %v9283_v63 = vld [vmem:[#allocation7 + $0xb4c] sm:$0xf]  ;;  %4672 = vmatmul.bf16.vlgmr.msra.gmra.mxu0 %v9790_v35  ;;  %v7687_v10 = vor.u32 %v9219_v60, %v7684_v61 }
 0x1a4   :  { %4692 = vmatpush.bf16.msra.mxu2 %v7239_v40  ;;  %4720 = vmatpush.bf16.msrb.mxu0 %v7751_v46  ;;  %v9083_v8 = vld [vmem:[#allocation7 + $0x50c] sm:$0xf]  ;;  %v7943_v0 = vor.u32 %v9283_v63, %v7940_v1  ;;  %v10138_v1 = vperm.slane %v9834_v29, 1 }
 0x1a5   :  { %4658 = vmatmul.bf16.vlgmr.msrb.gmra.mxu3 %v9822_v11  ;;  %4686 = vmatmul.bf16.vlgmr.msra.gmra.mxu1 %v9792_v36  ;;  %v7140_v9 = vld [vmem:[#allocation7 + $0x528] sm:$0xf0] }
 0x1a6   :  { %4706 = vmatpush.bf16.msra.mxu3 %v7495_v41  ;;  %4734 = vmatpush.bf16.msrb.mxu1 %v8007_v47  ;;  %v9147_v13 = vld [vmem:[#allocation7 + $0x70c] sm:$0xf]  ;;  %v7143_v21 = vor.u32 %v9083_v8, %v7140_v9  ;;  %v9861_v43 = vpop.f32.mrf.mxu1 }
 0x1a7   :  { %v7396_v14 = vld [vmem:[#allocation7 + $0x728] sm:$0xf0]  ;;  %10141 = vst [vmem:[#allocation17_spill] sm:$0xff] %v9861_v43 }
 0x1a8   :  { %4693 = vmatpush.bf16.msra.mxu2 %v7207_v54  ;;  %4721 = vmatpush.bf16.msrb.mxu0 %v7719_v56  ;;  %v9211_v15 = vld [vmem:[#allocation7 + $0x90c] sm:$0xf]  ;;  %v7399_v22 = vor.u32 %v9147_v13, %v7396_v14 }
 0x1a9   :  { %v7652_v17 = vld [vmem:[#allocation7 + $0x928] sm:$0xf0] }
 0x1aa   :  { %4707 = vmatpush.bf16.msra.mxu3 %v7463_v55  ;;  %4735 = vmatpush.bf16.msrb.mxu1 %v7975_v57  ;;  %v9075_v25 = vld [vmem:[#allocation7 + $0x4cc] sm:$0xf]  ;;  %v7655_v27 = vor.u32 %v9211_v15, %v7652_v17 }
 0x1ab   :  { %v7108_v26 = vld [vmem:[#allocation7 + $0x4e8] sm:$0xf0] }
 0x1ac   :  { %4694 = vmatpush.bf16.msra.mxu2 %v7175_v2  ;;  %4722 = vmatpush.bf16.msrb.mxu0 %v7687_v10  ;;  %v9139_v31 = vld [vmem:[#allocation7 + $0x6cc] sm:$0xf]  ;;  %v7111_v40 = vor.u32 %v9075_v25, %v7108_v26  ;;  %v4449_v10 = vpop.f32.mrf.mxu0 }
 0x1ad   :  { %v7364_v50 = vld [vmem:[#allocation7 + $0x6e8] sm:$0xf0]  ;;  %v4450_v17 = vadd.f32 %v4449_v10, %v10138_v1  ;;  %v8968_v10 = vld [vmem:[#allocation7 + $0x16c] sm:$0xf0]  ;;  %v9228_v1 = vld [vmem:[#allocation7 + $0x994] sm:$0xf] }
 0x1ae   :  { %4708 = vmatpush.bf16.msra.mxu3 %v7431_v6  ;;  %4736 = vmatpush.bf16.msrb.mxu1 %v7943_v0  ;;  %v9203_v28 = vld [vmem:[#allocation7 + $0x8cc] sm:$0xf]  ;;  %v7367_v41 = vor.u32 %v9139_v31, %v7364_v50 }
 0x1af   :  { %v7620_v32 = vld [vmem:[#allocation7 + $0x8e8] sm:$0xf0] }
 0x1b0   :  { %v9267_v33 = vld [vmem:[#allocation7 + $0xacc] sm:$0xf]  ;;  %4695 = vmatpush.bf16.msra.mxu2 %v7143_v21  ;;  %4723 = vmatpush.bf16.msrb.mxu0 %v7655_v27  ;;  %v7623_v48 = vor.u32 %v9203_v28, %v7620_v32  ;;  %v6730_v28 = vld [vmem:[#allocation7 + $0x1d0] sm:$0xf] }
 0x1b1   :  { %v7876_v37 = vld [vmem:[#allocation7 + $0xae8] sm:$0xf0] }
 0x1b2   :  { %4709 = vmatpush.bf16.msra.mxu3 %v7399_v22  ;;  %v9067_v46 = vld [vmem:[#allocation7 + $0x48c] sm:$0xf]  ;;  %4737 = vmatpush.bf16.msrb.mxu1 %v7911_v30  ;;  %v7879_v24 = vor.u32 %v9267_v33, %v7876_v37  ;;  %v4463_v22 = vpop.f32.mrf.mxu1  ;;  %v8984_v37 = vld [vmem:[#allocation7 + $0x1ec] sm:$0xf0] }
 0x1b3   :  { %v7076_v47 = vld [vmem:[#allocation7 + $0x4a8] sm:$0xf0]  ;;  %v9866_v30 = vadd.f32 %v4463_v22, %v4450_v17 }
 0x1b4   :  { %v9131_v49 = vld [vmem:[#allocation7 + $0x68c] sm:$0xf]  ;;  %4696 = vmatpush.bf16.msra.mxu2 %v7111_v40  ;;  %v7079_v23 = vor.u32 %v9067_v46, %v7076_v47  ;;  %4724 = vmatpush.bf16.msrb.mxu0 %v7623_v48  ;;  %v6986_v40 = vld [vmem:[#allocation7 + $0x3d0] sm:$0xf] }
 0x1b5   :  { %v7332_v51 = vld [vmem:[#allocation7 + $0x6a8] sm:$0xf0] }
 0x1b6   :  { %v9195_v52 = vld [vmem:[#allocation7 + $0x88c] sm:$0xf]  ;;  %4710 = vmatpush.bf16.msra.mxu3 %v7367_v41  ;;  %v7335_v62 = vor.u32 %v9131_v49, %v7332_v51  ;;  %4738 = vmatpush.bf16.msrb.mxu1 %v7879_v24  ;;  %v9048_v41 = vld [vmem:[#allocation7 + $0x3ec] sm:$0xf0] }
 0x1b7   :  { %v7588_v53 = vld [vmem:[#allocation7 + $0x8a8] sm:$0xf0] }
 0x1b8   :  { %v9259_v54 = vld [vmem:[#allocation7 + $0xa8c] sm:$0xf]  ;;  %v7591_v59 = vor.u32 %v9195_v52, %v7588_v53  ;;  %4697 = vmatpush.bf16.msra.mxu2 %v7079_v23  ;;  %v6731_v52 = vor.u32 %v8984_v37, %v6730_v28  ;;  %v6987_v53 = vor.u32 %v9048_v41, %v6986_v40  ;;  %v6698_v23 = vld [vmem:[#allocation7 + $0x190] sm:$0xf]  ;;  %v9876_v37 = vpop.f32.mrf.mxu0 }
 0x1b9   :  { %v7844_v55 = vld [vmem:[#allocation7 + $0xaa8] sm:$0xf0] }
 0x1ba   :  { %v9059_v56 = vld [vmem:[#allocation7 + $0x44c] sm:$0xf]  ;;  %v7847_v60 = vor.u32 %v9259_v54, %v7844_v55  ;;  %4711 = vmatpush.bf16.msra.mxu3 %v7335_v62  ;;  %4725 = vmatpush.bf16.msrb.mxu0 %v7591_v59  ;;  %v8976_v62 = vld [vmem:[#allocation7 + $0x1ac] sm:$0xf0] }
 0x1bb   :  { %v7044_v57 = vld [vmem:[#allocation7 + $0x468] sm:$0xf0] }
 0x1bc   :  { %v9123_v58 = vld [vmem:[#allocation7 + $0x64c] sm:$0xf]  ;;  %v7047_v8 = vor.u32 %v9059_v56, %v7044_v57  ;;  %4739 = vmatpush.bf16.msrb.mxu1 %v7847_v60  ;;  %v6954_v56 = vld [vmem:[#allocation7 + $0x390] sm:$0xf] }
 0x1bd   :  { %v7300_v61 = vld [vmem:[#allocation7 + $0x668] sm:$0xf0]  ;;  %v9040_v57 = vld [vmem:[#allocation7 + $0x3ac] sm:$0xf0] }
 0x1be   :  { %v9187_v63 = vld [vmem:[#allocation7 + $0x84c] sm:$0xf]  ;;  %v7303_v9 = vor.u32 %v9123_v58, %v7300_v61  ;;  %4698 = vmatpush.bf16.msra.mxu2 %v7047_v8  ;;  %v9868_v8 = vpop.f32.mrf.mxu2 }
 0x1bf   :  { %v7556_v2 = vld [vmem:[#allocation7 + $0x868] sm:$0xf0] }
 0x1c0   :  { %v9251_v6 = vld [vmem:[#allocation7 + $0xa4c] sm:$0xf]  ;;  %v7559_v14 = vor.u32 %v9187_v63, %v7556_v2  ;;  %4712 = vmatpush.bf16.msra.mxu3 %v7303_v9  ;;  %v6699_v63 = vor.u32 %v8976_v62, %v6698_v23  ;;  %v6955_v2 = vor.u32 %v9040_v57, %v6954_v56  ;;  %v9870_v9 = vpop.f32.mrf.mxu3 }
 0x1c1   :  { %v7812_v7 = vld [vmem:[#allocation7 + $0xa68] sm:$0xf0] }
 0x1c2   :  { %v9051_v5 = vld [vmem:[#allocation7 + $0x40c] sm:$0xf]  ;;  %v7815_v15 = vor.u32 %v9251_v6, %v7812_v7  ;;  %4726 = vmatpush.bf16.msrb.mxu0 %v7559_v14 }
 0x1c3   :  { %v7012_v0 = vld [vmem:[#allocation7 + $0x428] sm:$0xf0] }
 0x1c4   :  { %v9115_v12 = vld [vmem:[#allocation7 + $0x60c] sm:$0xf]  ;;  %v7015_v32 = vor.u32 %v9051_v5, %v7012_v0  ;;  %4740 = vmatpush.bf16.msrb.mxu1 %v7815_v15  ;;  %v6666_v5 = vld [vmem:[#allocation7 + $0x150] sm:$0xf] }
 0x1c5   :  { %v7268_v13 = vld [vmem:[#allocation7 + $0x628] sm:$0xf0]  ;;  %v6922_v0 = vld [vmem:[#allocation7 + $0x350] sm:$0xf] }
 0x1c6   :  { %v9179_v18 = vld [vmem:[#allocation7 + $0x80c] sm:$0xf]  ;;  %v7271_v33 = vor.u32 %v9115_v12, %v7268_v13  ;;  %4699 = vmatpush.bf16.msra.mxu2 %v7015_v32  ;;  %v9032_v12 = vld [vmem:[#allocation7 + $0x36c] sm:$0xf0] }
 0x1c7   :  { %v7524_v19 = vld [vmem:[#allocation7 + $0x828] sm:$0xf0] }
 0x1c8   :  { %v9243_v21 = vld [vmem:[#allocation7 + $0xa0c] sm:$0xf]  ;;  %v7527_v46 = vor.u32 %v9179_v18, %v7524_v19  ;;  %4713 = vmatpush.bf16.msra.mxu3 %v7271_v33  ;;  %v6667_v18 = vor.u32 %v8968_v10, %v6666_v5  ;;  %v6923_v19 = vor.u32 %v9032_v12, %v6922_v0  ;;  %v9008_v5 = vld [vmem:[#allocation7 + $0x2ac] sm:$0xf0] }
 0x1c9   :  { %v7780_v25 = vld [vmem:[#allocation7 + $0xa28] sm:$0xf0]  ;;  %4700 = vmatmul.bf16.vlgmr.msra.gmra.mxu2 %v9802_v3 }
 0x1ca   :  { %v9363_v26 = vld [vmem:[#allocation7 + $0xdcc] sm:$0xf]  ;;  %v7783_v47 = vor.u32 %v9243_v21, %v7780_v25  ;;  %4727 = vmatpush.bf16.msrb.mxu0 %v7527_v46  ;;  %v6634_v25 = vld [vmem:[#allocation7 + $0x110] sm:$0xf] }
 0x1cb   :  { %v8260_v27 = vld [vmem:[#allocation7 + $0xde8] sm:$0xf0]  ;;  %4714 = vmatmul.bf16.vlgmr.msra.gmra.mxu3 %v9804_v4 }
 0x1cc   :  { %v9427_v31 = vld [vmem:[#allocation7 + $0xfcc] sm:$0xf]  ;;  %v8263_v48 = vor.u32 %v9363_v26, %v8260_v27  ;;  %4741 = vmatpush.bf16.msrb.mxu1 %v7783_v47  ;;  %v8960_v26 = vld [vmem:[#allocation7 + $0x12c] sm:$0xf0] }
 0x1cd   :  { %v8516_v50 = vld [vmem:[#allocation7 + $0xfe8] sm:$0xf0]  ;;  %4728 = vmatmul.bf16.vlgmr.msrb.gmra.mxu0 %v9810_v44  ;;  %v6890_v27 = vld [vmem:[#allocation7 + $0x310] sm:$0xf]  ;;  %v6635_v40 = vor.u32 %v8960_v26, %v6634_v25 }
 0x1ce   :  { %v8519_v24 = vor.u32 %v9427_v31, %v8516_v50  ;;  %v9355_v49 = vld [vmem:[#allocation7 + $0xd8c] sm:$0xf]  ;;  %4748 = vmatpush.bf16.msrb.mxu2 %v8263_v48  ;;  %4776 = vmatpush.bf16.msra.mxu0 %v6731_v52  ;;  %v9024_v31 = vld [vmem:[#allocation7 + $0x32c] sm:$0xf0] }
 0x1cf   :  { %v8228_v51 = vld [vmem:[#allocation7 + $0xda8] sm:$0xf0]  ;;  %4742 = vmatmul.bf16.vlgmr.msrb.gmra.mxu1 %v9812_v45  ;;  %v6891_v41 = vor.u32 %v9024_v31, %v6890_v27  ;;  %v6602_v48 = vld [vmem:[#allocation7 + $0xd0] sm:$0xf]  ;;  %v9887_v27 = vpop.f32.mrf.mxu0 }
 0x1d0   :  { %v9419_v54 = vld [vmem:[#allocation7 + $0xf8c] sm:$0xf]  ;;  %4762 = vmatpush.bf16.msrb.mxu3 %v8519_v24  ;;  %v8231_v58 = vor.u32 %v9355_v49, %v8228_v51  ;;  %4790 = vmatpush.bf16.msra.mxu1 %v6987_v53  ;;  %v4421_v24 = vpop.f32.mrf.mxu2  ;;  %v4435_v49 = vpop.f32.mrf.mxu3  ;;  %v8952_v51 = vld [vmem:[#allocation7 + $0xec] sm:$0xf0] }
 0x1d1   :  { %v8484_v55 = vld [vmem:[#allocation7 + $0xfa8] sm:$0xf0]  ;;  %v6858_v52 = vld [vmem:[#allocation7 + $0x2d0] sm:$0xf] }
 0x1d2   :  { %v8487_v59 = vor.u32 %v9419_v54, %v8484_v55  ;;  %v9347_v60 = vld [vmem:[#allocation7 + $0xd4c] sm:$0xf]  ;;  %4749 = vmatpush.bf16.msrb.mxu2 %v8231_v58  ;;  %4777 = vmatpush.bf16.msra.mxu0 %v6699_v63  ;;  %v9016_v53 = vld [vmem:[#allocation7 + $0x2ec] sm:$0xf0]  ;;  %v9878_v54 = vpop.f32.mrf.mxu1  ;;  %v4422_v55 = vadd.f32 %v4421_v24, %v9857_v20 }
 0x1d3   :  { %v8196_v61 = vld [vmem:[#allocation7 + $0xd68] sm:$0xf0]  ;;  %v6794_v25 = vld [vmem:[#allocation7 + $0x250] sm:$0xf] }
 0x1d4   :  { %v9411_v6 = vld [vmem:[#allocation7 + $0xf4c] sm:$0xf]  ;;  %4763 = vmatpush.bf16.msrb.mxu3 %v8487_v59  ;;  %v8199_v13 = vor.u32 %v9347_v60, %v8196_v61  ;;  %4791 = vmatpush.bf16.msra.mxu1 %v6955_v2  ;;  %v9881_v58 = vadd.f32 %v4435_v49, %v4422_v55  ;;  %v6603_v59 = vor.u32 %v8952_v51, %v6602_v48  ;;  %v6570_v2 = vld [vmem:[#allocation7 + $0x90] sm:$0xf] }
 0x1d5   :  { %v8452_v7 = vld [vmem:[#allocation7 + $0xf68] sm:$0xf0]  ;;  %v6859_v60 = vor.u32 %v9016_v53, %v6858_v52  ;;  %v9000_v26 = vld [vmem:[#allocation7 + $0x26c] sm:$0xf0] }
 0x1d6   :  { %v8455_v14 = vor.u32 %v9411_v6, %v8452_v7  ;;  %v9339_v15 = vld [vmem:[#allocation7 + $0xd0c] sm:$0xf]  ;;  %4750 = vmatpush.bf16.msrb.mxu2 %v8199_v13  ;;  %4778 = vmatpush.bf16.msra.mxu0 %v6667_v18  ;;  %v8944_v6 = vld [vmem:[#allocation7 + $0xac] sm:$0xf0] }
 0x1d7   :  { %v8164_v17 = vld [vmem:[#allocation7 + $0xd28] sm:$0xf0]  ;;  %v6826_v7 = vld [vmem:[#allocation7 + $0x290] sm:$0xf]  ;;  %v6571_v13 = vor.u32 %v8944_v6, %v6570_v2 }
 0x1d8   :  { %v9403_v21 = vld [vmem:[#allocation7 + $0xf0c] sm:$0xf]  ;;  %4764 = vmatpush.bf16.msrb.mxu3 %v8455_v14  ;;  %v8167_v50 = vor.u32 %v9339_v15, %v8164_v17  ;;  %4792 = vmatpush.bf16.msra.mxu1 %v6923_v19  ;;  %v6827_v14 = vor.u32 %v9008_v5, %v6826_v7  ;;  %v6538_v18 = vld [vmem:[#allocation7 + $0x50] sm:$0xf]  ;;  %v9883_v19 = vpop.f32.mrf.mxu2 }
 0x1d9   :  { %v8420_v22 = vld [vmem:[#allocation7 + $0xf28] sm:$0xf0]  ;;  %10142 = vst [vmem:[#allocation18_spill] sm:$0xff] %v9883_v19  ;;  %v6506_v48 = vld [vmem:[#allocation7 + $0x10] sm:$0xf] }
 0x1da   :  { %v8423_v28 = vor.u32 %v9403_v21, %v8420_v22  ;;  %v9331_v32 = vld [vmem:[#allocation7 + $0xccc] sm:$0xf]  ;;  %4751 = vmatpush.bf16.msrb.mxu2 %v8167_v50  ;;  %4779 = vmatpush.bf16.msra.mxu0 %v6635_v40  ;;  %v9885_v21 = vpop.f32.mrf.mxu3  ;;  %v8936_v22 = vld [vmem:[#allocation7 + $0x6c] sm:$0xf0]  ;;  %v8492_v19 = vld [vmem:[#allocation7 + $0xfb0] sm:$0xf0] }
 0x1db   :  { %v8132_v33 = vld [vmem:[#allocation7 + $0xce8] sm:$0xf0]  ;;  %10143 = vst [vmem:[#allocation19_spill] sm:$0xff] %v9885_v21  ;;  %v8928_v24 = vld [vmem:[#allocation7 + $0x2c] sm:$0xf0] }
 0x1dc   :  { %v9395_v46 = vld [vmem:[#allocation7 + $0xecc] sm:$0xf]  ;;  %4765 = vmatpush.bf16.msrb.mxu3 %v8423_v28  ;;  %v8135_v23 = vor.u32 %v9331_v32, %v8132_v33  ;;  %4793 = vmatpush.bf16.msra.mxu1 %v6891_v41  ;;  %v9889_v41 = vpop.f32.mrf.mxu1  ;;  %v6762_v49 = vld [vmem:[#allocation7 + $0x210] sm:$0xf] }
 0x1dd   :  { %v8388_v47 = vld [vmem:[#allocation7 + $0xee8] sm:$0xf0]  ;;  %v8992_v51 = vld [vmem:[#allocation7 + $0x22c] sm:$0xf0] }
 0x1de   :  { %v8391_v62 = vor.u32 %v9395_v46, %v8388_v47  ;;  %v9323_v56 = vld [vmem:[#allocation7 + $0xc8c] sm:$0xf]  ;;  %4752 = vmatpush.bf16.msrb.mxu2 %v8135_v23  ;;  %4780 = vmatpush.bf16.msra.mxu0 %v6603_v59  ;;  %v6539_v46 = vor.u32 %v8936_v22, %v6538_v18  ;;  %v6795_v47 = vor.u32 %v9000_v26, %v6794_v25  ;;  %v7242_v52 = vld [vmem:[#allocation7 + $0x5d0] sm:$0xf] }
 0x1df   :  { %v8100_v57 = vld [vmem:[#allocation7 + $0xca8] sm:$0xf0]  ;;  %v9112_v53 = vld [vmem:[#allocation7 + $0x5ec] sm:$0xf0]  ;;  %v6763_v2 = vor.u32 %v8992_v51, %v6762_v49 }
 0x1e0   :  { %v9387_v61 = vld [vmem:[#allocation7 + $0xe8c] sm:$0xf]  ;;  %4766 = vmatpush.bf16.msrb.mxu3 %v8391_v62  ;;  %v8103_v20 = vor.u32 %v9323_v56, %v8100_v57  ;;  %4794 = vmatpush.bf16.msra.mxu1 %v6859_v60  ;;  %v7498_v55 = vld [vmem:[#allocation7 + $0x7d0] sm:$0xf]  ;;  %v7243_v6 = vor.u32 %v9112_v53, %v7242_v52  ;;  %v4477_v5 = vpop.f32.mrf.mxu2 }
 0x1e1   :  { %v8356_v63 = vld [vmem:[#allocation7 + $0xea8] sm:$0xf0]  ;;  %v9176_v23 = vld [vmem:[#allocation7 + $0x7ec] sm:$0xf0] }
 0x1e2   :  { %v8359_v10 = vor.u32 %v9387_v61, %v8356_v63  ;;  %v9315_v0 = vld [vmem:[#allocation7 + $0xc4c] sm:$0xf]  ;;  %4753 = vmatpush.bf16.msrb.mxu2 %v8103_v20  ;;  %4781 = vmatpush.bf16.msra.mxu0 %v6571_v13  ;;  %v7754_v62 = vld [vmem:[#allocation7 + $0x9d0] sm:$0xf]  ;;  %v6507_v63 = vor.u32 %v8928_v24, %v6506_v48  ;;  %v7499_v7 = vor.u32 %v9176_v23, %v7498_v55  ;;  %v4491_v20 = vpop.f32.mrf.mxu3 }
 0x1e3   :  { %v8068_v12 = vld [vmem:[#allocation7 + $0xc68] sm:$0xf0]  ;;  %v9240_v59 = vld [vmem:[#allocation7 + $0x9ec] sm:$0xf0] }
 0x1e4   :  { %v9379_v15 = vld [vmem:[#allocation7 + $0xe4c] sm:$0xf]  ;;  %4767 = vmatpush.bf16.msrb.mxu3 %v8359_v10  ;;  %v8071_v50 = vor.u32 %v9315_v0, %v8068_v12  ;;  %4795 = vmatpush.bf16.msra.mxu1 %v6827_v14  ;;  %v8010_v60 = vld [vmem:[#allocation7 + $0xbd0] sm:$0xf]  ;;  %v7755_v12 = vor.u32 %v9240_v59, %v7754_v62  ;;  %v4478_v14 = vadd.f32 %v4477_v5, %v9866_v30  ;;  %v9894_v30 = vpop.f32.mrf.mxu1 }
 0x1e5   :  { %v8324_v17 = vld [vmem:[#allocation7 + $0xe68] sm:$0xf0]  ;;  %v9304_v61 = vld [vmem:[#allocation7 + $0xbec] sm:$0xf0]  ;;  %10144 = vst [vmem:[#allocation20_spill] sm:$0xff] %v9894_v30 }
 0x1e6   :  { %v9307_v31 = vld [vmem:[#allocation7 + $0xc0c] sm:$0xf]  ;;  %v8327_v28 = vor.u32 %v9379_v15, %v8324_v17  ;;  %4754 = vmatpush.bf16.msrb.mxu2 %v8071_v50  ;;  %4782 = vmatpush.bf16.msra.mxu0 %v6539_v46  ;;  %v7210_v10 = vld [vmem:[#allocation7 + $0x590] sm:$0xf]  ;;  %v8011_v13 = vor.u32 %v9304_v61, %v8010_v60  ;;  %v4492_v50 = vadd.f32 %v4491_v20, %v4478_v14  ;;  %v7474_v30 = vld [vmem:[#allocation7 + $0x798] sm:$0xf] }
 0x1e7   :  { %v8036_v32 = vld [vmem:[#allocation7 + $0xc28] sm:$0xf0]  ;;  %v9104_v0 = vld [vmem:[#allocation7 + $0x5ac] sm:$0xf0] }
 0x1e8   :  { %v9371_v33 = vld [vmem:[#allocation7 + $0xe0c] sm:$0xf]  ;;  %4768 = vmatpush.bf16.msrb.mxu3 %v8327_v28  ;;  %v8039_v56 = vor.u32 %v9307_v31, %v8036_v32  ;;  %4796 = vmatpush.bf16.msra.mxu1 %v6795_v47  ;;  %v7466_v15 = vld [vmem:[#allocation7 + $0x790] sm:$0xf]  ;;  %v9892_v31 = vpop.f32.mrf.mxu0  ;;  %v7211_v28 = vor.u32 %v9104_v0, %v7210_v10  ;;  %v4506_v46 = vadd.f32 %v9887_v27, %v4492_v50 }
 0x1e9   :  { %v8292_v40 = vld [vmem:[#allocation7 + $0xe28] sm:$0xf0]  ;;  %v9168_v17 = vld [vmem:[#allocation7 + $0x7ac] sm:$0xf0] }
 0x1ea   :  { %v8295_v57 = vor.u32 %v9371_v33, %v8292_v40  ;;  %v7722_v18 = vld [vmem:[#allocation7 + $0x990] sm:$0xf]  ;;  %4755 = vmatpush.bf16.msrb.mxu2 %v8039_v56  ;;  %4783 = vmatpush.bf16.msra.mxu0 %v6507_v63  ;;  %v7467_v32 = vor.u32 %v9168_v17, %v7466_v15  ;;  %v4520_v23 = vadd.f32 %v9889_v41, %v4506_v46  ;;  %v9902_v56 = vpop.f32.mrf.mxu2  ;;  %v9907_v41 = vpop.f32.mrf.mxu3 }
 0x1eb   :  { %v9232_v22 = vld [vmem:[#allocation7 + $0x9ac] sm:$0xf0] }
 0x1ec   :  { %4769 = vmatpush.bf16.msrb.mxu3 %v8295_v57  ;;  %v7978_v25 = vld [vmem:[#allocation7 + $0xb90] sm:$0xf]  ;;  %4797 = vmatpush.bf16.msra.mxu1 %v6763_v2  ;;  %v7723_v47 = vor.u32 %v9232_v22, %v7722_v18  ;;  %v9904_v57 = vld [vmem:[#allocation8] sm:$0xff]  ;;  %v4575_v22 = vpop.f32.mrf.mxu1 }
 0x1ed   :  { %v9296_v26 = vld [vmem:[#allocation7 + $0xbac] sm:$0xf0]  ;;  %4756 = vmatmul.bf16.vlgmr.msrb.gmra.mxu2 %v9820_v16  ;;  %4784 = vmatmul.bf16.vlgmr.msra.gmra.mxu0 %v9790_v35  ;;  %v10139_v59 = vperm.slane %v9904_v57, 2 }
 0x1ee   :  { %4804 = vmatpush.bf16.msra.mxu2 %v7243_v6  ;;  %v7178_v33 = vld [vmem:[#allocation7 + $0x550] sm:$0xf]  ;;  %4832 = vmatpush.bf16.msrb.mxu0 %v7755_v12  ;;  %v7979_v48 = vor.u32 %v9296_v26, %v7978_v25 }
 0x1ef   :  { %v9096_v40 = vld [vmem:[#allocation7 + $0x56c] sm:$0xf0]  ;;  %4770 = vmatmul.bf16.vlgmr.msrb.gmra.mxu3 %v9822_v11  ;;  %4798 = vmatmul.bf16.vlgmr.msra.gmra.mxu1 %v9792_v36 }
 0x1f0   :  { %4818 = vmatpush.bf16.msra.mxu3 %v7499_v7  ;;  %4846 = vmatpush.bf16.msrb.mxu1 %v8011_v13  ;;  %v7434_v24 = vld [vmem:[#allocation7 + $0x750] sm:$0xf]  ;;  %v7179_v27 = vor.u32 %v9096_v40, %v7178_v33  ;;  %v4561_v12 = vpop.f32.mrf.mxu0 }
 0x1f1   :  { %v9160_v49 = vld [vmem:[#allocation7 + $0x76c] sm:$0xf0]  ;;  %v4562_v13 = vadd.f32 %v4561_v12, %v10139_v59  ;;  %v8268_v59 = vld [vmem:[#allocation7 + $0xdf0] sm:$0xf0] }
 0x1f2   :  { %v7690_v51 = vld [vmem:[#allocation7 + $0x950] sm:$0xf]  ;;  %4805 = vmatpush.bf16.msra.mxu2 %v7211_v28  ;;  %v7435_v62 = vor.u32 %v9160_v49, %v7434_v24  ;;  %4833 = vmatpush.bf16.msrb.mxu0 %v7723_v47 }
 0x1f3   :  { %v9224_v52 = vld [vmem:[#allocation7 + $0x96c] sm:$0xf0]  ;;  %v9911_v33 = vadd.f32 %v4575_v22, %v4562_v13 }
 0x1f4   :  { %v7946_v53 = vld [vmem:[#allocation7 + $0xb50] sm:$0xf]  ;;  %4819 = vmatpush.bf16.msra.mxu3 %v7467_v32  ;;  %4847 = vmatpush.bf16.msrb.mxu1 %v7979_v48  ;;  %v7691_v63 = vor.u32 %v9224_v52, %v7690_v51 }
 0x1f5   :  { %v9288_v55 = vld [vmem:[#allocation7 + $0xb6c] sm:$0xf0] }
 0x1f6   :  { %v7146_v60 = vld [vmem:[#allocation7 + $0x510] sm:$0xf]  ;;  %v7947_v2 = vor.u32 %v9288_v55, %v7946_v53  ;;  %4806 = vmatpush.bf16.msra.mxu2 %v7179_v27  ;;  %4834 = vmatpush.bf16.msrb.mxu0 %v7691_v63 }
 0x1f7   :  { %v9088_v61 = vld [vmem:[#allocation7 + $0x52c] sm:$0xf0] }
 0x1f8   :  { %v7402_v6 = vld [vmem:[#allocation7 + $0x710] sm:$0xf]  ;;  %4820 = vmatpush.bf16.msra.mxu3 %v7435_v62  ;;  %v7147_v14 = vor.u32 %v9088_v61, %v7146_v60  ;;  %4848 = vmatpush.bf16.msrb.mxu1 %v7947_v2  ;;  %v4533_v60 = vpop.f32.mrf.mxu2 }
 0x1f9   :  { %v9152_v7 = vld [vmem:[#allocation7 + $0x72c] sm:$0xf0] }
 0x1fa   :  { %v7658_v5 = vld [vmem:[#allocation7 + $0x910] sm:$0xf]  ;;  %v7403_v15 = vor.u32 %v9152_v7, %v7402_v6  ;;  %4807 = vmatpush.bf16.msra.mxu2 %v7147_v14  ;;  %v4534_v6 = vadd.f32 %v4533_v60, %v4520_v23  ;;  %v4547_v7 = vpop.f32.mrf.mxu3  ;;  %v8980_v60 = vld [vmem:[#allocation7 + $0x1d4] sm:$0xf] }
 0x1fb   :  { %v9216_v20 = vld [vmem:[#allocation7 + $0x92c] sm:$0xf0] }
 0x1fc   :  { %v7914_v10 = vld [vmem:[#allocation7 + $0xb10] sm:$0xf]  ;;  %v7659_v25 = vor.u32 %v9216_v20, %v7658_v5  ;;  %4821 = vmatpush.bf16.msra.mxu3 %v7403_v15  ;;  %v4548_v12 = vadd.f32 %v4547_v7, %v4534_v6  ;;  %v9044_v6 = vld [vmem:[#allocation7 + $0x3d4] sm:$0xf] }
 0x1fd   :  { %v9280_v0 = vld [vmem:[#allocation7 + $0xb2c] sm:$0xf0]  ;;  %v6988_v7 = vld [vmem:[#allocation7 + $0x3f0] sm:$0xf0] }
 0x1fe   :  { %v7114_v17 = vld [vmem:[#allocation7 + $0x4d0] sm:$0xf]  ;;  %v7915_v26 = vor.u32 %v9280_v0, %v7914_v10  ;;  %4835 = vmatpush.bf16.msrb.mxu0 %v7659_v25  ;;  %v9914_v23 = vpack.c.bf16 %v4548_v12, %v9881_v58 }
 0x1ff   :  { %v9080_v18 = vld [vmem:[#allocation7 + $0x4ec] sm:$0xf0] }
 0x200   :  { %v7370_v50 = vld [vmem:[#allocation7 + $0x6d0] sm:$0xf]  ;;  %v7115_v48 = vor.u32 %v9080_v18, %v7114_v17  ;;  %4849 = vmatpush.bf16.msrb.mxu1 %v7915_v26  ;;  %10145 = vst [vmem:[#allocation21_spill] sm:$0xff] %v9914_v23  ;;  %v6738_v23 = vld [vmem:[#allocation7 + $0x1d8] sm:$0xf] }
 0x201   :  { %v9144_v28 = vld [vmem:[#allocation7 + $0x6ec] sm:$0xf0] }
 0x202   :  { %v7626_v32 = vld [vmem:[#allocation7 + $0x8d0] sm:$0xf]  ;;  %v7371_v24 = vor.u32 %v9144_v28, %v7370_v50  ;;  %4808 = vmatpush.bf16.msra.mxu2 %v7115_v48 }
 0x203   :  { %v9208_v40 = vld [vmem:[#allocation7 + $0x8ec] sm:$0xf0] }
 0x204   :  { %v7882_v46 = vld [vmem:[#allocation7 + $0xad0] sm:$0xf]  ;;  %v7627_v52 = vor.u32 %v9208_v40, %v7626_v32  ;;  %4822 = vmatpush.bf16.msra.mxu3 %v7371_v24 }
 0x205   :  { %v9272_v47 = vld [vmem:[#allocation7 + $0xaec] sm:$0xf0] }
 0x206   :  { %v7082_v49 = vld [vmem:[#allocation7 + $0x490] sm:$0xf]  ;;  %v7883_v53 = vor.u32 %v9272_v47, %v7882_v46  ;;  %4836 = vmatpush.bf16.msrb.mxu0 %v7627_v52 }
 0x207   :  { %v9072_v51 = vld [vmem:[#allocation7 + $0x4ac] sm:$0xf0] }
 0x208   :  { %v7338_v55 = vld [vmem:[#allocation7 + $0x690] sm:$0xf]  ;;  %v7083_v5 = vor.u32 %v9072_v51, %v7082_v49  ;;  %4850 = vmatpush.bf16.msrb.mxu1 %v7883_v53 }
 0x209   :  { %v9136_v27 = vld [vmem:[#allocation7 + $0x6ac] sm:$0xf0] }
 0x20a   :  { %v7594_v62 = vld [vmem:[#allocation7 + $0x890] sm:$0xf]  ;;  %v7339_v20 = vor.u32 %v9136_v27, %v7338_v55  ;;  %4809 = vmatpush.bf16.msra.mxu2 %v7083_v5 }
 0x20b   :  { %v9200_v61 = vld [vmem:[#allocation7 + $0x8ac] sm:$0xf0] }
 0x20c   :  { %v7850_v63 = vld [vmem:[#allocation7 + $0xa90] sm:$0xf]  ;;  %v7595_v13 = vor.u32 %v9200_v61, %v7594_v62  ;;  %4823 = vmatpush.bf16.msra.mxu3 %v7339_v20 }
 0x20d   :  { %v9264_v2 = vld [vmem:[#allocation7 + $0xaac] sm:$0xf0] }
 0x20e   :  { %v7050_v10 = vld [vmem:[#allocation7 + $0x450] sm:$0xf]  ;;  %v7851_v14 = vor.u32 %v9264_v2, %v7850_v63  ;;  %4837 = vmatpush.bf16.msrb.mxu0 %v7595_v13  ;;  %v6732_v2 = vld [vmem:[#allocation7 + $0x1f0] sm:$0xf0] }
 0x20f   :  { %v9064_v0 = vld [vmem:[#allocation7 + $0x46c] sm:$0xf0] }
 0x210   :  { %v7306_v15 = vld [vmem:[#allocation7 + $0x650] sm:$0xf]  ;;  %v7051_v28 = vor.u32 %v9064_v0, %v7050_v10  ;;  %4851 = vmatpush.bf16.msrb.mxu1 %v7851_v14  ;;  %v6735_v14 = vor.u32 %v8980_v60, %v6732_v2 }
 0x211   :  { %v9128_v17 = vld [vmem:[#allocation7 + $0x66c] sm:$0xf0] }
 0x212   :  { %v7562_v18 = vld [vmem:[#allocation7 + $0x850] sm:$0xf]  ;;  %v7307_v32 = vor.u32 %v9128_v17, %v7306_v15  ;;  %4810 = vmatpush.bf16.msra.mxu2 %v7051_v28  ;;  %v6991_v15 = vor.u32 %v9044_v6, %v6988_v7 }
 0x213   :  { %v9192_v22 = vld [vmem:[#allocation7 + $0x86c] sm:$0xf0] }
 0x214   :  { %v7818_v25 = vld [vmem:[#allocation7 + $0xa50] sm:$0xf]  ;;  %v7563_v48 = vor.u32 %v9192_v22, %v7562_v18  ;;  %4824 = vmatpush.bf16.msra.mxu3 %v7307_v32  ;;  %v8972_v22 = vld [vmem:[#allocation7 + $0x194] sm:$0xf] }
 0x215   :  { %v9256_v26 = vld [vmem:[#allocation7 + $0xa6c] sm:$0xf0] }
 0x216   :  { %v7018_v50 = vld [vmem:[#allocation7 + $0x410] sm:$0xf]  ;;  %v7819_v24 = vor.u32 %v9256_v26, %v7818_v25  ;;  %4838 = vmatpush.bf16.msrb.mxu0 %v7563_v48  ;;  %v6700_v25 = vld [vmem:[#allocation7 + $0x1b0] sm:$0xf0] }
 0x217   :  { %v9056_v40 = vld [vmem:[#allocation7 + $0x42c] sm:$0xf0]  ;;  %v9036_v26 = vld [vmem:[#allocation7 + $0x394] sm:$0xf] }
 0x218   :  { %v7274_v46 = vld [vmem:[#allocation7 + $0x610] sm:$0xf]  ;;  %v7019_v61 = vor.u32 %v9056_v40, %v7018_v50  ;;  %4852 = vmatpush.bf16.msrb.mxu1 %v7819_v24  ;;  %v6956_v50 = vld [vmem:[#allocation7 + $0x3b0] sm:$0xf0] }
 0x219   :  { %v9120_v47 = vld [vmem:[#allocation7 + $0x62c] sm:$0xf0]  ;;  %v6959_v48 = vor.u32 %v9036_v26, %v6956_v50 }
 0x21a   :  { %v7530_v49 = vld [vmem:[#allocation7 + $0x810] sm:$0xf]  ;;  %v7275_v63 = vor.u32 %v9120_v47, %v7274_v46  ;;  %4811 = vmatpush.bf16.msra.mxu2 %v7019_v61  ;;  %v6703_v47 = vor.u32 %v8972_v22, %v6700_v25  ;;  %v9920_v61 = vpop.f32.mrf.mxu2 }
 0x21b   :  { %v9184_v51 = vld [vmem:[#allocation7 + $0x82c] sm:$0xf0]  ;;  %10146 = vst [vmem:[#allocation22_spill] sm:$0xff] %v9920_v61  ;;  %v6706_v61 = vld [vmem:[#allocation7 + $0x198] sm:$0xf] }
 0x21c   :  { %v7786_v52 = vld [vmem:[#allocation7 + $0xa10] sm:$0xf]  ;;  %v7531_v5 = vor.u32 %v9184_v51, %v7530_v49  ;;  %4825 = vmatpush.bf16.msra.mxu3 %v7275_v63  ;;  %v8964_v51 = vld [vmem:[#allocation7 + $0x154] sm:$0xf] }
 0x21d   :  { %v9248_v53 = vld [vmem:[#allocation7 + $0xa2c] sm:$0xf0]  ;;  %4812 = vmatmul.bf16.vlgmr.msra.gmra.mxu2 %v9802_v3 }
 0x21e   :  { %v8266_v55 = vld [vmem:[#allocation7 + $0xdd0] sm:$0xf]  ;;  %v7787_v20 = vor.u32 %v9248_v53, %v7786_v52  ;;  %4839 = vmatpush.bf16.msrb.mxu0 %v7531_v5  ;;  %v6668_v52 = vld [vmem:[#allocation7 + $0x170] sm:$0xf0] }
 0x21f   :  { %v9368_v27 = vld [vmem:[#allocation7 + $0xdec] sm:$0xf0]  ;;  %4826 = vmatmul.bf16.vlgmr.msra.gmra.mxu3 %v9804_v4  ;;  %v9028_v53 = vld [vmem:[#allocation7 + $0x354] sm:$0xf]  ;;  %v6671_v63 = vor.u32 %v8964_v51, %v6668_v52 }
 0x220   :  { %v8522_v58 = vld [vmem:[#allocation7 + $0xfd0] sm:$0xf]  ;;  %v8267_v10 = vor.u32 %v9368_v27, %v8266_v55  ;;  %4853 = vmatpush.bf16.msrb.mxu1 %v7787_v20  ;;  %v6924_v55 = vld [vmem:[#allocation7 + $0x370] sm:$0xf0] }
 0x221   :  { %v9432_v62 = vld [vmem:[#allocation7 + $0xfec] sm:$0xf0]  ;;  %4840 = vmatmul.bf16.vlgmr.msrb.gmra.mxu0 %v9810_v44  ;;  %v6927_v2 = vor.u32 %v9028_v53, %v6924_v55  ;;  %v8956_v5 = vld [vmem:[#allocation7 + $0x114] sm:$0xf] }
 0x222   :  { %v8523_v0 = vor.u32 %v9432_v62, %v8522_v58  ;;  %v8234_v12 = vld [vmem:[#allocation7 + $0xd90] sm:$0xf]  ;;  %4860 = vmatpush.bf16.msrb.mxu2 %v8267_v10  ;;  %4888 = vmatpush.bf16.msra.mxu0 %v6735_v14  ;;  %v6636_v20 = vld [vmem:[#allocation7 + $0x130] sm:$0xf0]  ;;  %v4589_v55 = vpop.f32.mrf.mxu2 }
 0x223   :  { %v9360_v13 = vld [vmem:[#allocation7 + $0xdac] sm:$0xf0]  ;;  %4854 = vmatmul.bf16.vlgmr.msrb.gmra.mxu1 %v9812_v45  ;;  %v9020_v10 = vld [vmem:[#allocation7 + $0x314] sm:$0xf]  ;;  %v6639_v22 = vor.u32 %v8956_v5, %v6636_v20 }
 0x224   :  { %v8490_v17 = vld [vmem:[#allocation7 + $0xf90] sm:$0xf]  ;;  %4874 = vmatpush.bf16.msrb.mxu3 %v8523_v0  ;;  %v8235_v28 = vor.u32 %v9360_v13, %v8234_v12  ;;  %4902 = vmatpush.bf16.msra.mxu1 %v6991_v15  ;;  %v6892_v0 = vld [vmem:[#allocation7 + $0x330] sm:$0xf0]  ;;  %v9922_v12 = vpop.f32.mrf.mxu3 }
 0x225   :  { %v9424_v18 = vld [vmem:[#allocation7 + $0xfac] sm:$0xf0]  ;;  %10147 = vst [vmem:[#allocation23_spill] sm:$0xff] %v9922_v12  ;;  %v6895_v25 = vor.u32 %v9020_v10, %v6892_v0  ;;  %v9420_v12 = vld [vmem:[#allocation7 + $0xf94] sm:$0xf] }
 0x226   :  { %v8491_v32 = vor.u32 %v9424_v18, %v8490_v17  ;;  %v8202_v40 = vld [vmem:[#allocation7 + $0xd50] sm:$0xf]  ;;  %4861 = vmatpush.bf16.msrb.mxu2 %v8235_v28  ;;  %4889 = vmatpush.bf16.msra.mxu0 %v6703_v47  ;;  %v9924_v18 = vpop.f32.mrf.mxu0  ;;  %v8948_v28 = vld [vmem:[#allocation7 + $0xd4] sm:$0xf]  ;;  %v9926_v47 = vpop.f32.mrf.mxu1 }
 0x227   :  { %v9352_v46 = vld [vmem:[#allocation7 + $0xd6c] sm:$0xf0] }
 0x228   :  { %v8458_v24 = vld [vmem:[#allocation7 + $0xf50] sm:$0xf]  ;;  %4875 = vmatpush.bf16.msrb.mxu3 %v8491_v32  ;;  %v8203_v27 = vor.u32 %v9352_v46, %v8202_v40  ;;  %4903 = vmatpush.bf16.msra.mxu1 %v6959_v48  ;;  %v6604_v32 = vld [vmem:[#allocation7 + $0xf0] sm:$0xf0] }
 0x229   :  { %v9416_v49 = vld [vmem:[#allocation7 + $0xf6c] sm:$0xf0]  ;;  %v9012_v40 = vld [vmem:[#allocation7 + $0x2d4] sm:$0xf]  ;;  %v6607_v52 = vor.u32 %v8948_v28, %v6604_v32 }
 0x22a   :  { %v8459_v58 = vor.u32 %v9416_v49, %v8458_v24  ;;  %v8170_v62 = vld [vmem:[#allocation7 + $0xd10] sm:$0xf]  ;;  %4862 = vmatpush.bf16.msrb.mxu2 %v8203_v27  ;;  %4890 = vmatpush.bf16.msra.mxu0 %v6671_v63  ;;  %v6860_v46 = vld [vmem:[#allocation7 + $0x2f0] sm:$0xf0] }
 0x22b   :  { %v9344_v60 = vld [vmem:[#allocation7 + $0xd2c] sm:$0xf0]  ;;  %v6863_v53 = vor.u32 %v9012_v40, %v6860_v46  ;;  %v6572_v63 = vld [vmem:[#allocation7 + $0xb0] sm:$0xf0] }
 0x22c   :  { %v8426_v6 = vld [vmem:[#allocation7 + $0xf10] sm:$0xf]  ;;  %4876 = vmatpush.bf16.msrb.mxu3 %v8459_v58  ;;  %v8171_v13 = vor.u32 %v9344_v60, %v8170_v62  ;;  %4904 = vmatpush.bf16.msra.mxu1 %v6927_v2  ;;  %v8940_v62 = vld [vmem:[#allocation7 + $0x94] sm:$0xf]  ;;  %v4590_v60 = vadd.f32 %v4589_v55, %v9911_v33 }
 0x22d   :  { %v9408_v7 = vld [vmem:[#allocation7 + $0xf2c] sm:$0xf0]  ;;  %v9004_v2 = vld [vmem:[#allocation7 + $0x294] sm:$0xf] }
 0x22e   :  { %v8427_v14 = vor.u32 %v9408_v7, %v8426_v6  ;;  %v8138_v15 = vld [vmem:[#allocation7 + $0xcd0] sm:$0xf]  ;;  %4863 = vmatpush.bf16.msrb.mxu2 %v8171_v13  ;;  %4891 = vmatpush.bf16.msra.mxu0 %v6639_v22  ;;  %v6828_v6 = vld [vmem:[#allocation7 + $0x2b0] sm:$0xf0]  ;;  %v4603_v7 = vpop.f32.mrf.mxu3  ;;  %v4631_v40 = vpop.f32.mrf.mxu1 }
 0x22f   :  { %v9336_v17 = vld [vmem:[#allocation7 + $0xcec] sm:$0xf0]  ;;  %v4604_v5 = vadd.f32 %v4603_v7, %v4590_v60  ;;  %v8996_v28 = vld [vmem:[#allocation7 + $0x254] sm:$0xf] }
 0x230   :  { %v8394_v26 = vld [vmem:[#allocation7 + $0xed0] sm:$0xf]  ;;  %4877 = vmatpush.bf16.msrb.mxu3 %v8427_v14  ;;  %v8139_v48 = vor.u32 %v9336_v17, %v8138_v15  ;;  %4905 = vmatpush.bf16.msra.mxu1 %v6895_v25  ;;  %v4617_v14 = vpop.f32.mrf.mxu0  ;;  %v6575_v15 = vor.u32 %v8940_v62, %v6572_v63  ;;  %v6831_v17 = vor.u32 %v9004_v2, %v6828_v6  ;;  %v6796_v32 = vld [vmem:[#allocation7 + $0x270] sm:$0xf0] }
 0x231   :  { %v9400_v50 = vld [vmem:[#allocation7 + $0xeec] sm:$0xf0]  ;;  %v4618_v33 = vadd.f32 %v4617_v14, %v4604_v5  ;;  %v6508_v62 = vld [vmem:[#allocation7 + $0x30] sm:$0xf0] }
 0x232   :  { %v8395_v24 = vor.u32 %v9400_v50, %v8394_v26  ;;  %v8106_v49 = vld [vmem:[#allocation7 + $0xc90] sm:$0xf]  ;;  %4864 = vmatpush.bf16.msrb.mxu2 %v8139_v48  ;;  %4892 = vmatpush.bf16.msra.mxu0 %v6607_v52  ;;  %v8932_v26 = vld [vmem:[#allocation7 + $0x54] sm:$0xf] }
 0x233   :  { %v9328_v51 = vld [vmem:[#allocation7 + $0xcac] sm:$0xf0]  ;;  %v6540_v50 = vld [vmem:[#allocation7 + $0x70] sm:$0xf0]  ;;  %v9929_v52 = vadd.f32 %v4631_v40, %v4618_v33 }
 0x234   :  { %v8362_v27 = vld [vmem:[#allocation7 + $0xe90] sm:$0xf]  ;;  %4878 = vmatpush.bf16.msrb.mxu3 %v8395_v24  ;;  %v8107_v20 = vor.u32 %v9328_v51, %v8106_v49  ;;  %4906 = vmatpush.bf16.msra.mxu1 %v6863_v53  ;;  %v6543_v53 = vor.u32 %v8932_v26, %v6540_v50  ;;  %v8988_v60 = vld [vmem:[#allocation7 + $0x214] sm:$0xf] }
 0x235   :  { %v9392_v58 = vld [vmem:[#allocation7 + $0xeac] sm:$0xf0]  ;;  %v6764_v63 = vld [vmem:[#allocation7 + $0x230] sm:$0xf0] }
 0x236   :  { %v8363_v10 = vor.u32 %v9392_v58, %v8362_v27  ;;  %v8074_v0 = vld [vmem:[#allocation7 + $0xc50] sm:$0xf]  ;;  %4865 = vmatpush.bf16.msrb.mxu2 %v8107_v20  ;;  %4893 = vmatpush.bf16.msra.mxu0 %v6575_v15  ;;  %v6799_v27 = vor.u32 %v8996_v28, %v6796_v32  ;;  %v8924_v58 = vld [vmem:[#allocation7 + $0x14] sm:$0xf] }
 0x237   :  { %v9320_v13 = vld [vmem:[#allocation7 + $0xc6c] sm:$0xf0]  ;;  %v9108_v2 = vld [vmem:[#allocation7 + $0x5d4] sm:$0xf]  ;;  %v6511_v15 = vor.u32 %v8924_v58, %v6508_v62 }
 0x238   :  { %v8330_v22 = vld [vmem:[#allocation7 + $0xe50] sm:$0xf]  ;;  %4879 = vmatpush.bf16.msrb.mxu3 %v8363_v10  ;;  %v8075_v48 = vor.u32 %v9320_v13, %v8074_v0  ;;  %4907 = vmatpush.bf16.msra.mxu1 %v6831_v17  ;;  %v7244_v6 = vld [vmem:[#allocation7 + $0x5f0] sm:$0xf0]  ;;  %v6767_v17 = vor.u32 %v8988_v60, %v6764_v63 }
 0x239   :  { %v9384_v25 = vld [vmem:[#allocation7 + $0xe6c] sm:$0xf0]  ;;  %v9172_v7 = vld [vmem:[#allocation7 + $0x7d4] sm:$0xf] }
 0x23a   :  { %v8042_v46 = vld [vmem:[#allocation7 + $0xc10] sm:$0xf]  ;;  %v8331_v24 = vor.u32 %v9384_v25, %v8330_v22  ;;  %v7500_v5 = vld [vmem:[#allocation7 + $0x7f0] sm:$0xf0]  ;;  %4866 = vmatpush.bf16.msrb.mxu2 %v8075_v48  ;;  %4894 = vmatpush.bf16.msra.mxu0 %v6543_v53  ;;  %v7247_v25 = vor.u32 %v9108_v2, %v7244_v6 }
 0x23b   :  { %v9312_v49 = vld [vmem:[#allocation7 + $0xc2c] sm:$0xf0]  ;;  %v9236_v20 = vld [vmem:[#allocation7 + $0x9d4] sm:$0xf]  ;;  %v7503_v26 = vor.u32 %v9172_v7, %v7500_v5 }
 0x23c   :  { %v8298_v51 = vld [vmem:[#allocation7 + $0xe10] sm:$0xf]  ;;  %4880 = vmatpush.bf16.msrb.mxu3 %v8331_v24  ;;  %v8043_v10 = vor.u32 %v9312_v49, %v8042_v46  ;;  %v7756_v13 = vld [vmem:[#allocation7 + $0x9f0] sm:$0xf0]  ;;  %4908 = vmatpush.bf16.msra.mxu1 %v6799_v27  ;;  %v9931_v49 = vpop.f32.mrf.mxu0 }
 0x23d   :  { %v9376_v55 = vld [vmem:[#allocation7 + $0xe2c] sm:$0xf0]  ;;  %v9300_v14 = vld [vmem:[#allocation7 + $0xbd4] sm:$0xf]  ;;  %v7759_v28 = vor.u32 %v9236_v20, %v7756_v13 }
 0x23e   :  { %v8299_v0 = vor.u32 %v9376_v55, %v8298_v51  ;;  %v8012_v22 = vld [vmem:[#allocation7 + $0xbf0] sm:$0xf0]  ;;  %4867 = vmatpush.bf16.msrb.mxu2 %v8043_v10  ;;  %4895 = vmatpush.bf16.msra.mxu0 %v6511_v15  ;;  %v9933_v51 = vpop.f32.mrf.mxu1 }
 0x23f   :  { %v9100_v33 = vld [vmem:[#allocation7 + $0x594] sm:$0xf]  ;;  %v8015_v32 = vor.u32 %v9300_v14, %v8012_v22  ;;  %v9940_v14 = vpop.f32.mrf.mxu2 }
 0x240   :  { %v7212_v50 = vld [vmem:[#allocation7 + $0x5b0] sm:$0xf0]  ;;  %4881 = vmatpush.bf16.msrb.mxu3 %v8299_v0  ;;  %4909 = vmatpush.bf16.msra.mxu1 %v6767_v17 }
 0x241   :  { %v9164_v40 = vld [vmem:[#allocation7 + $0x794] sm:$0xf]  ;;  %v7215_v55 = vor.u32 %v9100_v33, %v7212_v50  ;;  %4868 = vmatmul.bf16.vlgmr.msrb.gmra.mxu2 %v9820_v16  ;;  %4896 = vmatmul.bf16.vlgmr.msra.gmra.mxu0 %v9790_v35 }
 0x242   :  { %v7724_v46 = vld [vmem:[#allocation7 + $0x9b0] sm:$0xf0]  ;;  %4916 = vmatpush.bf16.msra.mxu2 %v7247_v25  ;;  %v7471_v53 = vor.u32 %v9164_v40, %v7468_v34  ;;  %4944 = vmatpush.bf16.msrb.mxu0 %v7759_v28 }
 0x243   :  { %v9292_v48 = vld [vmem:[#allocation7 + $0xb94] sm:$0xf]  ;;  %v7727_v62 = vor.u32 %v9228_v1, %v7724_v46  ;;  %4882 = vmatmul.bf16.vlgmr.msrb.gmra.mxu3 %v9822_v11  ;;  %4910 = vmatmul.bf16.vlgmr.msra.gmra.mxu1 %v9792_v36  ;;  %v1755_v1 = vperm.slane %v9904_v57, 3 }
 0x244   :  { %v7980_v24 = vld [vmem:[#allocation7 + $0xbb0] sm:$0xf0]  ;;  %4930 = vmatpush.bf16.msra.mxu3 %v7503_v26  ;;  %4958 = vmatpush.bf16.msrb.mxu1 %v8015_v32  ;;  %v9942_v32 = vpop.f32.mrf.mxu3  ;;  %v4673_v40 = vpop.f32.mrf.mxu0 }
 0x245   :  { %v9092_v27 = vld [vmem:[#allocation7 + $0x554] sm:$0xf]  ;;  %v7983_v60 = vor.u32 %v9292_v48, %v7980_v24 }
 0x246   :  { %v7180_v58 = vld [vmem:[#allocation7 + $0x570] sm:$0xf0]  ;;  %4917 = vmatpush.bf16.msra.mxu2 %v7215_v55  ;;  %4945 = vmatpush.bf16.msrb.mxu0 %v7727_v62  ;;  %v4687_v46 = vpop.f32.mrf.mxu1 }
 0x247   :  { %v9156_v63 = vld [vmem:[#allocation7 + $0x754] sm:$0xf]  ;;  %v7183_v34 = vor.u32 %v9092_v27, %v7180_v58  ;;  %v4674_v27 = vadd.f32 %v4673_v40, %v1755_v1 }
 0x248   :  { %v7436_v2 = vld [vmem:[#allocation7 + $0x770] sm:$0xf0]  ;;  %4931 = vmatpush.bf16.msra.mxu3 %v7471_v53  ;;  %4959 = vmatpush.bf16.msrb.mxu1 %v7983_v60 }
 0x249   :  { %v9220_v6 = vld [vmem:[#allocation7 + $0x954] sm:$0xf]  ;;  %v7439_v10 = vor.u32 %v9156_v63, %v7436_v2 }
 0x24a   :  { %v7692_v7 = vld [vmem:[#allocation7 + $0x970] sm:$0xf0]  ;;  %4918 = vmatpush.bf16.msra.mxu2 %v7183_v34 }
 0x24b   :  { %v9284_v5 = vld [vmem:[#allocation7 + $0xb54] sm:$0xf]  ;;  %v7695_v22 = vor.u32 %v9220_v6, %v7692_v7 }
 0x24c   :  { %v7948_v20 = vld [vmem:[#allocation7 + $0xb70] sm:$0xf0]  ;;  %4932 = vmatpush.bf16.msra.mxu3 %v7439_v10 }
 0x24d   :  { %v9084_v0 = vld [vmem:[#allocation7 + $0x514] sm:$0xf]  ;;  %v7951_v15 = vor.u32 %v9284_v5, %v7948_v20  ;;  %4946 = vmatpush.bf16.msrb.mxu0 %v7695_v22  ;;  %v9946_v20 = vadd.f32 %v4687_v46, %v4674_v27  ;;  %v4659_v27 = vpop.f32.mrf.mxu3 }
 0x24e   :  { %v7148_v13 = vld [vmem:[#allocation7 + $0x530] sm:$0xf0] }
 0x24f   :  { %v9148_v17 = vld [vmem:[#allocation7 + $0x714] sm:$0xf]  ;;  %v7151_v48 = vor.u32 %v9084_v0, %v7148_v13  ;;  %4960 = vmatpush.bf16.msrb.mxu1 %v7951_v15 }
 0x250   :  { %v7404_v25 = vld [vmem:[#allocation7 + $0x730] sm:$0xf0] }
 0x251   :  { %v9212_v26 = vld [vmem:[#allocation7 + $0x914] sm:$0xf]  ;;  %v7407_v24 = vor.u32 %v9148_v17, %v7404_v25  ;;  %4919 = vmatpush.bf16.msra.mxu2 %v7151_v48  ;;  %v4645_v17 = vpop.f32.mrf.mxu2 }
 0x252   :  { %v7660_v33 = vld [vmem:[#allocation7 + $0x930] sm:$0xf0] }
 0x253   :  { %v9276_v50 = vld [vmem:[#allocation7 + $0xb14] sm:$0xf]  ;;  %v7663_v58 = vor.u32 %v9212_v26, %v7660_v33  ;;  %4933 = vmatpush.bf16.msra.mxu3 %v7407_v24  ;;  %v4675_v24 = vpop.f32.mrf.mxu0 }
 0x254   :  { %v7916_v28 = vld [vmem:[#allocation7 + $0xb30] sm:$0xf0] }
 0x255   :  { %v9076_v55 = vld [vmem:[#allocation7 + $0x4d4] sm:$0xf]  ;;  %v7919_v62 = vor.u32 %v9276_v50, %v7916_v28  ;;  %4947 = vmatpush.bf16.msrb.mxu0 %v7663_v58  ;;  %v4646_v50 = vadd.f32 %v4645_v17, %v9929_v52 }
 0x256   :  { %v7116_v53 = vld [vmem:[#allocation7 + $0x4f0] sm:$0xf0] }
 0x257   :  { %v9140_v60 = vld [vmem:[#allocation7 + $0x6d4] sm:$0xf]  ;;  %v7119_v34 = vor.u32 %v9076_v55, %v7116_v53  ;;  %4961 = vmatpush.bf16.msrb.mxu1 %v7919_v62  ;;  %v9949_v48 = vadd.f32 %v4659_v27, %v4646_v50 }
 0x258   :  { %v7372_v63 = vld [vmem:[#allocation7 + $0x6f0] sm:$0xf0] }
 0x259   :  { %v9204_v2 = vld [vmem:[#allocation7 + $0x8d4] sm:$0xf]  ;;  %v7375_v10 = vor.u32 %v9140_v60, %v7372_v63  ;;  %4920 = vmatpush.bf16.msra.mxu2 %v7119_v34  ;;  %v4676_v60 = vadd.f32 %v4675_v24, %v1755_v1 }
 0x25a   :  { %v7628_v6 = vld [vmem:[#allocation7 + $0x8f0] sm:$0xf0] }
 0x25b   :  { %v9268_v7 = vld [vmem:[#allocation7 + $0xad4] sm:$0xf]  ;;  %v7631_v22 = vor.u32 %v9204_v2, %v7628_v6  ;;  %4934 = vmatpush.bf16.msra.mxu3 %v7375_v10 }
 0x25c   :  { %v7884_v5 = vld [vmem:[#allocation7 + $0xaf0] sm:$0xf0] }
 0x25d   :  { %v9068_v0 = vld [vmem:[#allocation7 + $0x494] sm:$0xf]  ;;  %v7887_v15 = vor.u32 %v9268_v7, %v7884_v5  ;;  %4948 = vmatpush.bf16.msrb.mxu0 %v7631_v22  ;;  %v4689_v5 = vpop.f32.mrf.mxu1 }
 0x25e   :  { %v7084_v13 = vld [vmem:[#allocation7 + $0x4b0] sm:$0xf0]  ;;  %v9953_v50 = vadd.f32 %v4689_v5, %v4676_v60 }
 0x25f   :  { %v9132_v25 = vld [vmem:[#allocation7 + $0x694] sm:$0xf]  ;;  %v7087_v55 = vor.u32 %v9068_v0, %v7084_v13  ;;  %4962 = vmatpush.bf16.msrb.mxu1 %v7887_v15 }
 0x260   :  { %v7340_v26 = vld [vmem:[#allocation7 + $0x6b0] sm:$0xf0] }
 0x261   :  { %v9196_v33 = vld [vmem:[#allocation7 + $0x894] sm:$0xf]  ;;  %v7343_v53 = vor.u32 %v9132_v25, %v7340_v26  ;;  %4921 = vmatpush.bf16.msra.mxu2 %v7087_v55 }
 0x262   :  { %v7596_v28 = vld [vmem:[#allocation7 + $0x8b0] sm:$0xf0] }
 0x263   :  { %v9260_v40 = vld [vmem:[#allocation7 + $0xa94] sm:$0xf]  ;;  %v7599_v63 = vor.u32 %v9196_v33, %v7596_v28  ;;  %4935 = vmatpush.bf16.msra.mxu3 %v7343_v53 }
 0x264   :  { %v7852_v46 = vld [vmem:[#allocation7 + $0xab0] sm:$0xf0] }
 0x265   :  { %v9060_v58 = vld [vmem:[#allocation7 + $0x454] sm:$0xf]  ;;  %v7855_v52 = vor.u32 %v9260_v40, %v7852_v46  ;;  %4949 = vmatpush.bf16.msrb.mxu0 %v7599_v63 }
 0x266   :  { %v7052_v62 = vld [vmem:[#allocation7 + $0x470] sm:$0xf0] }
 0x267   :  { %v9124_v2 = vld [vmem:[#allocation7 + $0x654] sm:$0xf]  ;;  %v7055_v13 = vor.u32 %v9060_v58, %v7052_v62  ;;  %4963 = vmatpush.bf16.msrb.mxu1 %v7855_v52  ;;  %v8985_v58 = vld [vmem:[#allocation7 + $0x1f4] sm:$0xf0] }
 0x268   :  { %v7308_v6 = vld [vmem:[#allocation7 + $0x670] sm:$0xf0]  ;;  %v6994_v62 = vld [vmem:[#allocation7 + $0x3d8] sm:$0xf] }
 0x269   :  { %v9188_v7 = vld [vmem:[#allocation7 + $0x854] sm:$0xf]  ;;  %v7311_v22 = vor.u32 %v9124_v2, %v7308_v6  ;;  %4922 = vmatpush.bf16.msra.mxu2 %v7055_v13  ;;  %v9049_v2 = vld [vmem:[#allocation7 + $0x3f4] sm:$0xf0] }
 0x26a   :  { %v7564_v34 = vld [vmem:[#allocation7 + $0x870] sm:$0xf0]  ;;  %v6995_v21 = vor.u32 %v9049_v2, %v6994_v62  ;;  %v6962_v13 = vld [vmem:[#allocation7 + $0x398] sm:$0xf] }
 0x26b   :  { %v9252_v10 = vld [vmem:[#allocation7 + $0xa54] sm:$0xf]  ;;  %v7567_v1 = vor.u32 %v9188_v7, %v7564_v34  ;;  %4936 = vmatpush.bf16.msra.mxu3 %v7311_v22  ;;  %v9041_v22 = vld [vmem:[#allocation7 + $0x3b4] sm:$0xf0] }
 0x26c   :  { %v7820_v17 = vld [vmem:[#allocation7 + $0xa70] sm:$0xf0]  ;;  %v6642_v2 = vld [vmem:[#allocation7 + $0x118] sm:$0xf] }
 0x26d   :  { %v9052_v0 = vld [vmem:[#allocation7 + $0x414] sm:$0xf]  ;;  %v7823_v33 = vor.u32 %v9252_v10, %v7820_v17  ;;  %4950 = vmatpush.bf16.msrb.mxu0 %v7567_v1  ;;  %v6739_v17 = vor.u32 %v8985_v58, %v6738_v23  ;;  %v6963_v1 = vor.u32 %v9041_v22, %v6962_v13 }
 0x26e   :  { %v7020_v15 = vld [vmem:[#allocation7 + $0x430] sm:$0xf0] }
 0x26f   :  { %v9116_v25 = vld [vmem:[#allocation7 + $0x614] sm:$0xf]  ;;  %v7023_v55 = vor.u32 %v9052_v0, %v7020_v15  ;;  %4964 = vmatpush.bf16.msrb.mxu1 %v7823_v33  ;;  %v8977_v0 = vld [vmem:[#allocation7 + $0x1b4] sm:$0xf0] }
 0x270   :  { %v7276_v26 = vld [vmem:[#allocation7 + $0x630] sm:$0xf0]  ;;  %v6707_v23 = vor.u32 %v8977_v0, %v6706_v61 }
 0x271   :  { %v9180_v28 = vld [vmem:[#allocation7 + $0x814] sm:$0xf]  ;;  %v7279_v53 = vor.u32 %v9116_v25, %v7276_v26  ;;  %4923 = vmatpush.bf16.msra.mxu2 %v7023_v55  ;;  %v8495_v25 = vor.u32 %v9420_v12, %v8492_v19 }
 0x272   :  { %v7532_v40 = vld [vmem:[#allocation7 + $0x830] sm:$0xf0] }
 0x273   :  { %v9244_v46 = vld [vmem:[#allocation7 + $0xa14] sm:$0xf]  ;;  %v7535_v63 = vor.u32 %v9180_v28, %v7532_v40  ;;  %4937 = vmatpush.bf16.msra.mxu3 %v7279_v53  ;;  %v6674_v40 = vld [vmem:[#allocation7 + $0x158] sm:$0xf] }
 0x274   :  { %v7788_v27 = vld [vmem:[#allocation7 + $0xa30] sm:$0xf0]  ;;  %4924 = vmatmul.bf16.vlgmr.msra.gmra.mxu2 %v9802_v3 }
 0x275   :  { %v9364_v24 = vld [vmem:[#allocation7 + $0xdd4] sm:$0xf]  ;;  %v7791_v52 = vor.u32 %v9244_v46, %v7788_v27  ;;  %4951 = vmatpush.bf16.msrb.mxu0 %v7535_v63  ;;  %v8969_v46 = vld [vmem:[#allocation7 + $0x174] sm:$0xf0] }
 0x276   :  { %v9428_v60 = vld [vmem:[#allocation7 + $0xfd4] sm:$0xf]  ;;  %v8271_v6 = vor.u32 %v9364_v24, %v8268_v59  ;;  %4938 = vmatmul.bf16.vlgmr.msra.gmra.mxu3 %v9804_v4  ;;  %v6930_v27 = vld [vmem:[#allocation7 + $0x358] sm:$0xf]  ;;  %v6675_v55 = vor.u32 %v8969_v46, %v6674_v40 }
 0x277   :  { %v8524_v5 = vld [vmem:[#allocation7 + $0xff0] sm:$0xf0]  ;;  %4965 = vmatpush.bf16.msrb.mxu1 %v7791_v52  ;;  %v9033_v24 = vld [vmem:[#allocation7 + $0x374] sm:$0xf0] }
 0x278   :  { %v8527_v7 = vor.u32 %v9428_v60, %v8524_v5  ;;  %v9356_v34 = vld [vmem:[#allocation7 + $0xd94] sm:$0xf]  ;;  %4972 = vmatpush.bf16.msrb.mxu2 %v8271_v6  ;;  %4952 = vmatmul.bf16.vlgmr.msrb.gmra.mxu0 %v9810_v44  ;;  %v9959_v60 = vpop.f32.mrf.mxu2  ;;  %v9961_v5 = vpop.f32.mrf.mxu3  ;;  %v6931_v53 = vor.u32 %v9033_v24, %v6930_v27  ;;  %v8961_v63 = vld [vmem:[#allocation7 + $0x134] sm:$0xf0] }
 0x279   :  { %v8236_v10 = vld [vmem:[#allocation7 + $0xdb0] sm:$0xf0]  ;;  %5000 = vmatpush.bf16.msra.mxu0 %v6739_v17  ;;  %v6898_v52 = vld [vmem:[#allocation7 + $0x318] sm:$0xf]  ;;  %v6643_v0 = vor.u32 %v8961_v63, %v6642_v2 }
 0x27a   :  { %4986 = vmatpush.bf16.msrb.mxu3 %v8527_v7  ;;  %v8239_v15 = vor.u32 %v9356_v34, %v8236_v10  ;;  %v9348_v59 = vld [vmem:[#allocation7 + $0xd54] sm:$0xf]  ;;  %4966 = vmatmul.bf16.vlgmr.msrb.gmra.mxu1 %v9812_v45  ;;  %v9025_v6 = vld [vmem:[#allocation7 + $0x334] sm:$0xf0] }
 0x27b   :  { %v8204_v26 = vld [vmem:[#allocation7 + $0xd70] sm:$0xf0]  ;;  %5014 = vmatpush.bf16.msra.mxu1 %v6995_v21  ;;  %v6899_v13 = vor.u32 %v9025_v6, %v6898_v52 }
 0x27c   :  { %v9412_v33 = vld [vmem:[#allocation7 + $0xf54] sm:$0xf]  ;;  %4973 = vmatpush.bf16.msrb.mxu2 %v8239_v15  ;;  %v8207_v19 = vor.u32 %v9348_v59, %v8204_v26  ;;  %v8953_v59 = vld [vmem:[#allocation7 + $0xf4] sm:$0xf0] }
 0x27d   :  { %v8460_v28 = vld [vmem:[#allocation7 + $0xf70] sm:$0xf0]  ;;  %5001 = vmatpush.bf16.msra.mxu0 %v6707_v23  ;;  %v6866_v26 = vld [vmem:[#allocation7 + $0x2d8] sm:$0xf] }
 0x27e   :  { %4987 = vmatpush.bf16.msrb.mxu3 %v8495_v25  ;;  %v8463_v21 = vor.u32 %v9412_v33, %v8460_v28  ;;  %v9340_v61 = vld [vmem:[#allocation7 + $0xd14] sm:$0xf]  ;;  %v6610_v25 = vld [vmem:[#allocation7 + $0xd8] sm:$0xf] }
 0x27f   :  { %v8172_v12 = vld [vmem:[#allocation7 + $0xd30] sm:$0xf0]  ;;  %5015 = vmatpush.bf16.msra.mxu1 %v6963_v1  ;;  %v9017_v23 = vld [vmem:[#allocation7 + $0x2f4] sm:$0xf0]  ;;  %v6611_v46 = vor.u32 %v8953_v59, %v6610_v25 }
 0x280   :  { %v9404_v58 = vld [vmem:[#allocation7 + $0xf14] sm:$0xf]  ;;  %4974 = vmatpush.bf16.msrb.mxu2 %v8207_v19  ;;  %v8175_v7 = vor.u32 %v9340_v61, %v8172_v12  ;;  %v6867_v27 = vor.u32 %v9017_v23, %v6866_v26  ;;  %v4701_v24 = vpop.f32.mrf.mxu2  ;;  %v4715_v19 = vpop.f32.mrf.mxu3  ;;  %v6578_v12 = vld [vmem:[#allocation7 + $0x98] sm:$0xf] }
 0x281   :  { %v8428_v62 = vld [vmem:[#allocation7 + $0xf30] sm:$0xf0]  ;;  %5002 = vmatpush.bf16.msra.mxu0 %v6675_v55  ;;  %v4702_v55 = vadd.f32 %v4701_v24, %v9946_v20  ;;  %v8937_v20 = vld [vmem:[#allocation7 + $0x74] sm:$0xf0]  ;;  %v4743_v26 = vpop.f32.mrf.mxu1 }
 0x282   :  { %4988 = vmatpush.bf16.msrb.mxu3 %v8463_v21  ;;  %v8431_v34 = vor.u32 %v9404_v58, %v8428_v62  ;;  %v9332_v10 = vld [vmem:[#allocation7 + $0xcd4] sm:$0xf]  ;;  %v6834_v58 = vld [vmem:[#allocation7 + $0x298] sm:$0xf] }
 0x283   :  { %v8140_v17 = vld [vmem:[#allocation7 + $0xcf0] sm:$0xf0]  ;;  %5016 = vmatpush.bf16.msra.mxu1 %v6931_v53  ;;  %v8945_v53 = vld [vmem:[#allocation7 + $0xb4] sm:$0xf0]  ;;  %v4716_v2 = vadd.f32 %v4715_v19, %v4702_v55 }
 0x284   :  { %v9396_v22 = vld [vmem:[#allocation7 + $0xed4] sm:$0xf]  ;;  %4975 = vmatpush.bf16.msrb.mxu2 %v8175_v7  ;;  %v8143_v1 = vor.u32 %v9332_v10, %v8140_v17  ;;  %v9009_v62 = vld [vmem:[#allocation7 + $0x2b4] sm:$0xf0]  ;;  %v6579_v10 = vor.u32 %v8945_v53, %v6578_v12 }
 0x285   :  { %v8396_v15 = vld [vmem:[#allocation7 + $0xef0] sm:$0xf0]  ;;  %5003 = vmatpush.bf16.msra.mxu0 %v6643_v0  ;;  %v6835_v17 = vor.u32 %v9009_v62, %v6834_v58  ;;  %v6802_v25 = vld [vmem:[#allocation7 + $0x258] sm:$0xf] }
 0x286   :  { %4989 = vmatpush.bf16.msrb.mxu3 %v8431_v34  ;;  %v8399_v33 = vor.u32 %v9396_v22, %v8396_v15  ;;  %v9324_v28 = vld [vmem:[#allocation7 + $0xc94] sm:$0xf]  ;;  %v4729_v34 = vpop.f32.mrf.mxu0  ;;  %v6546_v22 = vld [vmem:[#allocation7 + $0x58] sm:$0xf] }
 0x287   :  { %v8108_v40 = vld [vmem:[#allocation7 + $0xcb0] sm:$0xf0]  ;;  %5017 = vmatpush.bf16.msra.mxu1 %v6899_v13  ;;  %v4730_v15 = vadd.f32 %v4729_v34, %v4716_v2  ;;  %v9001_v59 = vld [vmem:[#allocation7 + $0x274] sm:$0xf0] }
 0x288   :  { %v9388_v21 = vld [vmem:[#allocation7 + $0xe94] sm:$0xf]  ;;  %4976 = vmatpush.bf16.msrb.mxu2 %v8143_v1  ;;  %v8111_v63 = vor.u32 %v9324_v28, %v8108_v40  ;;  %v6803_v19 = vor.u32 %v9001_v59, %v6802_v25  ;;  %v8929_v12 = vld [vmem:[#allocation7 + $0x34] sm:$0xf0] }
 0x289   :  { %v8364_v61 = vld [vmem:[#allocation7 + $0xeb0] sm:$0xf0]  ;;  %5004 = vmatpush.bf16.msra.mxu0 %v6611_v46  ;;  %v9964_v46 = vadd.f32 %v4743_v26, %v4730_v15  ;;  %v6770_v55 = vld [vmem:[#allocation7 + $0x218] sm:$0xf] }
 0x28a   :  { %4990 = vmatpush.bf16.msrb.mxu3 %v8399_v33  ;;  %v8367_v52 = vor.u32 %v9388_v21, %v8364_v61  ;;  %v9316_v6 = vld [vmem:[#allocation7 + $0xc54] sm:$0xf]  ;;  %v4703_v21 = vpop.f32.mrf.mxu2  ;;  %v6514_v61 = vld [vmem:[#allocation7 + $0x18] sm:$0xf] }
 0x28b   :  { %v8076_v7 = vld [vmem:[#allocation7 + $0xc70] sm:$0xf0]  ;;  %5018 = vmatpush.bf16.msra.mxu1 %v6867_v27  ;;  %v6547_v27 = vor.u32 %v8937_v20, %v6546_v22  ;;  %v4704_v53 = vadd.f32 %v4703_v21, %v9953_v50  ;;  %v8993_v58 = vld [vmem:[#allocation7 + $0x234] sm:$0xf0]  ;;  %v6515_v15 = vor.u32 %v8929_v12, %v6514_v61 }
 0x28c   :  { %v9380_v0 = vld [vmem:[#allocation7 + $0xe54] sm:$0xf]  ;;  %4977 = vmatpush.bf16.msrb.mxu2 %v8111_v63  ;;  %v8079_v1 = vor.u32 %v9316_v6, %v8076_v7  ;;  %v7250_v62 = vld [vmem:[#allocation7 + $0x5d8] sm:$0xf]  ;;  %v4717_v63 = vpop.f32.mrf.mxu3  ;;  %v6771_v50 = vor.u32 %v8993_v58, %v6770_v55 }
 0x28d   :  { %v8332_v13 = vld [vmem:[#allocation7 + $0xe70] sm:$0xf0]  ;;  %5005 = vmatpush.bf16.msra.mxu0 %v6579_v10  ;;  %v9113_v2 = vld [vmem:[#allocation7 + $0x5f4] sm:$0xf0]  ;;  %v9967_v34 = vadd.f32 %v4717_v63, %v4704_v53 }
 0x28e   :  { %v9308_v23 = vld [vmem:[#allocation7 + $0xc14] sm:$0xf]  ;;  %4991 = vmatpush.bf16.msrb.mxu3 %v8367_v52  ;;  %v8335_v33 = vor.u32 %v9380_v0, %v8332_v13  ;;  %v7506_v52 = vld [vmem:[#allocation7 + $0x7d8] sm:$0xf]  ;;  %v7251_v20 = vor.u32 %v9113_v2, %v7250_v62 }
 0x28f   :  { %v8044_v28 = vld [vmem:[#allocation7 + $0xc30] sm:$0xf0]  ;;  %5019 = vmatpush.bf16.msra.mxu1 %v6835_v17  ;;  %v9177_v6 = vld [vmem:[#allocation7 + $0x7f4] sm:$0xf0] }
 0x290   :  { %v9372_v40 = vld [vmem:[#allocation7 + $0xe14] sm:$0xf]  ;;  %v7762_v7 = vld [vmem:[#allocation7 + $0x9d8] sm:$0xf]  ;;  %4978 = vmatpush.bf16.msrb.mxu2 %v8079_v1  ;;  %v8047_v10 = vor.u32 %v9308_v23, %v8044_v28  ;;  %v7507_v25 = vor.u32 %v9177_v6, %v7506_v52 }
 0x291   :  { %v8300_v24 = vld [vmem:[#allocation7 + $0xe30] sm:$0xf0]  ;;  %v9241_v0 = vld [vmem:[#allocation7 + $0x9f4] sm:$0xf0]  ;;  %5006 = vmatpush.bf16.msra.mxu0 %v6547_v27 }
 0x292   :  { %4992 = vmatpush.bf16.msrb.mxu3 %v8335_v33  ;;  %v8303_v17 = vor.u32 %v9372_v40, %v8300_v24  ;;  %v8018_v13 = vld [vmem:[#allocation7 + $0xbd8] sm:$0xf]  ;;  %v7763_v21 = vor.u32 %v9241_v0, %v7762_v7  ;;  %v10148_v24 = vperm.slane %v9904_v57, 2 }
 0x293   :  { %v9305_v22 = vld [vmem:[#allocation7 + $0xbf4] sm:$0xf0]  ;;  %5020 = vmatpush.bf16.msra.mxu1 %v6803_v19 }
 0x294   :  { %v7218_v59 = vld [vmem:[#allocation7 + $0x598] sm:$0xf]  ;;  %v8019_v43 = vor.u32 %v9305_v22, %v8018_v13  ;;  %4979 = vmatpush.bf16.msrb.mxu2 %v8047_v10  ;;  %v4564_v27 = vadd.f32 %v9924_v18, %v10148_v24 }
 0x295   :  { %v9105_v26 = vld [vmem:[#allocation7 + $0x5b4] sm:$0xf0]  ;;  %5007 = vmatpush.bf16.msra.mxu0 %v6515_v15 }
 0x296   :  { %v9169_v1 = vld [vmem:[#allocation7 + $0x7b4] sm:$0xf0]  ;;  %4993 = vmatpush.bf16.msrb.mxu3 %v8303_v17  ;;  %v7219_v19 = vor.u32 %v9105_v26, %v7218_v59  ;;  %v4578_v6 = vadd.f32 %v9926_v47, %v4564_v27 }
 0x297   :  { %v7730_v33 = vld [vmem:[#allocation7 + $0x998] sm:$0xf]  ;;  %5021 = vmatpush.bf16.msra.mxu1 %v6771_v50  ;;  %v7475_v61 = vor.u32 %v9169_v1, %v7474_v30  ;;  %4980 = vmatmul.bf16.vlgmr.msrb.gmra.mxu2 %v9820_v16 }
 0x298   :  { %v9233_v23 = vld [vmem:[#allocation7 + $0x9b4] sm:$0xf0]  ;;  %5028 = vmatpush.bf16.msra.mxu2 %v7251_v20  ;;  %5008 = vmatmul.bf16.vlgmr.msra.gmra.mxu0 %v9790_v35  ;;  %v4592_v17 = vadd.f32 %v9940_v14, %v4578_v6 }
 0x299   :  { %v7986_v28 = vld [vmem:[#allocation7 + $0xb98] sm:$0xf]  ;;  %5056 = vmatpush.bf16.msrb.mxu0 %v7763_v21  ;;  %v7731_v53 = vor.u32 %v9233_v23, %v7730_v33  ;;  %4994 = vmatmul.bf16.vlgmr.msrb.gmra.mxu3 %v9822_v11 }
 0x29a   :  { %v9297_v40 = vld [vmem:[#allocation7 + $0xbb4] sm:$0xf0]  ;;  %5042 = vmatpush.bf16.msra.mxu3 %v7507_v25  ;;  %5022 = vmatmul.bf16.vlgmr.msra.gmra.mxu1 %v9792_v36  ;;  %v4606_v33 = vadd.f32 %v9942_v32, %v4592_v17  ;;  %v4731_v17 = vpop.f32.mrf.mxu0 }
 0x29b   :  { %v7186_v12 = vld [vmem:[#allocation7 + $0x558] sm:$0xf]  ;;  %5070 = vmatpush.bf16.msrb.mxu1 %v8019_v43  ;;  %v7987_v58 = vor.u32 %v9297_v40, %v7986_v28 }
 0x29c   :  { %v9097_v55 = vld [vmem:[#allocation7 + $0x574] sm:$0xf0]  ;;  %5029 = vmatpush.bf16.msra.mxu2 %v7219_v19 }
 0x29d   :  { %v7442_v62 = vld [vmem:[#allocation7 + $0x758] sm:$0xf]  ;;  %v7187_v43 = vor.u32 %v9097_v55, %v7186_v12  ;;  %5057 = vmatpush.bf16.msrb.mxu0 %v7731_v53 }
 0x29e   :  { %v9161_v2 = vld [vmem:[#allocation7 + $0x774] sm:$0xf0]  ;;  %5043 = vmatpush.bf16.msra.mxu3 %v7475_v61 }
 0x29f   :  { %v7698_v63 = vld [vmem:[#allocation7 + $0x958] sm:$0xf]  ;;  %v7443_v30 = vor.u32 %v9161_v2, %v7442_v62  ;;  %5071 = vmatpush.bf16.msrb.mxu1 %v7987_v58  ;;  %v4620_v62 = vadd.f32 %v9931_v49, %v4606_v33 }
 0x2a0   :  { %v9225_v57 = vld [vmem:[#allocation7 + $0x974] sm:$0xf0]  ;;  %5030 = vmatpush.bf16.msra.mxu2 %v7187_v43 }
 0x2a1   :  { %v7954_v18 = vld [vmem:[#allocation7 + $0xb58] sm:$0xf]  ;;  %v7699_v0 = vor.u32 %v9225_v57, %v7698_v63  ;;  %v4757_v63 = vpop.f32.mrf.mxu2  ;;  %v4771_v57 = vpop.f32.mrf.mxu3 }
 0x2a2   :  { %v9289_v52 = vld [vmem:[#allocation7 + $0xb74] sm:$0xf0]  ;;  %5044 = vmatpush.bf16.msra.mxu3 %v7443_v30  ;;  %v4758_v43 = vadd.f32 %v4757_v63, %v9964_v46 }
 0x2a3   :  { %v7154_v7 = vld [vmem:[#allocation7 + $0x518] sm:$0xf]  ;;  %v7955_v13 = vor.u32 %v9289_v52, %v7954_v18  ;;  %5058 = vmatpush.bf16.msrb.mxu0 %v7699_v0 }
 0x2a4   :  { %v9089_v10 = vld [vmem:[#allocation7 + $0x534] sm:$0xf0]  ;;  %v4772_v49 = vadd.f32 %v4771_v57, %v4758_v43 }
 0x2a5   :  { %v7410_v22 = vld [vmem:[#allocation7 + $0x718] sm:$0xf]  ;;  %v7155_v59 = vor.u32 %v9089_v10, %v7154_v7  ;;  %5072 = vmatpush.bf16.msrb.mxu1 %v7955_v13  ;;  %v4732_v13 = vadd.f32 %v4731_v17, %v9967_v34 }
 0x2a6   :  { %v9153_v15 = vld [vmem:[#allocation7 + $0x734] sm:$0xf0] }
 0x2a7   :  { %v7666_v50 = vld [vmem:[#allocation7 + $0x918] sm:$0xf]  ;;  %v7411_v26 = vor.u32 %v9153_v15, %v7410_v22  ;;  %5031 = vmatpush.bf16.msra.mxu2 %v7155_v59 }
 0x2a8   :  { %v9217_v47 = vld [vmem:[#allocation7 + $0x934] sm:$0xf0] }
 0x2a9   :  { %v7922_v20 = vld [vmem:[#allocation7 + $0xb18] sm:$0xf]  ;;  %v7667_v14 = vor.u32 %v9217_v47, %v7666_v50  ;;  %5045 = vmatpush.bf16.msra.mxu3 %v7411_v26  ;;  %v4634_v47 = vadd.f32 %v9933_v51, %v4620_v62 }
 0x2aa   :  { %v9281_v25 = vld [vmem:[#allocation7 + $0xb34] sm:$0xf0] }
 0x2ab   :  { %v7122_v21 = vld [vmem:[#allocation7 + $0x4d8] sm:$0xf]  ;;  %v7923_v23 = vor.u32 %v9281_v25, %v7922_v20  ;;  %5059 = vmatpush.bf16.msrb.mxu0 %v7667_v14  ;;  %v4648_v14 = vadd.f32 %v9959_v60, %v4634_v47 }
 0x2ac   :  { %v9081_v1 = vld [vmem:[#allocation7 + $0x4f4] sm:$0xf0] }
 0x2ad   :  { %v7378_v28 = vld [vmem:[#allocation7 + $0x6d8] sm:$0xf]  ;;  %v7123_v12 = vor.u32 %v9081_v1, %v7122_v21  ;;  %5073 = vmatpush.bf16.msrb.mxu1 %v7923_v23  ;;  %v9984_v21 = vpack.c.bf16 %v4772_v49, %v9949_v48  ;;  %v4745_v23 = vpop.f32.mrf.mxu1  ;;  %v4662_v57 = vadd.f32 %v9961_v5, %v4648_v14  ;;  %v9045_v49 = vld [vmem:[#allocation7 + $0x3dc] sm:$0xf] }
 0x2ae   :  { %v9145_v40 = vld [vmem:[#allocation7 + $0x6f4] sm:$0xf0]  ;;  %v6708_v14 = vld [vmem:[#allocation7 + $0x1b8] sm:$0xf0] }
 0x2af   :  { %v7634_v24 = vld [vmem:[#allocation7 + $0x8d8] sm:$0xf]  ;;  %v7379_v55 = vor.u32 %v9145_v40, %v7378_v28  ;;  %5032 = vmatpush.bf16.msra.mxu2 %v7123_v12 }
 0x2b0   :  { %v9209_v27 = vld [vmem:[#allocation7 + $0x8f4] sm:$0xf0] }
 0x2b1   :  { %v7890_v19 = vld [vmem:[#allocation7 + $0xad8] sm:$0xf]  ;;  %v7635_v32 = vor.u32 %v9209_v27, %v7634_v24  ;;  %5046 = vmatpush.bf16.msra.mxu3 %v7379_v55  ;;  %v4746_v24 = vadd.f32 %v4745_v23, %v4732_v13  ;;  %v4759_v55 = vpop.f32.mrf.mxu2  ;;  %v6740_v13 = vld [vmem:[#allocation7 + $0x1f8] sm:$0xf0] }
 0x2b2   :  { %v9273_v61 = vld [vmem:[#allocation7 + $0xaf4] sm:$0xf0] }
 0x2b3   :  { %v7090_v53 = vld [vmem:[#allocation7 + $0x498] sm:$0xf]  ;;  %v7891_v2 = vor.u32 %v9273_v61, %v7890_v19  ;;  %5060 = vmatpush.bf16.msrb.mxu0 %v7635_v32  ;;  %v4760_v32 = vadd.f32 %v4759_v55, %v4746_v24  ;;  %v6964_v24 = vld [vmem:[#allocation7 + $0x3b8] sm:$0xf0] }
 0x2b4   :  { %v9073_v58 = vld [vmem:[#allocation7 + $0x4b4] sm:$0xf0] }
 0x2b5   :  { %v7346_v18 = vld [vmem:[#allocation7 + $0x698] sm:$0xf]  ;;  %v7091_v0 = vor.u32 %v9073_v58, %v7090_v53  ;;  %5074 = vmatpush.bf16.msrb.mxu1 %v7891_v2 }
 0x2b6   :  { %v9137_v52 = vld [vmem:[#allocation7 + $0x6b4] sm:$0xf0] }
 0x2b7   :  { %v7602_v6 = vld [vmem:[#allocation7 + $0x898] sm:$0xf]  ;;  %v7347_v22 = vor.u32 %v9137_v52, %v7346_v18  ;;  %5033 = vmatpush.bf16.msra.mxu2 %v7091_v0  ;;  %v5234_v18 = vunpack.c.l.bf16 %v9984_v21  ;;  %v4773_v52 = vpop.f32.mrf.mxu3 }
 0x2b8   :  { %v9201_v30 = vld [vmem:[#allocation7 + $0x8b4] sm:$0xf0] }
 0x2b9   :  { %v7858_v7 = vld [vmem:[#allocation7 + $0xa98] sm:$0xf]  ;;  %v7603_v20 = vor.u32 %v9201_v30, %v7602_v6  ;;  %5047 = vmatpush.bf16.msra.mxu3 %v7347_v22  ;;  %v8981_v30 = vld [vmem:[#allocation7 + $0x1dc] sm:$0xf] }
 0x2ba   :  { %v9265_v10 = vld [vmem:[#allocation7 + $0xab4] sm:$0xf0]  ;;  %v6996_v22 = vld [vmem:[#allocation7 + $0x3f8] sm:$0xf0] }
 0x2bb   :  { %v7058_v15 = vld [vmem:[#allocation7 + $0x458] sm:$0xf]  ;;  %v7859_v25 = vor.u32 %v9265_v10, %v7858_v7  ;;  %5061 = vmatpush.bf16.msrb.mxu0 %v7603_v20  ;;  %v5235_v7 = vunpack.c.h.bf16 %v9984_v21  ;;  %v4774_v10 = vadd.f32 %v4773_v52, %v4760_v32  ;;  %v5250_v21 = vmul.f32 0.010009766, %v5234_v18 }
 0x2bc   :  { %v9065_v50 = vld [vmem:[#allocation7 + $0x474] sm:$0xf0] }
 0x2bd   :  { %v7314_v46 = vld [vmem:[#allocation7 + $0x658] sm:$0xf]  ;;  %v7059_v51 = vor.u32 %v9065_v50, %v7058_v15  ;;  %5075 = vmatpush.bf16.msrb.mxu1 %v7859_v25  ;;  %v5229_v47 = vpack.c.bf16 %v4774_v10, %v4662_v57  ;;  %v5251_v23 = vmul.f32 0.010009766, %v5235_v7 }
 0x2be   :  { %v9129_v59 = vld [vmem:[#allocation7 + $0x674] sm:$0xf0] }
 0x2bf   :  { %v7570_v26 = vld [vmem:[#allocation7 + $0x858] sm:$0xf]  ;;  %v7315_v40 = vor.u32 %v9129_v59, %v7314_v46  ;;  %5034 = vmatpush.bf16.msra.mxu2 %v7059_v51  ;;  %v5243_v51 = vunpack.c.h.bf16 %v5229_v47 }
 0x2c0   :  { %v9193_v1 = vld [vmem:[#allocation7 + $0x874] sm:$0xf0] }
 0x2c1   :  { %v7826_v34 = vld [vmem:[#allocation7 + $0xa58] sm:$0xf]  ;;  %v7571_v12 = vor.u32 %v9193_v1, %v7570_v26  ;;  %5048 = vmatpush.bf16.msra.mxu3 %v7315_v40  ;;  %v6743_v1 = vor.u32 %v8981_v30, %v6740_v13  ;;  %v9037_v40 = vld [vmem:[#allocation7 + $0x39c] sm:$0xf] }
 0x2c2   :  { %v9257_v33 = vld [vmem:[#allocation7 + $0xa74] sm:$0xf0] }
 0x2c3   :  { %v7026_v28 = vld [vmem:[#allocation7 + $0x418] sm:$0xf]  ;;  %v7827_v48 = vor.u32 %v9257_v33, %v7826_v34  ;;  %5062 = vmatpush.bf16.msrb.mxu0 %v7571_v12  ;;  %v6999_v34 = vor.u32 %v9045_v49, %v6996_v22  ;;  %v8973_v33 = vld [vmem:[#allocation7 + $0x19c] sm:$0xf] }
 0x2c4   :  { %v9057_v27 = vld [vmem:[#allocation7 + $0x434] sm:$0xf0] }
 0x2c5   :  { %v7282_v19 = vld [vmem:[#allocation7 + $0x618] sm:$0xf]  ;;  %v7027_v17 = vor.u32 %v9057_v27, %v7026_v28  ;;  %5076 = vmatpush.bf16.msrb.mxu1 %v7827_v48  ;;  %v5242_v28 = vunpack.c.l.bf16 %v5229_v47  ;;  %v6644_v47 = vld [vmem:[#allocation7 + $0x138] sm:$0xf0] }
 0x2c6   :  { %v9121_v61 = vld [vmem:[#allocation7 + $0x634] sm:$0xf0] }
 0x2c7   :  { %v7538_v53 = vld [vmem:[#allocation7 + $0x818] sm:$0xf]  ;;  %v7283_v0 = vor.u32 %v9121_v61, %v7282_v19  ;;  %5035 = vmatpush.bf16.msra.mxu2 %v7027_v17  ;;  %v5258_v27 = vmul.f32 0.010009766, %v5242_v28  ;;  %v5259_v19 = vmul.f32 0.010009766, %v5243_v51 }
 0x2c8   :  { %v9185_v58 = vld [vmem:[#allocation7 + $0x834] sm:$0xf0] }
 0x2c9   :  { %v7794_v62 = vld [vmem:[#allocation7 + $0xa18] sm:$0xf]  ;;  %v7539_v15 = vor.u32 %v9185_v58, %v7538_v53  ;;  %5049 = vmatpush.bf16.msra.mxu3 %v7283_v0  ;;  %v9990_v53 = vmax.f32 %v5234_v18, %v5250_v21  ;;  %v6711_v58 = vor.u32 %v8973_v33, %v6708_v14  ;;  %v9994_v57 = vmax.f32 %v5242_v28, %v5258_v27  ;;  %v9029_v18 = vld [vmem:[#allocation7 + $0x35c] sm:$0xf] }
 0x2ca   :  { %v9249_v60 = vld [vmem:[#allocation7 + $0xa34] sm:$0xf0]  ;;  %v9996_v52 = vmax.f32 %v5243_v51, %v5259_v19  ;;  %5036 = vmatmul.bf16.vlgmr.msra.gmra.mxu2 %v9802_v3  ;;  %v6612_v28 = vld [vmem:[#allocation7 + $0xf8] sm:$0xf0] }
 0x2cb   :  { %v8274_v2 = vld [vmem:[#allocation7 + $0xdd8] sm:$0xf]  ;;  %v7795_v5 = vor.u32 %v9249_v60, %v7794_v62  ;;  %5063 = vmatpush.bf16.msrb.mxu0 %v7539_v15  ;;  %v6967_v62 = vor.u32 %v9037_v40, %v6964_v24  ;;  %v9013_v51 = vld [vmem:[#allocation7 + $0x2dc] sm:$0xf] }
 0x2cc   :  { %v9369_v63 = vld [vmem:[#allocation7 + $0xdf4] sm:$0xf0]  ;;  %5050 = vmatmul.bf16.vlgmr.msra.gmra.mxu3 %v9804_v4  ;;  %v6868_v40 = vld [vmem:[#allocation7 + $0x2f8] sm:$0xf0] }
 0x2cd   :  { %v8530_v6 = vld [vmem:[#allocation7 + $0xfd8] sm:$0xf]  ;;  %v8275_v20 = vor.u32 %v9369_v63, %v8274_v2  ;;  %5077 = vmatpush.bf16.msrb.mxu1 %v7795_v5  ;;  %v8965_v2 = vld [vmem:[#allocation7 + $0x15c] sm:$0xf]  ;;  %v9992_v63 = vmax.f32 %v5235_v7, %v5251_v23  ;;  %v5306_v7 = vpack.c.bf16 %v9994_v57, %v9990_v53  ;;  %v9489_v57 = vld [vmem:[#allocation10 + $0x1b8] sm:$0xff] }
 0x2ce   :  { %v9433_v43 = vld [vmem:[#allocation7 + $0xff4] sm:$0xf0]  ;;  %5064 = vmatmul.bf16.vlgmr.msrb.gmra.mxu0 %v9810_v44  ;;  %v8949_v23 = vld [vmem:[#allocation7 + $0xdc] sm:$0xf] }
 0x2cf   :  { %v8242_v50 = vld [vmem:[#allocation7 + $0xd98] sm:$0xf]  ;;  %v8531_v25 = vor.u32 %v9433_v43, %v8530_v6  ;;  %5084 = vmatpush.bf16.msrb.mxu2 %v8275_v20  ;;  %5112 = vmatpush.bf16.msra.mxu0 %v6743_v1  ;;  %v6676_v6 = vld [vmem:[#allocation7 + $0x178] sm:$0xf0]  ;;  %v5307_v10 = vpack.c.bf16 %v9996_v52, %v9992_v63 }
 0x2d0   :  { %v9361_v46 = vld [vmem:[#allocation7 + $0xdb4] sm:$0xf0]  ;;  %v6932_v43 = vld [vmem:[#allocation7 + $0x378] sm:$0xf0]  ;;  %5078 = vmatmul.bf16.vlgmr.msrb.gmra.mxu1 %v9812_v45  ;;  %v6679_v49 = vor.u32 %v8965_v2, %v6676_v6 }
 0x2d1   :  { %v8498_v59 = vld [vmem:[#allocation7 + $0xf98] sm:$0xf]  ;;  %5098 = vmatpush.bf16.msrb.mxu3 %v8531_v25  ;;  %v8243_v61 = vor.u32 %v9361_v46, %v8242_v50  ;;  %5126 = vmatpush.bf16.msra.mxu1 %v6999_v34  ;;  %v6935_v22 = vor.u32 %v9029_v18, %v6932_v43  ;;  %v8957_v50 = vld [vmem:[#allocation7 + $0x11c] sm:$0xf] }
 0x2d2   :  { %v9425_v26 = vld [vmem:[#allocation7 + $0xfb4] sm:$0xf0]  ;;  %v9021_v20 = vld [vmem:[#allocation7 + $0x31c] sm:$0xf]  ;;  %v6647_v1 = vor.u32 %v8957_v50, %v6644_v47 }
 0x2d3   :  { %v8499_v12 = vor.u32 %v9425_v26, %v8498_v59  ;;  %v8210_v48 = vld [vmem:[#allocation7 + $0xd58] sm:$0xf]  ;;  %5085 = vmatpush.bf16.msrb.mxu2 %v8243_v61  ;;  %5113 = vmatpush.bf16.msra.mxu0 %v6711_v58  ;;  %v6900_v25 = vld [vmem:[#allocation7 + $0x338] sm:$0xf0] }
 0x2d4   :  { %v9353_v55 = vld [vmem:[#allocation7 + $0xd74] sm:$0xf0]  ;;  %v6903_v34 = vor.u32 %v9021_v20, %v6900_v25  ;;  %v6836_v2 = vld [vmem:[#allocation7 + $0x2b8] sm:$0xf0] }
 0x2d5   :  { %v8466_v32 = vld [vmem:[#allocation7 + $0xf58] sm:$0xf]  ;;  %v8211_v30 = vor.u32 %v9353_v55, %v8210_v48  ;;  %5099 = vmatpush.bf16.msrb.mxu3 %v8499_v12  ;;  %5127 = vmatpush.bf16.msra.mxu1 %v6967_v62  ;;  %v6615_v12 = vor.u32 %v8949_v23, %v6612_v28  ;;  %v6871_v48 = vor.u32 %v9013_v51, %v6868_v40  ;;  %v8941_v62 = vld [vmem:[#allocation7 + $0x9c] sm:$0xf] }
 0x2d6   :  { %v9417_v60 = vld [vmem:[#allocation7 + $0xf74] sm:$0xf0]  ;;  %v6804_v50 = vld [vmem:[#allocation7 + $0x278] sm:$0xf0] }
 0x2d7   :  { %v8467_v17 = vor.u32 %v9417_v60, %v8466_v32  ;;  %v8178_v0 = vld [vmem:[#allocation7 + $0xd18] sm:$0xf]  ;;  %5086 = vmatpush.bf16.msrb.mxu2 %v8211_v30  ;;  %5114 = vmatpush.bf16.msra.mxu0 %v6679_v49  ;;  %v6580_v32 = vld [vmem:[#allocation7 + $0xb8] sm:$0xf0] }
 0x2d8   :  { %v9345_v13 = vld [vmem:[#allocation7 + $0xd34] sm:$0xf0]  ;;  %v9005_v60 = vld [vmem:[#allocation7 + $0x29c] sm:$0xf] }
 0x2d9   :  { %v8434_v15 = vld [vmem:[#allocation7 + $0xf18] sm:$0xf]  ;;  %5100 = vmatpush.bf16.msrb.mxu3 %v8467_v17  ;;  %v8179_v46 = vor.u32 %v9345_v13, %v8178_v0  ;;  %5128 = vmatpush.bf16.msra.mxu1 %v6935_v22  ;;  %v6583_v17 = vor.u32 %v8941_v62, %v6580_v32  ;;  %v6839_v0 = vor.u32 %v9005_v60, %v6836_v2  ;;  %v8933_v22 = vld [vmem:[#allocation7 + $0x5c] sm:$0xf] }
 0x2da   :  { %v9409_v5 = vld [vmem:[#allocation7 + $0xf34] sm:$0xf0]  ;;  %v6772_v23 = vld [vmem:[#allocation7 + $0x238] sm:$0xf0] }
 0x2db   :  { %v8435_v59 = vor.u32 %v9409_v5, %v8434_v15  ;;  %v8146_v26 = vld [vmem:[#allocation7 + $0xcd8] sm:$0xf]  ;;  %5087 = vmatpush.bf16.msrb.mxu2 %v8179_v46  ;;  %5115 = vmatpush.bf16.msra.mxu0 %v6647_v1  ;;  %v6548_v15 = vld [vmem:[#allocation7 + $0x78] sm:$0xf0] }
 0x2dc   :  { %v9337_v21 = vld [vmem:[#allocation7 + $0xcf4] sm:$0xf0]  ;;  %v8997_v5 = vld [vmem:[#allocation7 + $0x25c] sm:$0xf] }
 0x2dd   :  { %v8402_v33 = vld [vmem:[#allocation7 + $0xed8] sm:$0xf]  ;;  %5101 = vmatpush.bf16.msrb.mxu3 %v8435_v59  ;;  %v8147_v24 = vor.u32 %v9337_v21, %v8146_v26  ;;  %5129 = vmatpush.bf16.msra.mxu1 %v6903_v34  ;;  %v6551_v21 = vor.u32 %v8933_v22, %v6548_v15  ;;  %v6807_v1 = vor.u32 %v8997_v5, %v6804_v50  ;;  %v8925_v34 = vld [vmem:[#allocation7 + $0x1c] sm:$0xf] }
 0x2de   :  { %v9401_v14 = vld [vmem:[#allocation7 + $0xef4] sm:$0xf0]  ;;  %v9109_v28 = vld [vmem:[#allocation7 + $0x5dc] sm:$0xf] }
 0x2df   :  { %v8403_v27 = vor.u32 %v9401_v14, %v8402_v33  ;;  %v8114_v19 = vld [vmem:[#allocation7 + $0xc98] sm:$0xf]  ;;  %5088 = vmatpush.bf16.msrb.mxu2 %v8147_v24  ;;  %5116 = vmatpush.bf16.msra.mxu0 %v6615_v12  ;;  %v6516_v33 = vld [vmem:[#allocation7 + $0x38] sm:$0xf0] }
 0x2e0   :  { %v9329_v61 = vld [vmem:[#allocation7 + $0xcb4] sm:$0xf0]  ;;  %v8989_v14 = vld [vmem:[#allocation7 + $0x21c] sm:$0xf] }
 0x2e1   :  { %v8370_v55 = vld [vmem:[#allocation7 + $0xe98] sm:$0xf]  ;;  %5102 = vmatpush.bf16.msrb.mxu3 %v8403_v27  ;;  %v8115_v6 = vor.u32 %v9329_v61, %v8114_v19  ;;  %5130 = vmatpush.bf16.msra.mxu1 %v6871_v48  ;;  %v7252_v51 = vld [vmem:[#allocation7 + $0x5f8] sm:$0xf0]  ;;  %v6775_v62 = vor.u32 %v8989_v14, %v6772_v23 }
 0x2e2   :  { %v9393_v58 = vld [vmem:[#allocation7 + $0xeb4] sm:$0xf0]  ;;  %v9173_v40 = vld [vmem:[#allocation7 + $0x7dc] sm:$0xf]  ;;  %v7255_v32 = vor.u32 %v9109_v28, %v7252_v51 }
 0x2e3   :  { %v8371_v18 = vor.u32 %v9393_v58, %v8370_v55  ;;  %v8082_v43 = vld [vmem:[#allocation7 + $0xc58] sm:$0xf]  ;;  %5089 = vmatpush.bf16.msrb.mxu2 %v8115_v6  ;;  %5117 = vmatpush.bf16.msra.mxu0 %v6583_v17  ;;  %v7508_v24 = vld [vmem:[#allocation7 + $0x7f8] sm:$0xf0]  ;;  %v6519_v58 = vor.u32 %v8925_v34, %v6516_v33 }
 0x2e4   :  { %v9321_v30 = vld [vmem:[#allocation7 + $0xc74] sm:$0xf0]  ;;  %v9237_v27 = vld [vmem:[#allocation7 + $0x9dc] sm:$0xf]  ;;  %v7511_v60 = vor.u32 %v9173_v40, %v7508_v24 }
 0x2e5   :  { %v8338_v13 = vld [vmem:[#allocation7 + $0xe58] sm:$0xf]  ;;  %5103 = vmatpush.bf16.msrb.mxu3 %v8371_v18  ;;  %v8083_v20 = vor.u32 %v9321_v30, %v8082_v43  ;;  %5131 = vmatpush.bf16.msra.mxu1 %v6839_v0  ;;  %v7764_v12 = vld [vmem:[#allocation7 + $0x9f8] sm:$0xf0] }
 0x2e6   :  { %v9385_v49 = vld [vmem:[#allocation7 + $0xe74] sm:$0xf0]  ;;  %v9301_v48 = vld [vmem:[#allocation7 + $0xbdc] sm:$0xf]  ;;  %v7767_v18 = vor.u32 %v9237_v27, %v7764_v12 }
 0x2e7   :  { %v8050_v47 = vld [vmem:[#allocation7 + $0xc18] sm:$0xf]  ;;  %v8339_v25 = vor.u32 %v9385_v49, %v8338_v13  ;;  %5090 = vmatpush.bf16.msrb.mxu2 %v8083_v20  ;;  %v8020_v55 = vld [vmem:[#allocation7 + $0xbf8] sm:$0xf0]  ;;  %5118 = vmatpush.bf16.msra.mxu0 %v6551_v21 }
 0x2e8   :  { %v9313_v46 = vld [vmem:[#allocation7 + $0xc34] sm:$0xf0]  ;;  %v9101_v2 = vld [vmem:[#allocation7 + $0x59c] sm:$0xf]  ;;  %v8023_v43 = vor.u32 %v9301_v48, %v8020_v55 }
 0x2e9   :  { %v8306_v59 = vld [vmem:[#allocation7 + $0xe18] sm:$0xf]  ;;  %5104 = vmatpush.bf16.msrb.mxu3 %v8339_v25  ;;  %v8051_v19 = vor.u32 %v9313_v46, %v8050_v47  ;;  %5132 = vmatpush.bf16.msra.mxu1 %v6807_v1  ;;  %v7220_v6 = vld [vmem:[#allocation7 + $0x5b8] sm:$0xf0] }
 0x2ea   :  { %v9377_v26 = vld [vmem:[#allocation7 + $0xe34] sm:$0xf0]  ;;  %v9165_v30 = vld [vmem:[#allocation7 + $0x79c] sm:$0xf]  ;;  %v7223_v15 = vor.u32 %v9101_v2, %v7220_v6 }
 0x2eb   :  { %v8307_v61 = vor.u32 %v9377_v26, %v8306_v59  ;;  %v7476_v17 = vld [vmem:[#allocation7 + $0x7b8] sm:$0xf0]  ;;  %5091 = vmatpush.bf16.msrb.mxu2 %v8051_v19  ;;  %5119 = vmatpush.bf16.msra.mxu0 %v6519_v58 }
 0x2ec   :  { %v9229_v0 = vld [vmem:[#allocation7 + $0x99c] sm:$0xf]  ;;  %v7479_v5 = vor.u32 %v9165_v30, %v7476_v17 }
 0x2ed   :  { %5105 = vmatpush.bf16.msrb.mxu3 %v8307_v61  ;;  %v7732_v13 = vld [vmem:[#allocation7 + $0x9b8] sm:$0xf0]  ;;  %5133 = vmatpush.bf16.msra.mxu1 %v6775_v62 }
 0x2ee   :  { %v9293_v49 = vld [vmem:[#allocation7 + $0xb9c] sm:$0xf]  ;;  %v7735_v20 = vor.u32 %v9229_v0, %v7732_v13  ;;  %5092 = vmatmul.bf16.vlgmr.msrb.gmra.mxu2 %v9820_v16  ;;  %5120 = vmatmul.bf16.vlgmr.msra.gmra.mxu0 %v9790_v35 }
 0x2ef   :  { %v7988_v22 = vld [vmem:[#allocation7 + $0xbb8] sm:$0xf0]  ;;  %5140 = vmatpush.bf16.msra.mxu2 %v7255_v32  ;;  %5168 = vmatpush.bf16.msrb.mxu0 %v7767_v18  ;;  %v10010_v18 = vpop.f32.mrf.mxu0 }
 0x2f0   :  { %v9093_v50 = vld [vmem:[#allocation7 + $0x55c] sm:$0xf]  ;;  %v7991_v25 = vor.u32 %v9293_v49, %v7988_v22  ;;  %5106 = vmatmul.bf16.vlgmr.msrb.gmra.mxu3 %v9822_v11  ;;  %5134 = vmatmul.bf16.vlgmr.msra.gmra.mxu1 %v9792_v36 }
 0x2f1   :  { %5154 = vmatpush.bf16.msra.mxu3 %v7511_v60  ;;  %v7188_v47 = vld [vmem:[#allocation7 + $0x578] sm:$0xf0]  ;;  %5182 = vmatpush.bf16.msrb.mxu1 %v8023_v43 }
 0x2f2   :  { %v9157_v46 = vld [vmem:[#allocation7 + $0x75c] sm:$0xf]  ;;  %v7191_v33 = vor.u32 %v9093_v50, %v7188_v47 }
 0x2f3   :  { %v7444_v59 = vld [vmem:[#allocation7 + $0x778] sm:$0xf0]  ;;  %5141 = vmatpush.bf16.msra.mxu2 %v7223_v15  ;;  %5169 = vmatpush.bf16.msrb.mxu0 %v7735_v20 }
 0x2f4   :  { %v9221_v26 = vld [vmem:[#allocation7 + $0x95c] sm:$0xf]  ;;  %v7447_v14 = vor.u32 %v9157_v46, %v7444_v59 }
 0x2f5   :  { %v7700_v21 = vld [vmem:[#allocation7 + $0x978] sm:$0xf0]  ;;  %5155 = vmatpush.bf16.msra.mxu3 %v7479_v5  ;;  %5183 = vmatpush.bf16.msrb.mxu1 %v7991_v25  ;;  %v10149_v25 = vperm.slane %v9834_v29, 1 }
 0x2f6   :  { %v9285_v1 = vld [vmem:[#allocation7 + $0xb5c] sm:$0xf]  ;;  %v7703_v51 = vor.u32 %v9221_v26, %v7700_v21 }
 0x2f7   :  { %v7956_v34 = vld [vmem:[#allocation7 + $0xb78] sm:$0xf0]  ;;  %5142 = vmatpush.bf16.msra.mxu2 %v7191_v33  ;;  %v4452_v46 = vadd.f32 %v9876_v37, %v10149_v25 }
 0x2f8   :  { %v9085_v23 = vld [vmem:[#allocation7 + $0x51c] sm:$0xf]  ;;  %v7959_v40 = vor.u32 %v9285_v1, %v7956_v34  ;;  %5170 = vmatpush.bf16.msrb.mxu0 %v7703_v51  ;;  %v10015_v1 = vpop.f32.mrf.mxu1 }
 0x2f9   :  { %v7156_v28 = vld [vmem:[#allocation7 + $0x538] sm:$0xf0]  ;;  %5156 = vmatpush.bf16.msra.mxu3 %v7447_v14 }
 0x2fa   :  { %v9149_v24 = vld [vmem:[#allocation7 + $0x71c] sm:$0xf]  ;;  %v7159_v35 = vor.u32 %v9085_v23, %v7156_v28  ;;  %5184 = vmatpush.bf16.msrb.mxu1 %v7959_v40  ;;  %v10150_v28 = vperm.slane %v9834_v29, 0 }
 0x2fb   :  { %v7412_v27 = vld [vmem:[#allocation7 + $0x738] sm:$0xf0] }
 0x2fc   :  { %v9213_v19 = vld [vmem:[#allocation7 + $0x91c] sm:$0xf]  ;;  %v7415_v36 = vor.u32 %v9149_v24, %v7412_v27  ;;  %5143 = vmatpush.bf16.msra.mxu2 %v7159_v35  ;;  %v4340_v51 = vadd.f32 %v9848_v38, %v10150_v28 }
 0x2fd   :  { %v7668_v61 = vld [vmem:[#allocation7 + $0x938] sm:$0xf0] }
 0x2fe   :  { %v9277_v12 = vld [vmem:[#allocation7 + $0xb1c] sm:$0xf]  ;;  %v7671_v62 = vor.u32 %v9213_v19, %v7668_v61  ;;  %5157 = vmatpush.bf16.msra.mxu3 %v7415_v36  ;;  %v4466_v61 = vadd.f32 %v9878_v54, %v4452_v46  ;;  %v10021_v36 = vpop.f32.mrf.mxu2  ;;  %v4354_v54 = vadd.f32 %v9850_v39, %v4340_v51 }
 0x2ff   :  { %v7924_v48 = vld [vmem:[#allocation7 + $0xb38] sm:$0xf0] }
 0x300   :  { %v9077_v55 = vld [vmem:[#allocation7 + $0x4dc] sm:$0xf]  ;;  %v7927_v32 = vor.u32 %v9277_v12, %v7924_v48  ;;  %5171 = vmatpush.bf16.msrb.mxu0 %v7671_v62  ;;  %v4480_v29 = vadd.f32 %v9902_v56, %v4466_v61  ;;  %v10031_v25 = vpop.f32.mrf.mxu1 }
 0x301   :  { %v7124_v58 = vld [vmem:[#allocation7 + $0x4f8] sm:$0xf0] }
 0x302   :  { %v9141_v60 = vld [vmem:[#allocation7 + $0x6dc] sm:$0xf]  ;;  %v7127_v0 = vor.u32 %v9077_v55, %v7124_v58  ;;  %5185 = vmatpush.bf16.msrb.mxu1 %v7927_v32  ;;  %v10023_v55 = vpop.f32.mrf.mxu3  ;;  %v10026_v58 = vpop.f32.mrf.mxu0 }
 0x303   :  { %v7380_v2 = vld [vmem:[#allocation7 + $0x6f8] sm:$0xf0] }
 0x304   :  { %v9205_v6 = vld [vmem:[#allocation7 + $0x8dc] sm:$0xf]  ;;  %v7383_v13 = vor.u32 %v9141_v60, %v7380_v2  ;;  %5144 = vmatpush.bf16.msra.mxu2 %v7127_v0 }
 0x305   :  { %v7636_v43 = vld [vmem:[#allocation7 + $0x8f8] sm:$0xf0] }
 0x306   :  { %v9269_v30 = vld [vmem:[#allocation7 + $0xadc] sm:$0xf]  ;;  %v7639_v15 = vor.u32 %v9205_v6, %v7636_v43  ;;  %5158 = vmatpush.bf16.msra.mxu3 %v7383_v13 }
 0x307   :  { %v7892_v17 = vld [vmem:[#allocation7 + $0xaf8] sm:$0xf0] }
 0x308   :  { %v9069_v49 = vld [vmem:[#allocation7 + $0x49c] sm:$0xf]  ;;  %v7895_v5 = vor.u32 %v9269_v30, %v7892_v17  ;;  %5172 = vmatpush.bf16.msrb.mxu0 %v7639_v15 }
 0x309   :  { %v7092_v22 = vld [vmem:[#allocation7 + $0x4b8] sm:$0xf0] }
 0x30a   :  { %v9133_v50 = vld [vmem:[#allocation7 + $0x69c] sm:$0xf]  ;;  %v7095_v34 = vor.u32 %v9069_v49, %v7092_v22  ;;  %5186 = vmatpush.bf16.msrb.mxu1 %v7895_v5  ;;  %v4368_v22 = vadd.f32 %v9868_v8, %v4354_v54 }
 0x30b   :  { %v7348_v47 = vld [vmem:[#allocation7 + $0x6b8] sm:$0xf0] }
 0x30c   :  { %v9197_v20 = vld [vmem:[#allocation7 + $0x89c] sm:$0xf]  ;;  %v7351_v33 = vor.u32 %v9133_v50, %v7348_v47  ;;  %5145 = vmatpush.bf16.msra.mxu2 %v7095_v34  ;;  %v4494_v47 = vadd.f32 %v9907_v41, %v4480_v29  ;;  %v9441_v34 = vld [vmem:[#allocation10 + $0x38] sm:$0xff] }
 0x30d   :  { %v7604_v59 = vld [vmem:[#allocation7 + $0x8b8] sm:$0xf0] }
 0x30e   :  { %v9261_v26 = vld [vmem:[#allocation7 + $0xa9c] sm:$0xf]  ;;  %v7607_v40 = vor.u32 %v9197_v20, %v7604_v59  ;;  %5159 = vmatpush.bf16.msra.mxu3 %v7351_v33  ;;  %v9449_v33 = vld [vmem:[#allocation10 + $0x78] sm:$0xff]  ;;  %v4508_v51 = vadd.f32 %v9892_v31, %v4494_v47 }
 0x30f   :  { %v7860_v21 = vld [vmem:[#allocation7 + $0xab8] sm:$0xf0] }
 0x310   :  { %v9061_v14 = vld [vmem:[#allocation7 + $0x45c] sm:$0xf]  ;;  %v7863_v24 = vor.u32 %v9261_v26, %v7860_v21  ;;  %5173 = vmatpush.bf16.msrb.mxu0 %v7607_v40  ;;  %v10035_v40 = vpop.f32.mrf.mxu0 }
 0x311   :  { %v7060_v23 = vld [vmem:[#allocation7 + $0x478] sm:$0xf0] }
 0x312   :  { %v9125_v37 = vld [vmem:[#allocation7 + $0x65c] sm:$0xf]  ;;  %v7063_v38 = vor.u32 %v9061_v14, %v7060_v23  ;;  %5187 = vmatpush.bf16.msrb.mxu1 %v7863_v24  ;;  %v4382_v14 = vadd.f32 %v9870_v9, %v4368_v22 }
 0x313   :  { %v7316_v27 = vld [vmem:[#allocation7 + $0x678] sm:$0xf0] }
 0x314   :  { %v9189_v19 = vld [vmem:[#allocation7 + $0x85c] sm:$0xf]  ;;  %v7319_v62 = vor.u32 %v9125_v37, %v7316_v27  ;;  %5146 = vmatpush.bf16.msra.mxu2 %v7063_v38  ;;  %v4396_v24 = vadd.f32 %v9859_v42, %v4382_v14  ;;  %v10038_v37 = vpop.f32.mrf.mxu2  ;;  %v10040_v27 = vpop.f32.mrf.mxu3  ;;  %v10151_v38 = vld [vmem:[#allocation20_spill] sm:$0xff] }
 0x315   :  { %v7572_v12 = vld [vmem:[#allocation7 + $0x878] sm:$0xf0]  ;;  %v4522_v42 = vadd.f32 %v10151_v38, %v4508_v51 }
 0x316   :  { %v9253_v48 = vld [vmem:[#allocation7 + $0xa5c] sm:$0xf]  ;;  %v7575_v6 = vor.u32 %v9189_v19, %v7572_v12  ;;  %5160 = vmatpush.bf16.msra.mxu3 %v7319_v62  ;;  %v10152_v62 = vld [vmem:[#allocation17_spill] sm:$0xff] }
 0x317   :  { %v7828_v35 = vld [vmem:[#allocation7 + $0xa78] sm:$0xf0] }
 0x318   :  { %v9053_v32 = vld [vmem:[#allocation7 + $0x41c] sm:$0xf]  ;;  %v7831_v43 = vor.u32 %v9253_v48, %v7828_v35  ;;  %5174 = vmatpush.bf16.msrb.mxu0 %v7575_v6 }
 0x319   :  { %v7028_v60 = vld [vmem:[#allocation7 + $0x438] sm:$0xf0] }
 0x31a   :  { %v9117_v2 = vld [vmem:[#allocation7 + $0x61c] sm:$0xf]  ;;  %v7031_v39 = vor.u32 %v9053_v32, %v7028_v60  ;;  %5188 = vmatpush.bf16.msrb.mxu1 %v7831_v43  ;;  %v4410_v32 = vadd.f32 %v10152_v62, %v4396_v24  ;;  %v10046_v60 = vpop.f32.mrf.mxu1 }
 0x31b   :  { %v7284_v30 = vld [vmem:[#allocation7 + $0x638] sm:$0xf0] }
 0x31c   :  { %v9181_v17 = vld [vmem:[#allocation7 + $0x81c] sm:$0xf]  ;;  %v7287_v20 = vor.u32 %v9117_v2, %v7284_v30  ;;  %5147 = vmatpush.bf16.msra.mxu2 %v7031_v39  ;;  %v10153_v2 = vld [vmem:[#allocation22_spill] sm:$0xff]  ;;  %v10052_v22 = vpop.f32.mrf.mxu2  ;;  %v9438_v39 = vld [vmem:[#allocation10 + $0x20] sm:$0xff] }
 0x31d   :  { %v7540_v0 = vld [vmem:[#allocation7 + $0x838] sm:$0xf0]  ;;  %v4536_v54 = vadd.f32 %v10153_v2, %v4522_v42  ;;  %v9439_v30 = vld [vmem:[#allocation10 + $0x28] sm:$0xff] }
 0x31e   :  { %v9245_v13 = vld [vmem:[#allocation7 + $0xa1c] sm:$0xf]  ;;  %v7543_v46 = vor.u32 %v9181_v17, %v7540_v0  ;;  %5161 = vmatpush.bf16.msra.mxu3 %v7287_v20  ;;  %v9447_v17 = vld [vmem:[#allocation10 + $0x68] sm:$0xff]  ;;  %v9446_v20 = vld [vmem:[#allocation10 + $0x60] sm:$0xff] }
 0x31f   :  { %v7796_v56 = vld [vmem:[#allocation7 + $0xa38] sm:$0xf0]  ;;  %5148 = vmatmul.bf16.vlgmr.msra.gmra.mxu2 %v9802_v3 }
 0x320   :  { %v9365_v49 = vld [vmem:[#allocation7 + $0xddc] sm:$0xf]  ;;  %v7799_v59 = vor.u32 %v9245_v13, %v7796_v56  ;;  %5175 = vmatpush.bf16.msrb.mxu0 %v7543_v46  ;;  %v10154_v56 = vld [vmem:[#allocation18_spill] sm:$0xff] }
 0x321   :  { %v8276_v15 = vld [vmem:[#allocation7 + $0xdf8] sm:$0xf0]  ;;  %5162 = vmatmul.bf16.vlgmr.msra.gmra.mxu3 %v9804_v4 }
 0x322   :  { %v9429_v5 = vld [vmem:[#allocation7 + $0xfdc] sm:$0xf]  ;;  %v8279_v26 = vor.u32 %v9365_v49, %v8276_v15  ;;  %5189 = vmatpush.bf16.msrb.mxu1 %v7799_v59  ;;  %v4424_v49 = vadd.f32 %v10154_v56, %v4410_v32  ;;  %v10062_v24 = vpop.f32.mrf.mxu1 }
 0x323   :  { %v8532_v50 = vld [vmem:[#allocation7 + $0xff8] sm:$0xf0]  ;;  %5176 = vmatmul.bf16.vlgmr.msrb.gmra.mxu0 %v9810_v44  ;;  %v10054_v44 = vpop.f32.mrf.mxu3 }
 0x324   :  { %v8535_v21 = vor.u32 %v9429_v5, %v8532_v50  ;;  %v9357_v8 = vld [vmem:[#allocation7 + $0xd9c] sm:$0xf]  ;;  %5196 = vmatpush.bf16.msrb.mxu2 %v8279_v26  ;;  %5828 = vmatpush.bf16.msra.mxu0 %v9441_v34  ;;  %v10057_v5 = vpop.f32.mrf.mxu0  ;;  %v10065_v62 = vpop.f32.mrf.mxu2 }
 0x325   :  { %v8244_v23 = vld [vmem:[#allocation7 + $0xdb8] sm:$0xf0]  ;;  %5190 = vmatmul.bf16.vlgmr.msrb.gmra.mxu1 %v9812_v45 }
 0x326   :  { %v9421_v28 = vld [vmem:[#allocation7 + $0xf9c] sm:$0xf]  ;;  %5210 = vmatpush.bf16.msrb.mxu3 %v8535_v21  ;;  %v8247_v9 = vor.u32 %v9357_v8, %v8244_v23  ;;  %5842 = vmatpush.bf16.msra.mxu1 %v9449_v33 }
 0x327   :  { %v8500_v41 = vld [vmem:[#allocation7 + $0xfb8] sm:$0xf0] }
 0x328   :  { %v8503_v19 = vor.u32 %v9421_v28, %v8500_v41  ;;  %v9440_v61 = vld [vmem:[#allocation10 + $0x30] sm:$0xff]  ;;  %5197 = vmatpush.bf16.msrb.mxu2 %v8247_v9  ;;  %v9437_v28 = vld [vmem:[#allocation10 + $0x18] sm:$0xff] }
 0x329   :  { %v9448_v12 = vld [vmem:[#allocation10 + $0x70] sm:$0xff]  ;;  %5829 = vmatpush.bf16.msra.mxu0 %v9440_v61  ;;  %v9445_v41 = vld [vmem:[#allocation10 + $0x58] sm:$0xff] }
 0x32a   :  { %v9349_v48 = vld [vmem:[#allocation7 + $0xd5c] sm:$0xf]  ;;  %5211 = vmatpush.bf16.msrb.mxu3 %v8503_v19  ;;  %5843 = vmatpush.bf16.msra.mxu1 %v9448_v12 }
 0x32b   :  { %v8212_v31 = vld [vmem:[#allocation7 + $0xd78] sm:$0xf0]  ;;  %v10067_v32 = vpop.f32.mrf.mxu3 }
 0x32c   :  { %v9413_v35 = vld [vmem:[#allocation7 + $0xf5c] sm:$0xf]  ;;  %v8215_v6 = vor.u32 %v9349_v48, %v8212_v31  ;;  %v4897_v48 = vpop.f32.mrf.mxu0 }
 0x32d   :  { %v8468_v29 = vld [vmem:[#allocation7 + $0xf78] sm:$0xf0]  ;;  %5830 = vmatpush.bf16.msra.mxu0 %v9439_v30  ;;  %v10157_v30 = vld [vmem:[#allocation21_spill] sm:$0xff] }
 0x32e   :  { %v8471_v43 = vor.u32 %v9413_v35, %v8468_v29  ;;  %v9341_v0 = vld [vmem:[#allocation7 + $0xd1c] sm:$0xf]  ;;  %5198 = vmatpush.bf16.msrb.mxu2 %v8215_v6  ;;  %5844 = vmatpush.bf16.msra.mxu1 %v9447_v17  ;;  %v5232_v17 = vunpack.c.l.bf16 %v10157_v30 }
 0x32f   :  { %v8180_v3 = vld [vmem:[#allocation7 + $0xd38] sm:$0xf0] }
 0x330   :  { %v9405_v4 = vld [vmem:[#allocation7 + $0xf1c] sm:$0xf]  ;;  %5212 = vmatpush.bf16.msrb.mxu3 %v8471_v43  ;;  %v8183_v50 = vor.u32 %v9341_v0, %v8180_v3  ;;  %v5233_v0 = vunpack.c.h.bf16 %v10157_v30  ;;  %v10072_v3 = vld [vmem:[#allocation8] sm:$0xff] }
 0x331   :  { %v8436_v13 = vld [vmem:[#allocation7 + $0xf38] sm:$0xf0]  ;;  %5831 = vmatpush.bf16.msra.mxu0 %v9438_v39  ;;  %v1757_v56 = vperm.slane %v10072_v3, 5  ;;  %v4911_v39 = vpop.f32.mrf.mxu1 }
 0x332   :  { %v10155_v45 = vld [vmem:[#allocation23_spill] sm:$0xff]  ;;  %v8439_v47 = vor.u32 %v9405_v4, %v8436_v13  ;;  %5199 = vmatpush.bf16.msrb.mxu2 %v8183_v50  ;;  %5845 = vmatpush.bf16.msra.mxu1 %v9446_v20  ;;  %v1756_v4 = vperm.slane %v10072_v3, 4  ;;  %v9443_v50 = vld [vmem:[#allocation10 + $0x48] sm:$0xff] }
 0x333   :  { %v4550_v15 = vadd.f32 %v10155_v45, %v4536_v54  ;;  %v9333_v46 = vld [vmem:[#allocation7 + $0xcdc] sm:$0xf] }
 0x334   :  { %v8148_v59 = vld [vmem:[#allocation7 + $0xcf8] sm:$0xf0]  ;;  %5213 = vmatpush.bf16.msrb.mxu3 %v8439_v47 }
 0x335   :  { %v9397_v26 = vld [vmem:[#allocation7 + $0xedc] sm:$0xf]  ;;  %v8151_v14 = vor.u32 %v9333_v46, %v8148_v59  ;;  %5832 = vmatpush.bf16.msra.mxu0 %v9437_v28 }
 0x336   :  { %v8404_v21 = vld [vmem:[#allocation7 + $0xef8] sm:$0xf0]  ;;  %5846 = vmatpush.bf16.msra.mxu1 %v9445_v41  ;;  %v4925_v41 = vpop.f32.mrf.mxu2 }
 0x337   :  { %v10156_v34 = vld [vmem:[#allocation19_spill] sm:$0xff]  ;;  %v8407_v23 = vor.u32 %v9397_v26, %v8404_v21  ;;  %5200 = vmatpush.bf16.msrb.mxu2 %v8151_v14  ;;  %v5248_v21 = vmul.f32 0.010009766, %v5232_v17 }
 0x338   :  { %v4438_v33 = vadd.f32 %v10156_v34, %v4424_v49  ;;  %v9325_v51 = vld [vmem:[#allocation7 + $0xc9c] sm:$0xf]  ;;  %v4786_v34 = vadd.f32 %v10010_v18, %v1756_v4 }
 0x339   :  { %v8116_v9 = vld [vmem:[#allocation7 + $0xcb8] sm:$0xf0]  ;;  %5214 = vmatpush.bf16.msrb.mxu3 %v8407_v23 }
 0x33a   :  { %v10060_v8 = vpack.c.bf16 %v4550_v15, %v4438_v33  ;;  %v9389_v19 = vld [vmem:[#allocation7 + $0xe9c] sm:$0xf]  ;;  %v8119_v31 = vor.u32 %v9325_v51, %v8116_v9  ;;  %v9435_v15 = vld [vmem:[#allocation10 + $0x8] sm:$0xff]  ;;  %v5249_v33 = vmul.f32 0.010009766, %v5233_v0  ;;  %v4939_v51 = vpop.f32.mrf.mxu3  ;;  %v9434_v9 = vld [vmem:[#allocation10] sm:$0xff]  ;;  %v4800_v18 = vadd.f32 %v10015_v1, %v4786_v34  ;;  %v4913_v1 = vpop.f32.mrf.mxu1 }
 0x33b   :  { %v8372_v61 = vld [vmem:[#allocation7 + $0xeb8] sm:$0xf0]  ;;  %v9462_v34 = vld [vmem:[#allocation10 + $0xe0] sm:$0xff] }
 0x33c   :  { %v5240_v12 = vunpack.c.l.bf16 %v10060_v8  ;;  %v8375_v35 = vor.u32 %v9389_v19, %v8372_v61  ;;  %v9436_v29 = vld [vmem:[#allocation10 + $0x10] sm:$0xff]  ;;  %v5241_v43 = vunpack.c.h.bf16 %v10060_v8  ;;  %5201 = vmatpush.bf16.msrb.mxu2 %v8119_v31  ;;  %v4898_v8 = vadd.f32 %v4897_v48, %v1757_v56  ;;  %v9442_v19 = vld [vmem:[#allocation10 + $0x40] sm:$0xff]  ;;  %v4899_v31 = vpop.f32.mrf.mxu0 }
 0x33d   :  { %v9444_v38 = vld [vmem:[#allocation10 + $0x50] sm:$0xff]  ;;  %5833 = vmatpush.bf16.msra.mxu0 %v9436_v29  ;;  %v9465_v29 = vld [vmem:[#allocation10 + $0xf8] sm:$0xff] }
 0x33e   :  { %v9317_v42 = vld [vmem:[#allocation7 + $0xc5c] sm:$0xf]  ;;  %v5256_v13 = vmul.f32 0.010009766, %v5240_v12  ;;  %5215 = vmatpush.bf16.msrb.mxu3 %v8375_v35  ;;  %5847 = vmatpush.bf16.msra.mxu1 %v9444_v38  ;;  %v5257_v26 = vmul.f32 0.010009766, %v5241_v43  ;;  %v9457_v35 = vld [vmem:[#allocation10 + $0xb8] sm:$0xff]  ;;  %v5288_v38 = vmax.f32 %v5232_v17, %v5248_v21  ;;  %v4912_v48 = vadd.f32 %v4911_v39, %v4898_v8  ;;  %v9463_v39 = vld [vmem:[#allocation10 + $0xe8] sm:$0xff] }
 0x33f   :  { %v8084_v2 = vld [vmem:[#allocation7 + $0xc78] sm:$0xf0] }
 0x340   :  { %v9381_v54 = vld [vmem:[#allocation7 + $0xe5c] sm:$0xf]  ;;  %v8087_v49 = vor.u32 %v9317_v42, %v8084_v2  ;;  %v5296_v28 = vmax.f32 %v5240_v12, %v5256_v13  ;;  %v5297_v61 = vmax.f32 %v5241_v43, %v5257_v26  ;;  %v5289_v42 = vmax.f32 %v5233_v0, %v5249_v33 }
 0x341   :  { %v8340_v6 = vld [vmem:[#allocation7 + $0xe78] sm:$0xf0]  ;;  %5834 = vmatpush.bf16.msra.mxu0 %v9435_v15  ;;  %v4814_v12 = vadd.f32 %v10021_v36, %v4800_v18  ;;  %v4788_v43 = vadd.f32 %v10026_v58, %v1756_v4  ;;  %v4926_v13 = vadd.f32 %v4925_v41, %v4912_v48  ;;  %v4900_v0 = vadd.f32 %v4899_v31, %v1757_v56  ;;  %v9461_v41 = vld [vmem:[#allocation10 + $0xd8] sm:$0xff] }
 0x342   :  { %v8343_v45 = vor.u32 %v9381_v54, %v8340_v6  ;;  %v9309_v47 = vld [vmem:[#allocation7 + $0xc1c] sm:$0xf]  ;;  %5202 = vmatpush.bf16.msrb.mxu2 %v8087_v49  ;;  %5848 = vmatpush.bf16.msra.mxu1 %v9443_v50  ;;  %v5304_v2 = vpack.c.bf16 %v5296_v28, %v5288_v38  ;;  %v9473_v54 = vld [vmem:[#allocation10 + $0x138] sm:$0xff]  ;;  %v5305_v30 = vpack.c.bf16 %v5297_v61, %v5289_v42  ;;  %v4967_v33 = vpop.f32.mrf.mxu1 }
 0x343   :  { %v8052_v20 = vld [vmem:[#allocation7 + $0xc38] sm:$0xf0]  ;;  %v9481_v6 = vld [vmem:[#allocation10 + $0x178] sm:$0xff]  ;;  %v4828_v36 = vadd.f32 %v10023_v55, %v4814_v12  ;;  %v4802_v58 = vadd.f32 %v10031_v25, %v4788_v43  ;;  %v4940_v50 = vadd.f32 %v4939_v51, %v4926_v13  ;;  %v4914_v56 = vadd.f32 %v4913_v1, %v4900_v0  ;;  %v9471_v55 = vld [vmem:[#allocation10 + $0x128] sm:$0xff] }
 0x344   :  { %v9373_v46 = vld [vmem:[#allocation7 + $0xe1c] sm:$0xf]  ;;  %5216 = vmatpush.bf16.msrb.mxu3 %v8343_v45  ;;  %v8055_v14 = vor.u32 %v9309_v47, %v8052_v20  ;;  %v4953_v4 = vpop.f32.mrf.mxu0  ;;  %v9455_v47 = vld [vmem:[#allocation10 + $0xa8] sm:$0xff]  ;;  %v4941_v20 = vpop.f32.mrf.mxu3  ;;  %v9454_v25 = vld [vmem:[#allocation10 + $0xa0] sm:$0xff] }
 0x345   :  { %v8308_v59 = vld [vmem:[#allocation7 + $0xe38] sm:$0xf0]  ;;  %5835 = vmatpush.bf16.msra.mxu0 %v9434_v9  ;;  %v4954_v26 = vadd.f32 %v4953_v4, %v4940_v50  ;;  %v9453_v28 = vld [vmem:[#allocation10 + $0x98] sm:$0xff]  ;;  %v9451_v43 = vld [vmem:[#allocation10 + $0x88] sm:$0xff] }
 0x346   :  { %v8311_v23 = vor.u32 %v9373_v46, %v8308_v59  ;;  %5203 = vmatpush.bf16.msrb.mxu2 %v8055_v14  ;;  %5849 = vmatpush.bf16.msra.mxu1 %v9442_v19  ;;  %v9456_v17 = vld [vmem:[#allocation10 + $0xb0] sm:$0xff]  ;;  %v4842_v46 = vadd.f32 %v10035_v40, %v4828_v36  ;;  %v9479_v59 = vld [vmem:[#allocation10 + $0x168] sm:$0xff]  ;;  %v9458_v4 = vld [vmem:[#allocation10 + $0xc0] sm:$0xff] }
 0x347   :  { %v9464_v49 = vld [vmem:[#allocation10 + $0xf0] sm:$0xff]  ;;  %v4968_v51 = vadd.f32 %v4967_v33, %v4954_v26  ;;  %v9459_v13 = vld [vmem:[#allocation10 + $0xc8] sm:$0xff] }
 0x348   :  { %5217 = vmatpush.bf16.msrb.mxu3 %v8311_v23  ;;  %5836 = vmatmul.bf16.vlgmr.msra.gmra.mxu0 %v5304_v2  ;;  %v9472_v45 = vld [vmem:[#allocation10 + $0x130] sm:$0xff]  ;;  %v4856_v14 = vadd.f32 %v10046_v60, %v4842_v46  ;;  %v9478_v23 = vld [vmem:[#allocation10 + $0x160] sm:$0xff]  ;;  %v9469_v60 = vld [vmem:[#allocation10 + $0x118] sm:$0xff] }
 0x349   :  { %5204 = vmatmul.bf16.vlgmr.msrb.gmra.mxu2 %v9820_v16  ;;  %5850 = vmatmul.bf16.vlgmr.msra.gmra.mxu1 %v5305_v30  ;;  %v9480_v15 = vld [vmem:[#allocation10 + $0x170] sm:$0xff]  ;;  %v4927_v16 = vpop.f32.mrf.mxu2 }
 0x34a   :  { %5856 = vmatpush.bf16.msra.mxu2 %v9457_v35  ;;  %5884 = vmatpush.bf16.msrb.mxu0 %v9473_v54  ;;  %v4928_v21 = vadd.f32 %v4927_v16, %v4914_v56  ;;  %v4870_v9 = vadd.f32 %v10052_v22, %v4856_v14  ;;  %v9452_v42 = vld [vmem:[#allocation10 + $0x90] sm:$0xff]  ;;  %v4969_v12 = vpop.f32.mrf.mxu1  ;;  %v9474_v56 = vld [vmem:[#allocation10 + $0x140] sm:$0xff] }
 0x34b   :  { %5218 = vmatmul.bf16.vlgmr.msrb.gmra.mxu3 %v9822_v11  ;;  %5898 = vmatpush.bf16.msrb.mxu1 %v9481_v6  ;;  %v4816_v11 = vadd.f32 %v10038_v37, %v4802_v58  ;;  %v9470_v37 = vld [vmem:[#allocation10 + $0x120] sm:$0xff]  ;;  %v9460_v48 = vld [vmem:[#allocation10 + $0xd0] sm:$0xff] }
 0x34c   :  { %5870 = vmatpush.bf16.msra.mxu3 %v9465_v29  ;;  %v4942_v40 = vadd.f32 %v4941_v20, %v4928_v21  ;;  %v4995_v61 = vpop.f32.mrf.mxu3  ;;  %v9477_v29 = vld [vmem:[#allocation10 + $0x158] sm:$0xff]  ;;  %v4884_v2 = vadd.f32 %v10054_v44, %v4870_v9  ;;  %v9476_v6 = vld [vmem:[#allocation10 + $0x150] sm:$0xff]  ;;  %v9467_v44 = vld [vmem:[#allocation10 + $0x108] sm:$0xff] }
 0x34d   :  { %v4830_v8 = vadd.f32 %v10040_v27, %v4816_v11  ;;  %v4955_v27 = vpop.f32.mrf.mxu0  ;;  %v9466_v11 = vld [vmem:[#allocation10 + $0x100] sm:$0xff] }
 0x34e   :  { %5857 = vmatpush.bf16.msra.mxu2 %v9456_v17  ;;  %5885 = vmatpush.bf16.msrb.mxu0 %v9472_v45  ;;  %v4956_v38 = vadd.f32 %v4955_v27, %v4942_v40  ;;  %v9486_v27 = vld [vmem:[#allocation10 + $0x1a0] sm:$0xff] }
 0x34f   :  { %5899 = vmatpush.bf16.msrb.mxu1 %v9480_v15  ;;  %v4844_v31 = vadd.f32 %v10057_v5, %v4830_v8  ;;  %v9468_v5 = vld [vmem:[#allocation10 + $0x110] sm:$0xff] }
 0x350   :  { %5871 = vmatpush.bf16.msra.mxu3 %v9464_v49  ;;  %v4970_v17 = vadd.f32 %v4969_v12, %v4956_v38 }
 0x351   :  { %v4981_v19 = vpop.f32.mrf.mxu2  ;;  %v4858_v22 = vadd.f32 %v10062_v24, %v4844_v31  ;;  %v9475_v24 = vld [vmem:[#allocation10 + $0x148] sm:$0xff] }
 0x352   :  { %5858 = vmatpush.bf16.msra.mxu2 %v9455_v47  ;;  %5886 = vmatpush.bf16.msrb.mxu0 %v9471_v55  ;;  %v4982_v35 = vadd.f32 %v4981_v19, %v4968_v51  ;;  %v5023_v8 = vpop.f32.mrf.mxu1  ;;  %v9495_v31 = vld [vmem:[#allocation10 + $0x1e8] sm:$0xff] }
 0x353   :  { %5900 = vmatpush.bf16.msrb.mxu1 %v9479_v59  ;;  %v4872_v30 = vadd.f32 %v10065_v62, %v4858_v22  ;;  %v9450_v62 = vld [vmem:[#allocation10 + $0x80] sm:$0xff]  ;;  %v1759_v22 = vperm.slane %v10072_v3, 7 }
 0x354   :  { %5872 = vmatpush.bf16.msra.mxu3 %v9463_v39  ;;  %v4996_v18 = vadd.f32 %v4995_v61, %v4982_v35  ;;  %v4997_v36 = vpop.f32.mrf.mxu3  ;;  %v9487_v61 = vld [vmem:[#allocation10 + $0x1a8] sm:$0xff] }
 0x355   :  { %v4886_v45 = vadd.f32 %v10067_v32, %v4872_v30  ;;  %v5009_v33 = vpop.f32.mrf.mxu0 }
 0x356   :  { %5859 = vmatpush.bf16.msra.mxu2 %v9454_v25  ;;  %5887 = vmatpush.bf16.msrb.mxu0 %v9470_v37  ;;  %v5226_v54 = vpack.c.bf16 %v4996_v18, %v4884_v2  ;;  %v1758_v2 = vperm.slane %v10072_v3, 6 }
 0x357   :  { %5901 = vmatpush.bf16.msrb.mxu1 %v9478_v23 }
 0x358   :  { %5873 = vmatpush.bf16.msra.mxu3 %v9462_v34  ;;  %v5236_v0 = vunpack.c.l.bf16 %v5226_v54  ;;  %v5237_v15 = vunpack.c.h.bf16 %v5226_v54  ;;  %v9484_v54 = vld [vmem:[#allocation10 + $0x190] sm:$0xff] }
 0x359   :  { %v4983_v49 = vpop.f32.mrf.mxu2 }
 0x35a   :  { %5860 = vmatpush.bf16.msra.mxu2 %v9453_v28  ;;  %5888 = vmatpush.bf16.msrb.mxu0 %v9469_v60  ;;  %v4984_v1 = vadd.f32 %v4983_v49, %v4970_v17  ;;  %v5252_v47 = vmul.f32 0.010009766, %v5236_v0  ;;  %v5253_v39 = vmul.f32 0.010009766, %v5237_v15  ;;  %v5025_v53 = vpop.f32.mrf.mxu1  ;;  %v9488_v28 = vld [vmem:[#allocation10 + $0x1b0] sm:$0xff]  ;;  %v9494_v60 = vld [vmem:[#allocation10 + $0x1e0] sm:$0xff]  ;;  %v9483_v49 = vld [vmem:[#allocation10 + $0x188] sm:$0xff] }
 0x35b   :  { %5902 = vmatpush.bf16.msrb.mxu1 %v9477_v29 }
 0x35c   :  { %5874 = vmatpush.bf16.msra.mxu3 %v9461_v41  ;;  %v4998_v58 = vadd.f32 %v4997_v36, %v4984_v1  ;;  %v5292_v32 = vmax.f32 %v5236_v0, %v5252_v47  ;;  %v5293_v59 = vmax.f32 %v5237_v15, %v5253_v39  ;;  %v5051_v37 = vpop.f32.mrf.mxu3  ;;  %v9496_v41 = vld [vmem:[#allocation10 + $0x1f0] sm:$0xff]  ;;  %v9491_v1 = vld [vmem:[#allocation10 + $0x1c8] sm:$0xff]  ;;  %v9490_v15 = vld [vmem:[#allocation10 + $0x1c0] sm:$0xff] }
 0x35d   :  { %v5011_v23 = vpop.f32.mrf.mxu0 }
 0x35e   :  { %5861 = vmatpush.bf16.msra.mxu2 %v9452_v42  ;;  %5889 = vmatpush.bf16.msrb.mxu0 %v9468_v5  ;;  %v5230_v50 = vpack.c.bf16 %v4998_v58, %v4886_v45  ;;  %v9485_v42 = vld [vmem:[#allocation10 + $0x198] sm:$0xff]  ;;  %v9492_v5 = vld [vmem:[#allocation10 + $0x1d0] sm:$0xff]  ;;  %v9482_v45 = vld [vmem:[#allocation10 + $0x180] sm:$0xff] }
 0x35f   :  { %5903 = vmatpush.bf16.msrb.mxu1 %v9476_v6  ;;  %v5010_v6 = vadd.f32 %v5009_v33, %v1758_v2 }
 0x360   :  { %5875 = vmatpush.bf16.msra.mxu3 %v9460_v48  ;;  %v5244_v16 = vunpack.c.l.bf16 %v5230_v50  ;;  %v5245_v20 = vunpack.c.h.bf16 %v5230_v50  ;;  %v9493_v48 = vld [vmem:[#allocation10 + $0x1d8] sm:$0xff] }
 0x361   :  { %v5037_v14 = vpop.f32.mrf.mxu2  ;;  %v5024_v0 = vadd.f32 %v5023_v8, %v5010_v6 }
 0x362   :  { %5862 = vmatpush.bf16.msra.mxu2 %v9451_v43  ;;  %5890 = vmatpush.bf16.msrb.mxu0 %v9467_v44  ;;  %v5260_v46 = vmul.f32 0.010009766, %v5244_v16  ;;  %v5261_v55 = vmul.f32 0.010009766, %v5245_v20  ;;  %v10102_v40 = vpop.f32.mrf.mxu1  ;;  %v5012_v44 = vadd.f32 %v5011_v23, %v1758_v2 }
 0x363   :  { %5904 = vmatpush.bf16.msrb.mxu1 %v9475_v24  ;;  %v5038_v3 = vadd.f32 %v5037_v14, %v5024_v0 }
 0x364   :  { %5876 = vmatpush.bf16.msra.mxu3 %v9459_v13  ;;  %v5300_v26 = vmax.f32 %v5244_v16, %v5260_v46  ;;  %v5301_v21 = vmax.f32 %v5245_v20, %v5261_v55 }
 0x365   :  { %v5065_v63 = vpop.f32.mrf.mxu0  ;;  %v5052_v50 = vadd.f32 %v5051_v37, %v5038_v3 }
 0x366   :  { %5863 = vmatpush.bf16.msra.mxu2 %v9450_v62  ;;  %5891 = vmatpush.bf16.msrb.mxu0 %v9466_v11  ;;  %v5308_v25 = vpack.c.bf16 %v5300_v26, %v5292_v32  ;;  %v5309_v34 = vpack.c.bf16 %v5301_v21, %v5293_v59 }
 0x367   :  { %5905 = vmatpush.bf16.msrb.mxu1 %v9474_v56  ;;  %v5066_v46 = vadd.f32 %v5065_v63, %v5052_v50 }
 0x368   :  { %5877 = vmatpush.bf16.msra.mxu3 %v9458_v4  ;;  %v5026_v4 = vadd.f32 %v5025_v53, %v5012_v44 }
 0x369   :  { %5864 = vmatmul.bf16.vlgmr.msra.gmra.mxu2 %v5306_v7  ;;  %5892 = vmatmul.bf16.vlgmr.msrb.gmra.mxu0 %v5308_v25  ;;  %v9497_v7 = vld [vmem:[#allocation10 + $0x1f8] sm:$0xff]  ;;  %v5039_v52 = vpop.f32.mrf.mxu2  ;;  %v5080_v21 = vadd.f32 %v10102_v40, %v5066_v46 }
 0x36a   :  { %5906 = vmatmul.bf16.vlgmr.msrb.gmra.mxu1 %v5309_v34  ;;  %5912 = vmatpush.bf16.msrb.mxu2 %v9489_v57  ;;  %v10110_v35 = vpop.f32.mrf.mxu1  ;;  %v5040_v11 = vadd.f32 %v5039_v52, %v5026_v4 }
 0x36b   :  { %5878 = vmatmul.bf16.vlgmr.msra.gmra.mxu3 %v5307_v10  ;;  %v10100_v10 = vpop.f32.mrf.mxu3 }
 0x36c   :  { %5926 = vmatpush.bf16.msrb.mxu3 %v9497_v7  ;;  %v5054_v26 = vadd.f32 %v10100_v10, %v5040_v11 }
 0x36d   :  { %v10108_v19 = vpop.f32.mrf.mxu0 }
 0x36e   :  { %5913 = vmatpush.bf16.msrb.mxu2 %v9488_v28  ;;  %v5068_v14 = vadd.f32 %v10108_v19, %v5054_v26 }
 0x370   :  { %5927 = vmatpush.bf16.msrb.mxu3 %v9496_v41  ;;  %v5082_v52 = vadd.f32 %v10110_v35, %v5068_v14 }
 0x371   :  { %v10104_v51 = vpop.f32.mrf.mxu2 }
 0x372   :  { %5914 = vmatpush.bf16.msrb.mxu2 %v9487_v61  ;;  %v5135_v12 = vpop.f32.mrf.mxu1  ;;  %v5094_v37 = vadd.f32 %v10104_v51, %v5080_v21 }
 0x373   :  { %v10106_v9 = vpop.f32.mrf.mxu3 }
 0x374   :  { %5928 = vmatpush.bf16.msrb.mxu3 %v9495_v31  ;;  %v5108_v63 = vadd.f32 %v10106_v9, %v5094_v37 }
 0x375   :  { %v5121_v29 = vpop.f32.mrf.mxu0 }
 0x376   :  { %5915 = vmatpush.bf16.msrb.mxu2 %v9486_v27  ;;  %v5122_v30 = vadd.f32 %v5121_v29, %v1759_v22 }
 0x378   :  { %5929 = vmatpush.bf16.msrb.mxu3 %v9494_v60  ;;  %v5136_v36 = vadd.f32 %v5135_v12, %v5122_v30 }
 0x379   :  { %v5095_v38 = vpop.f32.mrf.mxu2 }
 0x37a   :  { %5916 = vmatpush.bf16.msrb.mxu2 %v9485_v42  ;;  %v5137_v58 = vpop.f32.mrf.mxu1  ;;  %v5096_v10 = vadd.f32 %v5095_v38, %v5082_v52 }
 0x37b   :  { %v10112_v18 = vpop.f32.mrf.mxu3 }
 0x37c   :  { %5930 = vmatpush.bf16.msrb.mxu3 %v9493_v48  ;;  %v5110_v60 = vadd.f32 %v10112_v18, %v5096_v10  ;;  %v9509_v18 = vld [vmem:[#allocation11] ss:$0 sm:$0xff] }
 0x37d   :  { %v5123_v17 = vpop.f32.mrf.mxu0 }
 0x37e   :  { %5917 = vmatpush.bf16.msrb.mxu2 %v9484_v54  ;;  %v5124_v62 = vadd.f32 %v5123_v17, %v1759_v22 }
 0x380   :  { %5931 = vmatpush.bf16.msrb.mxu3 %v9492_v5  ;;  %v5138_v56 = vadd.f32 %v5137_v58, %v5124_v62 }
 0x382   :  { %5918 = vmatpush.bf16.msrb.mxu2 %v9483_v49 }
 0x384   :  { %5932 = vmatpush.bf16.msrb.mxu3 %v9491_v1 }
 0x386   :  { %5919 = vmatpush.bf16.msrb.mxu2 %v9482_v45 }
 0x388   :  { %5933 = vmatpush.bf16.msrb.mxu3 %v9490_v15 }
 0x3a0   :  { %v5177_v47 = vpop.f32.mrf.mxu0 }
 0x3a2   :  { %v5149_v43 = vpop.f32.mrf.mxu2  ;;  %v5191_v59 = vpop.f32.mrf.mxu1 }
 0x3a3   :  { %v5150_v24 = vadd.f32 %v5149_v43, %v5136_v36 }
 0x3a4   :  { %v5163_v13 = vpop.f32.mrf.mxu3 }
 0x3a5   :  { %v5164_v39 = vadd.f32 %v5163_v13, %v5150_v24 }
 0x3a7   :  { %v5178_v55 = vadd.f32 %v5177_v47, %v5164_v39 }
 0x3a8   :  { %v5179_v53 = vpop.f32.mrf.mxu0 }
 0x3a9   :  { %v5192_v34 = vadd.f32 %v5191_v59, %v5178_v55 }
 0x3aa   :  { %v5151_v16 = vpop.f32.mrf.mxu2  ;;  %v5193_v28 = vpop.f32.mrf.mxu1 }
 0x3ab   :  { %v5152_v32 = vadd.f32 %v5151_v16, %v5138_v56 }
 0x3ac   :  { %v5165_v20 = vpop.f32.mrf.mxu3 }
 0x3ad   :  { %v5166_v25 = vadd.f32 %v5165_v20, %v5152_v32 }
 0x3af   :  { %v5180_v57 = vadd.f32 %v5179_v53, %v5166_v25 }
 0x3b1   :  { %v5194_v40 = vadd.f32 %v5193_v28, %v5180_v57 }
 0x3c5   :  { %v5837_v13 = vpop.f32.mrf.mxu0 }
 0x3c6   :  { %v5851_v17 = vpop.f32.mrf.mxu1  ;;  %v5838_v49 = vadd.f32 %v9509_v18, %v5837_v13 }
 0x3c8   :  { %v5852_v44 = vadd.f32 %v5851_v17, %v5838_v49 }
 0x3cc   :  { %v5205_v33 = vpop.f32.mrf.mxu2 }
 0x3cd   :  { %v5206_v23 = vadd.f32 %v5205_v33, %v5192_v34  ;;  %v5839_v1 = vpop.f32.mrf.mxu0 }
 0x3ce   :  { %v5219_v8 = vpop.f32.mrf.mxu3  ;;  %v5853_v24 = vpop.f32.mrf.mxu1  ;;  %v5840_v45 = vadd.f32 %v9509_v18, %v5839_v1 }
 0x3cf   :  { %v5220_v7 = vadd.f32 %v5219_v8, %v5206_v23 }
 0x3d0   :  { %v5854_v50 = vadd.f32 %v5853_v24, %v5840_v45 }
 0x3d1   :  { %v5227_v41 = vpack.c.bf16 %v5220_v7, %v5108_v63 }
 0x3d3   :  { %v5238_v19 = vunpack.c.l.bf16 %v5227_v41  ;;  %v5239_v29 = vunpack.c.h.bf16 %v5227_v41 }
 0x3d4   :  { %v5207_v61 = vpop.f32.mrf.mxu2 }
 0x3d5   :  { %v5208_v31 = vadd.f32 %v5207_v61, %v5194_v40  ;;  %v5254_v48 = vmul.f32 0.010009766, %v5238_v19  ;;  %v5255_v2 = vmul.f32 0.010009766, %v5239_v29 }
 0x3d6   :  { %v5221_v27 = vpop.f32.mrf.mxu3 }
 0x3d7   :  { %v5222_v51 = vadd.f32 %v5221_v27, %v5208_v31  ;;  %v5294_v35 = vmax.f32 %v5238_v19, %v5254_v48  ;;  %v5295_v5 = vmax.f32 %v5239_v29, %v5255_v2 }
 0x3d9   :  { %v5231_v42 = vpack.c.bf16 %v5222_v51, %v5110_v60 }
 0x3db   :  { %v5246_v22 = vunpack.c.l.bf16 %v5231_v42  ;;  %v5247_v12 = vunpack.c.h.bf16 %v5231_v42 }
 0x3dd   :  { %v5262_v9 = vmul.f32 0.010009766, %v5246_v22  ;;  %v5263_v54 = vmul.f32 0.010009766, %v5247_v12 }
 0x3df   :  { %v5302_v38 = vmax.f32 %v5246_v22, %v5262_v9  ;;  %v5303_v6 = vmax.f32 %v5247_v12, %v5263_v54 }
 0x3e1   :  { %v5310_v30 = vpack.c.bf16 %v5302_v38, %v5294_v35  ;;  %v5311_v43 = vpack.c.bf16 %v5303_v6, %v5295_v5 }
 0x3e3   :  { %5920 = vmatmul.bf16.vlgmr.msrb.gmra.mxu2 %v5310_v30  ;;  %5934 = vmatmul.bf16.vlgmr.msrb.gmra.mxu3 %v5311_v43 }
 0x3e6   :  { %v5893_v15 = vpop.f32.mrf.mxu0 }
 0x3e7   :  { %v5907_v16 = vpop.f32.mrf.mxu1 }
 0x3ec   :  { %v5865_v0 = vpop.f32.mrf.mxu2 }
 0x3ed   :  { %v5866_v3 = vadd.f32 %v5865_v0, %v5852_v44 }
 0x3ee   :  { %v5879_v36 = vpop.f32.mrf.mxu3  ;;  %v5895_v56 = vpop.f32.mrf.mxu0 }
 0x3ef   :  { %v5880_v58 = vadd.f32 %v5879_v36, %v5866_v3  ;;  %v5909_v21 = vpop.f32.mrf.mxu1 }
 0x3f1   :  { %v5894_v47 = vadd.f32 %v5893_v15, %v5880_v58 }
 0x3f3   :  { %v5908_v20 = vadd.f32 %v5907_v16, %v5894_v47 }
 0x3f4   :  { %v5867_v62 = vpop.f32.mrf.mxu2 }
 0x3f5   :  { %v5868_v39 = vadd.f32 %v5867_v62, %v5854_v50 }
 0x3f6   :  { %v5881_v4 = vpop.f32.mrf.mxu3 }
 0x3f7   :  { %v5882_v11 = vadd.f32 %v5881_v4, %v5868_v39 }
 0x3f9   :  { %v5896_v59 = vadd.f32 %v5895_v56, %v5882_v11 }
 0x3fb   :  { %v5910_v25 = vadd.f32 %v5909_v21, %v5896_v59 }
 0x466   :  { %v5921_v46 = vpop.f32.mrf.mxu2  ;;  %v5935_v55 = vpop.f32.mrf.mxu3 }
 0x467   :  { %v5922_v32 = vadd.f32 %v5921_v46, %v5908_v20 }
 0x469   :  { %v5936_v26 = vadd.f32 %v5935_v55, %v5922_v32 }
 0x46b   :  { %5940 = vmax.xlane.f32.xlu0 %v5936_v26 }
 0x46e   :  { %v5923_v34 = vpop.f32.mrf.mxu2  ;;  %v5937_v8 = vpop.f32.mrf.mxu3 }
 0x46f   :  { %v5924_v33 = vadd.f32 %v5923_v34, %v5910_v25 }
 0x471   :  { %v5938_v14 = vadd.f32 %v5937_v8, %v5924_v33 }
 0x473   :  { %5942 = vmax.xlane.f32.xlu0 %v5938_v14 }
 0x4de   :  { %v5941_v37 = vpop.xlane.xlu0 %5940 }
 0x4df   :  { %v5944_v23 = vsub.f32 %v5936_v26, %v5941_v37 }
 0x4e1   :  { %v5946_v53 = vmul.f32 1.442695, %v5944_v23 }
 0x4e3   :  { %9510 = vpow2.f32 %v5946_v53 }
 0x4e6   :  { %v5943_v57 = vpop.xlane.xlu0 %5942 }
 0x4e7   :  { %v5945_v7 = vsub.f32 %v5938_v14, %v5943_v57 }
 0x4e9   :  { %v9511_v63 = vpop.eup %9510  ;;  %v5948_v52 = vmul.f32 1.442695, %v5945_v7 }
 0x4ea   :  { %5950 = vadd.xlane.f32.xlu1 %v9511_v63 }
 0x4eb   :  { %9512 = vpow2.f32 %v5948_v52 }
 0x4f1   :  { %v9513_v28 = vpop.eup %9512 }
 0x4f2   :  { %5952 = vadd.xlane.f32.xlu1 %v9513_v28 }
 0x55d   :  { %v5951_v10 = vpop.xlane.xlu1 %5950 }
 0x55e   :  { %9514 = vrcp.f32 %v5951_v10 }
 0x564   :  { %v9515_v41 = vpop.eup %9514 }
 0x565   :  { %v5956_v40 = vmul.f32 %v9515_v41, %v9511_v63  ;;  %v5953_v61 = vpop.xlane.xlu1 %5952 }
 0x566   :  { %9516 = vrcp.f32 %v5953_v61 }
 0x567   :  { %5958 = vst [vmem:[%s10136_s7] sm:$0xff] %v5956_v40 }
 0x56c   :  { %v9517_v31 = vpop.eup %9516 }
 0x56d   :  { %v5957_v27 = vmul.f32 %v9517_v31, %v9513_v28 }
 0x56f   :  { %5959 = vst [vmem:[%s10136_s7 + $0x8] sm:$0xff] %v5957_v27 }
 0x570   :  { %5964 = vsyncpa [#allocation4], 1 }
 0x571   :  { %5965 = vsyncpa [#allocation6], 1 }
 0x572   :  { %5966 = vsyncpa [#allocation9], 1 }
 0x573   :  { %5967 = vsyncpa [#allocation12], 1 }

</bundles_post_ra>
